<compile_context>
chip_gen: v7x
topology: tpu7x:2x2x1
jax: 0.10.0
libtpu: 0.0.40
codegen_flags: <defaults>
</compile_context>

<pallas_src>
import functools
import math

import jax
import jax.numpy as jnp
from jax.experimental import pallas as pl
from jax.experimental.pallas import tpu as pltpu


# ----------------------------------------------------------------------------
# helpers
# ----------------------------------------------------------------------------
def _round_up(x, m):
    return (x + m - 1) // m * m


def _tile_rows(mp, cap=512):
    for t in (512, 256, 128, 64, 32, 16, 8):
        if t <= cap and mp >= t and mp % t == 0:
            return t
    return mp


def _erf_approx(x):
    # Abramowitz & Stegun 7.1.26 rational approximation of erf, |err| <= 1.5e-7
    # (fp32 noise level) — keeps the exact (erf-based) nn.GELU() semantics inside the
    # Mosaic kernel without relying on a lax.erf lowering.
    a1, a2, a3, a4, a5 = 0.254829592, -0.284496736, 1.421413741, -1.453152027, 1.061405429
    p_ = 0.3275911
    sign = jnp.where(x < 0.0, -1.0, 1.0)
    ax = jnp.abs(x)
    t = 1.0 / (1.0 + p_ * ax)
    poly = ((((a5 * t + a4) * t + a3) * t + a2) * t + a1) * t
    return sign * (1.0 - poly * jnp.exp(-ax * ax))


def _rmsnorm_rows(x, g, scale):
    # colt5 RMSNorm: F.normalize(x, dim=-1) * sqrt(D) * gamma
    nrm = jnp.sqrt(jnp.sum(x * x, axis=-1, keepdims=True))
    return x / jnp.maximum(nrm, 1e-12) * scale * g


def _attend_one_head(q, k, v, nk_h, nv_h, wo_h, attn_scale):
    """One (batch, head) slice: softmax attention with a null key/value column handled
    analytically, followed by this head's contribution to the output projection."""
    qs = q * attn_scale                                                    # (Nq, dh)
    s = jax.lax.dot_general(qs, k, (((1,), (1,)), ((), ())),
                            preferred_element_type=jnp.float32)            # (Nq, Nk)
    s0 = jnp.sum(qs * nk_h, axis=-1, keepdims=True)                        # (Nq, 1) null score
    m = jnp.maximum(jnp.max(s, axis=-1, keepdims=True), s0)
    p = jnp.exp(s - m)
    p0 = jnp.exp(s0 - m)
    denom = jnp.sum(p, axis=-1, keepdims=True) + p0
    o_h = (jnp.dot(p, v, preferred_element_type=jnp.float32) + p0 * nv_h) / denom
    return jnp.dot(o_h, wo_h, preferred_element_type=jnp.float32)          # (Nq, D)


# ----------------------------------------------------------------------------
# Pallas kernels
# ----------------------------------------------------------------------------
# TODO(synk): at routed / windowed sizes the full (Nq, Nk) score matrix is tiny; if this
#             kernel is ever used with long sequences, convert to a K-tiled online-softmax
#             (flash) form with an accumulator scratch (critical on v7x's 64 MiB VMEM).
def _fused_self_attn_kernel(x_ref, g_ref, wqkv_ref, nk_ref, nv_ref, wo_ref, o_ref,
                            *, batch, seq, heads, dim_head, norm_scale, attn_scale):
    D = x_ref.shape[-1]
    hd = heads * dim_head
    x = x_ref[...]                                                          # (batch*seq, D)
    xn = _rmsnorm_rows(x, g_ref[...], norm_scale)
    qkv = jnp.dot(xn, wqkv_ref[...], preferred_element_type=jnp.float32)    # (batch*seq, 3*hd)
    nk = nk_ref[...]                                                        # (heads, dh)
    nv = nv_ref[...]
    wo = wo_ref[...]                                                        # (hd, D)
    for b in range(batch):
        r0 = b * seq
        out_b = jnp.zeros((seq, D), jnp.float32)
        for h in range(heads):
            c0 = h * dim_head
            q = qkv[r0:r0 + seq, c0:c0 + dim_head]
            k = qkv[r0:r0 + seq, hd + c0:hd + c0 + dim_head]
            v = qkv[r0:r0 + seq, 2 * hd + c0:2 * hd + c0 + dim_head]
            out_b = out_b + _attend_one_head(
                q, k, v, nk[h:h + 1, :], nv[h:h + 1, :],
                wo[c0:c0 + dim_head, :], attn_scale)
        o_ref[r0:r0 + seq, :] = out_b


def _fused_cross_attn_kernel(xq_ref, xkv_ref, g_ref, wq_ref, wkv_ref, nk_ref, nv_ref,
                             wo_ref, o_ref, *, batch, seq_q, seq_kv, heads, dim_head,
                             norm_scale, attn_scale):
    D = xq_ref.shape[-1]
    hd = heads * dim_head
    g = g_ref[...]
    xqn = _rmsnorm_rows(xq_ref[...], g, norm_scale)                         # (batch*seq_q, D)
    xkvn = _rmsnorm_rows(xkv_ref[...], g, norm_scale)                       # (batch*seq_kv, D)
    q_all = jnp.dot(xqn, wq_ref[...], preferred_element_type=jnp.float32)   # (batch*seq_q, hd)
    kv_all = jnp.dot(xkvn, wkv_ref[...], preferred_element_type=jnp.float32)  # (.., 2*hd)
    nk = nk_ref[...]
    nv = nv_ref[...]
    wo = wo_ref[...]
    for b in range(batch):
        rq = b * seq_q
        rk = b * seq_kv
        out_b = jnp.zeros((seq_q, D), jnp.float32)
        for h in range(heads):
            c0 = h * dim_head
            q = q_all[rq:rq + seq_q, c0:c0 + dim_head]
            k = kv_all[rk:rk + seq_kv, c0:c0 + dim_head]
            v = kv_all[rk:rk + seq_kv, hd + c0:hd + c0 + dim_head]
            out_b = out_b + _attend_one_head(
                q, k, v, nk[h:h + 1, :], nv[h:h + 1, :],
                wo[c0:c0 + dim_head, :], attn_scale)
        o_ref[rq:rq + seq_q, :] = out_b


def _ff_kernel(x_ref, g_ref, b_ref, w1_ref, b1_ref, w2_ref, b2_ref, o_ref):
    x = x_ref[...]
    mu = jnp.mean(x, axis=-1, keepdims=True)
    var = jnp.mean(jnp.square(x - mu), axis=-1, keepdims=True)
    xn = (x - mu) * jax.lax.rsqrt(var + 1e-5) * g_ref[...] + b_ref[...]
    h = jnp.dot(xn, w1_ref[...], preferred_element_type=jnp.float32) + b1_ref[...]
    h = 0.5 * h * (1.0 + _erf_approx(h * (1.0 / math.sqrt(2.0))))           # exact (erf) GELU
    o_ref[...] = jnp.dot(h, w2_ref[...], preferred_element_type=jnp.float32) + b2_ref[...]


# ----------------------------------------------------------------------------
# kernel wrappers
# ----------------------------------------------------------------------------
_PARALLEL1 = pltpu.CompilerParams(dimension_semantics=("parallel",))


def colt5_attention(x, p, heads, dim_head, context=None):
    """colt5_attention.Attention forward, fully fused in ONE Pallas kernel per call:
    RMSNorm -> QKV projection -> softmax attention (null kv in-kernel) -> out projection."""
    B, N, D = x.shape
    hd = heads * dim_head
    norm_scale = float(math.sqrt(D))
    attn_scale = float(dim_head ** -0.5)

    if context is None:
        # split the window-batch across 2 grid steps when legal (v7x megacore; ~free on 1-TC chips)
        G = 2 if (B % 2 == 0 and ((B // 2) * N) % 8 == 0) else 1
        rows = (B // G) * N
        wqkv = jnp.concatenate([p["wq"], p["wk"], p["wv"]], axis=1)         # (D, 3*hd) lane-dense
        out = pl.pallas_call(
            functools.partial(
                _fused_self_attn_kernel, batch=B // G, seq=N, heads=heads,
                dim_head=dim_head, norm_scale=norm_scale, attn_scale=attn_scale),
            out_shape=jax.ShapeDtypeStruct((B * N, D), jnp.float32),
            grid=(G,),
            in_specs=[
                pl.BlockSpec((rows, D), lambda i: (i, 0)),
                pl.BlockSpec((1, D), lambda i: (0, 0)),
                pl.BlockSpec((D, 3 * hd), lambda i: (0, 0)),
                pl.BlockSpec((heads, dim_head), lambda i: (0, 0)),
                pl.BlockSpec((heads, dim_head), lambda i: (0, 0)),
                pl.BlockSpec((hd, D), lambda i: (0, 0)),
            ],
            out_specs=pl.BlockSpec((rows, D), lambda i: (i, 0)),
            compiler_params=_PARALLEL1,
        )(x.reshape(B * N, D), p["norm_g"].reshape(1, D), wqkv,
          p["null_k"], p["null_v"], p["wo"])
        return out.reshape(B, N, D)

    Bc, Nc, _ = context.shape
    G = 2 if (B % 2 == 0 and ((B // 2) * N) % 8 == 0 and ((B // 2) * Nc) % 8 == 0) else 1
    rows_q = (B // G) * N
    rows_kv = (B // G) * Nc
    wkv = jnp.concatenate([p["wk"], p["wv"]], axis=1)                       # (D, 2*hd)
    out = pl.pallas_call(
        functools.partial(
            _fused_cross_attn_kernel, batch=B // G, seq_q=N, seq_kv=Nc, heads=heads,
            dim_head=dim_head, norm_scale=norm_scale, attn_scale=attn_scale),
        out_shape=jax.ShapeDtypeStruct((B * N, D), jnp.float32),
        grid=(G,),
        in_specs=[
            pl.BlockSpec((rows_q, D), lambda i: (i, 0)),
            pl.BlockSpec((rows_kv, D), lambda i: (i, 0)),
            pl.BlockSpec((1, D), lambda i: (0, 0)),
            pl.BlockSpec((D, hd), lambda i: (0, 0)),
            pl.BlockSpec((D, 2 * hd), lambda i: (0, 0)),
            pl.BlockSpec((heads, dim_head), lambda i: (0, 0)),
            pl.BlockSpec((heads, dim_head), lambda i: (0, 0)),
            pl.BlockSpec((hd, D), lambda i: (0, 0)),
        ],
        out_specs=pl.BlockSpec((rows_q, D), lambda i: (i, 0)),
        compiler_params=_PARALLEL1,
    )(x.reshape(B * N, D), context.reshape(Bc * Nc, D), p["norm_g"].reshape(1, D),
      p["wq"], wkv, p["null_k"], p["null_v"], p["wo"])
    return out.reshape(B, N, D)


def pallas_feedforward(x, g, b, w1, b1, w2, b2):
    """Fused nn.Sequential(LayerNorm, Linear, GELU, Linear), tiled over rows."""
    M, D = x.shape
    Hd = w1.shape[1]
    Mp = _round_up(max(M, 8), 8)
    xp = x if Mp == M else jnp.pad(x, ((0, Mp - M), (0, 0)))
    # TODO(synk): for real-ViT sizes (large D, Hd) cap tm lower / k-tile Hd and set
    #             vmem_limit_bytes explicitly so the resident w1+w2+hidden fits v7x's 64 MiB.
    tm = _tile_rows(Mp, cap=512)
    out = pl.pallas_call(
        _ff_kernel,
        out_shape=jax.ShapeDtypeStruct((Mp, D), jnp.float32),
        grid=(Mp // tm,),
        in_specs=[
            pl.BlockSpec((tm, D), lambda i: (i, 0)),
            pl.BlockSpec((1, D), lambda i: (0, 0)),
            pl.BlockSpec((1, D), lambda i: (0, 0)),
            pl.BlockSpec((D, Hd), lambda i: (0, 0)),
            pl.BlockSpec((1, Hd), lambda i: (0, 0)),
            pl.BlockSpec((Hd, D), lambda i: (0, 0)),
            pl.BlockSpec((1, D), lambda i: (0, 0)),
        ],
        out_specs=pl.BlockSpec((tm, D), lambda i: (i, 0)),
        compiler_params=_PARALLEL1,
    )(xp, g.reshape(1, D), b.reshape(1, D), w1, b1.reshape(1, Hd), w2, b2.reshape(1, D))
    return out if Mp == M else out[:M]


# ----------------------------------------------------------------------------
# CoordinateDescentRouter (plain JAX glue; scores are 1.0 via straight-through)
# ----------------------------------------------------------------------------
ROUTER_N_ITERS = 20
ROUTER_EPS = 0.03
ROUTER_EPS_INIT = 4.0
ROUTER_EPS_DECAY = 0.7
ROUTER_FETCH_K_RATIO = 9.0 / 8.0


def coor_descent(s, n_iters, k, eps, eps_init, eps_decay):
    logk = math.log(k)
    b = -s
    a = jnp.zeros_like(s[..., :1])
    cur = max(eps_init, eps)
    for _ in range(n_iters):
        sb = (s + b) / cur
        a = cur * (logk - jax.scipy.special.logsumexp(sb, axis=-1, keepdims=True))
        b = -jax.nn.relu(s + a)
        cur = max(cur * eps_decay, eps)
    return jnp.exp((s + a + b) / cur)


def coordinate_descent_router(x, routing_token, num_tokens, straight_through=True):
    """Returns (normalized_scores, indices_or_None, routed_tokens)."""
    B, N, D = x.shape
    if N <= num_tokens:   # no routing needed — same shortcut as the PyTorch module
        return jnp.ones((B, N), x.dtype), None, x
    s = jnp.einsum("bnd,d->bn", x, routing_token)
    eff_k = min(num_tokens * ROUTER_FETCH_K_RATIO, float(N))
    scores = coor_descent(s, ROUTER_N_ITERS, eff_k, ROUTER_EPS, ROUTER_EPS_INIT, ROUTER_EPS_DECAY)
    sel_scores, sel_idx = jax.lax.top_k(scores, num_tokens)
    if straight_through:
        # s + (1 - s).detach() == 1 in the forward pass
        sel_scores = jnp.ones_like(sel_scores)
    routed = jnp.take_along_axis(x, sel_idx[..., None], axis=1)
    return sel_scores, sel_idx, routed


# ----------------------------------------------------------------------------
# colt5 blocks (Pallas kernels + plain-JAX routing / window glue)
# ----------------------------------------------------------------------------
def conditional_routed_image_attention(x, p, cfg):
    B, H, W, D = x.shape
    w = cfg["light_window_size"]
    nh, nw = H // w, W // w

    # light branch: full attention inside non-overlapping (w x w) image windows
    light_in = (
        x.reshape(B, nh, w, nw, w, D).transpose(0, 1, 3, 2, 4, 5).reshape(B * nh * nw, w * w, D)
    )
    light_out = colt5_attention(light_in, p["light_attn"], cfg["light_heads"], cfg["light_dim_head"])
    light_out = (
        light_out.reshape(B, nh, nw, w, w, D).transpose(0, 1, 3, 2, 4, 5).reshape(B, H, W, D)
    )

    # heavy branch: routed full attention over selected q / kv tokens
    xs = x.reshape(B, H * W, D)
    ns_q, idx_q, routed_q = coordinate_descent_router(xs, p["q_router_token"], cfg["num_heavy_tokens_q"])
    ns_kv, idx_kv, routed_kv = coordinate_descent_router(xs, p["kv_router_token"], cfg["num_heavy_tokens_kv"])
    # v = v * normalized_scores_kv is a no-op here (straight-through scores == 1.0)

    heavy_tok = colt5_attention(
        routed_q, p["heavy_attn"], cfg["heavy_heads"], cfg["heavy_dim_head"], context=routed_kv
    )
    heavy_tok = heavy_tok * ns_q[..., None]

    if idx_q is not None:
        heavy_out = jnp.broadcast_to(p["null_q_token"][None, None, :], xs.shape)
        heavy_out = heavy_out.at[jnp.arange(B)[:, None], idx_q].set(heavy_tok)
    else:
        heavy_out = heavy_tok
    heavy_out = heavy_out.reshape(B, H, W, D)

    return light_out + heavy_out


def conditional_routed_feedforward(x, p, num_heavy_tokens):
    B, N, D = x.shape
    lp = p["light_ff"]
    light = pallas_feedforward(
        x.reshape(-1, D), lp["g"], lp["b"], lp["w1"], lp["b1"], lp["w2"], lp["b2"]
    ).reshape(B, N, D)

    ns, idx, routed = coordinate_descent_router(x, p["router_token"], num_heavy_tokens)
    K = routed.shape[1]
    hp = p["heavy_ff"]
    heavy_tok = pallas_feedforward(
        routed.reshape(-1, D), hp["g"], hp["b"], hp["w1"], hp["b1"], hp["w2"], hp["b2"]
    ).reshape(B, K, D)
    heavy_tok = heavy_tok * ns[..., None]

    if idx is not None:
        heavy = jnp.zeros_like(x).at[jnp.arange(B)[:, None], idx].set(heavy_tok)
    else:
        heavy = heavy_tok
    return light + heavy


def transformer_forward(x, params, cfg):
    for lp in params["layers"]:
        x = conditional_routed_image_attention(x, lp["attn"], cfg) + x
        B, H, W, D = x.shape
        xs = x.reshape(B, H * W, D)                                  # pack([x], 'b * d')
        xs = conditional_routed_feedforward(xs, lp["ff"], cfg["ff_num_heavy_tokens"]) + xs
        x = xs.reshape(B, H, W, D)                                   # unpack(..., 'b * d')
    return x


# ----------------------------------------------------------------------------
# deterministic parameter init (shapes follow the PyTorch module __init__)
# ----------------------------------------------------------------------------
def init_params(key, cfg):
    D = cfg["dim"]

    def linear_w(k, din, dout):
        bound = 1.0 / math.sqrt(din)
        return jax.random.uniform(k, (din, dout), jnp.float32, -bound, bound)

    def linear_b(k, din, dout):
        bound = 1.0 / math.sqrt(din)
        return jax.random.uniform(k, (dout,), jnp.float32, -bound, bound)

    def attn_params(k, heads, dim_head):
        ks = jax.random.split(k, 6)
        hd = heads * dim_head
        return dict(
            norm_g=jnp.ones((D,), jnp.float32),
            wq=linear_w(ks[0], D, hd),
            wk=linear_w(ks[1], D, hd),
            wv=linear_w(ks[2], D, hd),
            wo=linear_w(ks[3], hd, D),
            null_k=jax.random.normal(ks[4], (heads, dim_head), jnp.float32),
            null_v=jax.random.normal(ks[5], (heads, dim_head), jnp.float32),
        )

    def ff_params(k, mult):
        hidden = int(D * mult)
        ks = jax.random.split(k, 4)
        return dict(
            g=jnp.ones((D,), jnp.float32),
            b=jnp.zeros((D,), jnp.float32),
            w1=linear_w(ks[0], D, hidden),
            b1=linear_b(ks[1], D, hidden),
            w2=linear_w(ks[2], hidden, D),
            b2=linear_b(ks[3], hidden, D),
        )

    layers = []
    for _ in range(cfg["depth"]):
        key, k1, k2, k3, k4, k5, k6, k7, k8 = jax.random.split(key, 9)
        attn = dict(
            null_q_token=jax.random.normal(k1, (D,), jnp.float32),
            light_attn=attn_params(k2, cfg["light_heads"], cfg["light_dim_head"]),
            heavy_attn=attn_params(k3, cfg["heavy_heads"], cfg["heavy_dim_head"]),
            q_router_token=jax.random.normal(k4, (D,), jnp.float32),
            kv_router_token=jax.random.normal(k5, (D,), jnp.float32),
        )
        ff = dict(
            router_token=jax.random.normal(k6, (D,), jnp.float32),
            light_ff=ff_params(k7, cfg["ff_light_mult"]),
            heavy_ff=ff_params(k8, cfg["ff_heavy_mult"]),
        )
        layers.append(dict(attn=attn, ff=ff))
    return dict(layers=layers)


# ----------------------------------------------------------------------------
if __name__ == "__main__":
    cfg = dict(
        dim=32,
        depth=2,
        num_heavy_tokens_q=16,
        num_heavy_tokens_kv=16,
        light_dim_head=16,
        light_heads=2,
        light_window_size=4,    # 4x4 = 16-token windows for the light branch
        heavy_dim_head=16,
        heavy_heads=4,
        ff_num_heavy_tokens=16,
        ff_light_mult=0.5,
        ff_heavy_mult=4,
    )

    key = jax.random.PRNGKey(0)
    kx, kp = jax.random.split(key)
    # layout: (B, H, W, D) channel-last feature map of patch tokens
    x = jax.random.normal(kx, (2, 8, 8, cfg["dim"]), jnp.float32)
    params = init_params(kp, cfg)

    fwd = jax.jit(functools.partial(transformer_forward, cfg=cfg))
    out = fwd(x, params)
    out = jax.block_until_ready(out)

    assert out.shape == x.shape, out.shape
    assert bool(jnp.all(jnp.isfinite(out)))
    print("KERNEL_OK")
</pallas_src>

<mosaic_0001>
module attributes {stable_mosaic.version = 11 : i64} {
  func.func @_fused_self_attn_kernel(%arg0: i32, %arg1: memref<64x32xf32, #tpu.memory_space<vmem>>, %arg2: memref<1x32xf32, #tpu.memory_space<vmem>>, %arg3: memref<32x96xf32, #tpu.memory_space<vmem>>, %arg4: memref<2x16xf32, #tpu.memory_space<vmem>>, %arg5: memref<2x16xf32, #tpu.memory_space<vmem>>, %arg6: memref<32x32xf32, #tpu.memory_space<vmem>>, %arg7: memref<64x32xf32, #tpu.memory_space<vmem>>) attributes {dimension_semantics = [#tpu.dimension_semantics<parallel>], iteration_bounds = array<i64: 2>, scalar_prefetch = 0 : i64, scratch_operands = 0 : i64, tpu.core_type = #tpu.core_type<tc>, window_params = [{transform_indices = @transform_0, window_bounds = array<i64: 64, 32>}, {pipeline_mode = #tpu.pipeline_mode<synchronous>, transform_indices = @transform_1, window_bounds = array<i64: 1, 32>}, {pipeline_mode = #tpu.pipeline_mode<synchronous>, transform_indices = @transform_2, window_bounds = array<i64: 32, 96>}, {pipeline_mode = #tpu.pipeline_mode<synchronous>, transform_indices = @transform_3, window_bounds = array<i64: 2, 16>}, {pipeline_mode = #tpu.pipeline_mode<synchronous>, transform_indices = @transform_4, window_bounds = array<i64: 2, 16>}, {pipeline_mode = #tpu.pipeline_mode<synchronous>, transform_indices = @transform_5, window_bounds = array<i64: 32, 32>}, {transform_indices = @transform_6, window_bounds = array<i64: 64, 32>}]} {
    %c0 = arith.constant 0 : index
    %c0_0 = arith.constant 0 : index
    %0 = vector.load %arg1[%c0, %c0_0] : memref<64x32xf32, #tpu.memory_space<vmem>>, vector<64x32xf32>
    %c0_1 = arith.constant 0 : index
    %c0_2 = arith.constant 0 : index
    %1 = vector.load %arg2[%c0_1, %c0_2] : memref<1x32xf32, #tpu.memory_space<vmem>>, vector<1x32xf32>
    %2 = arith.mulf %0, %0 : vector<64x32xf32>
    %cst = arith.constant dense<0.000000e+00> : vector<64xf32>
    %3 = vector.multi_reduction <add>, %2, %cst [1] : vector<64x32xf32> to vector<64xf32>
    %4 = vector.shape_cast %3 : vector<64xf32> to vector<64x1xf32>
    %5 = math.sqrt %4 : vector<64x1xf32>
    %cst_3 = arith.constant 9.99999996E-13 : f32
    %6 = vector.broadcast %cst_3 : f32 to vector<64x1xf32>
    %7 = arith.maximumf %5, %6 : vector<64x1xf32>
    %8 = vector.broadcast %7 : vector<64x1xf32> to vector<64x32xf32>
    %9 = arith.divf %0, %8 : vector<64x32xf32>
    %cst_4 = arith.constant 5.65685415 : f32
    %10 = vector.broadcast %cst_4 : f32 to vector<64x32xf32>
    %11 = arith.mulf %9, %10 : vector<64x32xf32>
    %12 = vector.broadcast %1 : vector<1x32xf32> to vector<64x32xf32>
    %13 = arith.mulf %11, %12 : vector<64x32xf32>
    %c0_5 = arith.constant 0 : index
    %c0_6 = arith.constant 0 : index
    %14 = vector.load %arg3[%c0_5, %c0_6] : memref<32x96xf32, #tpu.memory_space<vmem>>, vector<32x96xf32>
    %cst_7 = arith.constant dense<0.000000e+00> : vector<64x96xf32>
    %15 = tpu.matmul %13, %14, %cst_7 {dimension_numbers = #tpu.dot_dimension_numbers<[1], [0], [0], [1], [0, 0, 1, 1], [], []>} : vector<64x32xf32>, vector<32x96xf32>, vector<64x96xf32> -> vector<64x96xf32>
    %c0_8 = arith.constant 0 : index
    %c0_9 = arith.constant 0 : index
    %16 = vector.load %arg4[%c0_8, %c0_9] : memref<2x16xf32, #tpu.memory_space<vmem>>, vector<2x16xf32>
    %c0_10 = arith.constant 0 : index
    %c0_11 = arith.constant 0 : index
    %17 = vector.load %arg5[%c0_10, %c0_11] : memref<2x16xf32, #tpu.memory_space<vmem>>, vector<2x16xf32>
    %c0_12 = arith.constant 0 : index
    %c0_13 = arith.constant 0 : index
    %18 = vector.load %arg6[%c0_12, %c0_13] : memref<32x32xf32, #tpu.memory_space<vmem>>, vector<32x32xf32>
    %cst_14 = arith.constant 0.000000e+00 : f32
    %19 = vector.broadcast %cst_14 : f32 to vector<16x32xf32>
    %20 = vector.extract_strided_slice %15 {offsets = [0, 0], sizes = [16, 16], strides = [1, 1]} : vector<64x96xf32> to vector<16x16xf32>
    %21 = vector.extract_strided_slice %15 {offsets = [0, 32], sizes = [16, 16], strides = [1, 1]} : vector<64x96xf32> to vector<16x16xf32>
    %22 = vector.extract_strided_slice %15 {offsets = [0, 64], sizes = [16, 16], strides = [1, 1]} : vector<64x96xf32> to vector<16x16xf32>
    %23 = vector.extract_strided_slice %16 {offsets = [0, 0], sizes = [1, 16], strides = [1, 1]} : vector<2x16xf32> to vector<1x16xf32>
    %24 = vector.extract_strided_slice %17 {offsets = [0, 0], sizes = [1, 16], strides = [1, 1]} : vector<2x16xf32> to vector<1x16xf32>
    %25 = vector.extract_strided_slice %18 {offsets = [0, 0], sizes = [16, 32], strides = [1, 1]} : vector<32x32xf32> to vector<16x32xf32>
    %cst_15 = arith.constant 2.500000e-01 : f32
    %26 = vector.broadcast %cst_15 : f32 to vector<16x16xf32>
    %27 = arith.mulf %20, %26 : vector<16x16xf32>
    %cst_16 = arith.constant dense<0.000000e+00> : vector<16x16xf32>
    %28 = tpu.matmul %27, %21, %cst_16 {dimension_numbers = #tpu.dot_dimension_numbers<[1], [1], [0], [0], [0, 0, 1, 0], [], []>} : vector<16x16xf32>, vector<16x16xf32>, vector<16x16xf32> -> vector<16x16xf32>
    %29 = vector.broadcast %23 : vector<1x16xf32> to vector<16x16xf32>
    %30 = arith.mulf %27, %29 : vector<16x16xf32>
    %cst_17 = arith.constant dense<0.000000e+00> : vector<16xf32>
    %31 = vector.multi_reduction <add>, %30, %cst_17 [1] : vector<16x16xf32> to vector<16xf32>
    %32 = vector.shape_cast %31 : vector<16xf32> to vector<16x1xf32>
    %cst_18 = arith.constant dense<0xFF800000> : vector<16xf32>
    %33 = vector.multi_reduction <maximumf>, %28, %cst_18 [1] : vector<16x16xf32> to vector<16xf32>
    %34 = vector.shape_cast %33 : vector<16xf32> to vector<16x1xf32>
    %35 = arith.maximumf %34, %32 : vector<16x1xf32>
    %36 = vector.broadcast %35 : vector<16x1xf32> to vector<16x16xf32>
    %37 = arith.subf %28, %36 : vector<16x16xf32>
    %38 = math.exp %37 : vector<16x16xf32>
    %39 = arith.subf %32, %35 : vector<16x1xf32>
    %40 = math.exp %39 : vector<16x1xf32>
    %cst_19 = arith.constant dense<0.000000e+00> : vector<16xf32>
    %41 = vector.multi_reduction <add>, %38, %cst_19 [1] : vector<16x16xf32> to vector<16xf32>
    %42 = vector.shape_cast %41 : vector<16xf32> to vector<16x1xf32>
    %43 = arith.addf %42, %40 : vector<16x1xf32>
    %cst_20 = arith.constant dense<0.000000e+00> : vector<16x16xf32>
    %44 = tpu.matmul %38, %22, %cst_20 {dimension_numbers = #tpu.dot_dimension_numbers<[1], [0], [0], [1], [0, 0, 1, 1], [], []>} : vector<16x16xf32>, vector<16x16xf32>, vector<16x16xf32> -> vector<16x16xf32>
    %45 = vector.broadcast %40 : vector<16x1xf32> to vector<16x16xf32>
    %46 = vector.broadcast %24 : vector<1x16xf32> to vector<16x16xf32>
    %47 = arith.mulf %45, %46 : vector<16x16xf32>
    %48 = arith.addf %44, %47 : vector<16x16xf32>
    %49 = vector.broadcast %43 : vector<16x1xf32> to vector<16x16xf32>
    %50 = arith.divf %48, %49 : vector<16x16xf32>
    %cst_21 = arith.constant dense<0.000000e+00> : vector<16x32xf32>
    %51 = tpu.matmul %50, %25, %cst_21 {dimension_numbers = #tpu.dot_dimension_numbers<[1], [0], [0], [1], [0, 0, 1, 1], [], []>} : vector<16x16xf32>, vector<16x32xf32>, vector<16x32xf32> -> vector<16x32xf32>
    %52 = arith.addf %19, %51 : vector<16x32xf32>
    %53 = vector.extract_strided_slice %15 {offsets = [0, 16], sizes = [16, 16], strides = [1, 1]} : vector<64x96xf32> to vector<16x16xf32>
    %54 = vector.extract_strided_slice %15 {offsets = [0, 48], sizes = [16, 16], strides = [1, 1]} : vector<64x96xf32> to vector<16x16xf32>
    %55 = vector.extract_strided_slice %15 {offsets = [0, 80], sizes = [16, 16], strides = [1, 1]} : vector<64x96xf32> to vector<16x16xf32>
    %56 = vector.extract_strided_slice %16 {offsets = [1, 0], sizes = [1, 16], strides = [1, 1]} : vector<2x16xf32> to vector<1x16xf32>
    %57 = vector.extract_strided_slice %17 {offsets = [1, 0], sizes = [1, 16], strides = [1, 1]} : vector<2x16xf32> to vector<1x16xf32>
    %58 = vector.extract_strided_slice %18 {offsets = [16, 0], sizes = [16, 32], strides = [1, 1]} : vector<32x32xf32> to vector<16x32xf32>
    %cst_22 = arith.constant 2.500000e-01 : f32
    %59 = vector.broadcast %cst_22 : f32 to vector<16x16xf32>
    %60 = arith.mulf %53, %59 : vector<16x16xf32>
    %cst_23 = arith.constant dense<0.000000e+00> : vector<16x16xf32>
    %61 = tpu.matmul %60, %54, %cst_23 {dimension_numbers = #tpu.dot_dimension_numbers<[1], [1], [0], [0], [0, 0, 1, 0], [], []>} : vector<16x16xf32>, vector<16x16xf32>, vector<16x16xf32> -> vector<16x16xf32>
    %62 = vector.broadcast %56 : vector<1x16xf32> to vector<16x16xf32>
    %63 = arith.mulf %60, %62 : vector<16x16xf32>
    %cst_24 = arith.constant dense<0.000000e+00> : vector<16xf32>
    %64 = vector.multi_reduction <add>, %63, %cst_24 [1] : vector<16x16xf32> to vector<16xf32>
    %65 = vector.shape_cast %64 : vector<16xf32> to vector<16x1xf32>
    %cst_25 = arith.constant dense<0xFF800000> : vector<16xf32>
    %66 = vector.multi_reduction <maximumf>, %61, %cst_25 [1] : vector<16x16xf32> to vector<16xf32>
    %67 = vector.shape_cast %66 : vector<16xf32> to vector<16x1xf32>
    %68 = arith.maximumf %67, %65 : vector<16x1xf32>
    %69 = vector.broadcast %68 : vector<16x1xf32> to vector<16x16xf32>
    %70 = arith.subf %61, %69 : vector<16x16xf32>
    %71 = math.exp %70 : vector<16x16xf32>
    %72 = arith.subf %65, %68 : vector<16x1xf32>
    %73 = math.exp %72 : vector<16x1xf32>
    %cst_26 = arith.constant dense<0.000000e+00> : vector<16xf32>
    %74 = vector.multi_reduction <add>, %71, %cst_26 [1] : vector<16x16xf32> to vector<16xf32>
    %75 = vector.shape_cast %74 : vector<16xf32> to vector<16x1xf32>
    %76 = arith.addf %75, %73 : vector<16x1xf32>
    %cst_27 = arith.constant dense<0.000000e+00> : vector<16x16xf32>
    %77 = tpu.matmul %71, %55, %cst_27 {dimension_numbers = #tpu.dot_dimension_numbers<[1], [0], [0], [1], [0, 0, 1, 1], [], []>} : vector<16x16xf32>, vector<16x16xf32>, vector<16x16xf32> -> vector<16x16xf32>
    %78 = vector.broadcast %73 : vector<16x1xf32> to vector<16x16xf32>
    %79 = vector.broadcast %57 : vector<1x16xf32> to vector<16x16xf32>
    %80 = arith.mulf %78, %79 : vector<16x16xf32>
    %81 = arith.addf %77, %80 : vector<16x16xf32>
    %82 = vector.broadcast %76 : vector<16x1xf32> to vector<16x16xf32>
    %83 = arith.divf %81, %82 : vector<16x16xf32>
    %cst_28 = arith.constant dense<0.000000e+00> : vector<16x32xf32>
    %84 = tpu.matmul %83, %58, %cst_28 {dimension_numbers = #tpu.dot_dimension_numbers<[1], [0], [0], [1], [0, 0, 1, 1], [], []>} : vector<16x16xf32>, vector<16x32xf32>, vector<16x32xf32> -> vector<16x32xf32>
    %85 = arith.addf %52, %84 : vector<16x32xf32>
    %c0_29 = arith.constant 0 : index
    %c0_30 = arith.constant 0 : index
    %86 = vector.load %arg7[%c0_29, %c0_30] : memref<64x32xf32, #tpu.memory_space<vmem>>, vector<16x32xf32>
    tpu.vector_store %arg7[%c0_29, %c0_30], %85 {strides = array<i32>} : memref<64x32xf32, #tpu.memory_space<vmem>>, vector<16x32xf32>,
    %cst_31 = arith.constant 0.000000e+00 : f32
    %87 = vector.broadcast %cst_31 : f32 to vector<16x32xf32>
    %88 = vector.extract_strided_slice %15 {offsets = [16, 0], sizes = [16, 16], strides = [1, 1]} : vector<64x96xf32> to vector<16x16xf32>
    %89 = vector.extract_strided_slice %15 {offsets = [16, 32], sizes = [16, 16], strides = [1, 1]} : vector<64x96xf32> to vector<16x16xf32>
    %90 = vector.extract_strided_slice %15 {offsets = [16, 64], sizes = [16, 16], strides = [1, 1]} : vector<64x96xf32> to vector<16x16xf32>
    %91 = vector.extract_strided_slice %16 {offsets = [0, 0], sizes = [1, 16], strides = [1, 1]} : vector<2x16xf32> to vector<1x16xf32>
    %92 = vector.extract_strided_slice %17 {offsets = [0, 0], sizes = [1, 16], strides = [1, 1]} : vector<2x16xf32> to vector<1x16xf32>
    %93 = vector.extract_strided_slice %18 {offsets = [0, 0], sizes = [16, 32], strides = [1, 1]} : vector<32x32xf32> to vector<16x32xf32>
    %cst_32 = arith.constant 2.500000e-01 : f32
    %94 = vector.broadcast %cst_32 : f32 to vector<16x16xf32>
    %95 = arith.mulf %88, %94 : vector<16x16xf32>
    %cst_33 = arith.constant dense<0.000000e+00> : vector<16x16xf32>
    %96 = tpu.matmul %95, %89, %cst_33 {dimension_numbers = #tpu.dot_dimension_numbers<[1], [1], [0], [0], [0, 0, 1, 0], [], []>} : vector<16x16xf32>, vector<16x16xf32>, vector<16x16xf32> -> vector<16x16xf32>
    %97 = vector.broadcast %91 : vector<1x16xf32> to vector<16x16xf32>
    %98 = arith.mulf %95, %97 : vector<16x16xf32>
    %cst_34 = arith.constant dense<0.000000e+00> : vector<16xf32>
    %99 = vector.multi_reduction <add>, %98, %cst_34 [1] : vector<16x16xf32> to vector<16xf32>
    %100 = vector.shape_cast %99 : vector<16xf32> to vector<16x1xf32>
    %cst_35 = arith.constant dense<0xFF800000> : vector<16xf32>
    %101 = vector.multi_reduction <maximumf>, %96, %cst_35 [1] : vector<16x16xf32> to vector<16xf32>
    %102 = vector.shape_cast %101 : vector<16xf32> to vector<16x1xf32>
    %103 = arith.maximumf %102, %100 : vector<16x1xf32>
    %104 = vector.broadcast %103 : vector<16x1xf32> to vector<16x16xf32>
    %105 = arith.subf %96, %104 : vector<16x16xf32>
    %106 = math.exp %105 : vector<16x16xf32>
    %107 = arith.subf %100, %103 : vector<16x1xf32>
    %108 = math.exp %107 : vector<16x1xf32>
    %cst_36 = arith.constant dense<0.000000e+00> : vector<16xf32>
    %109 = vector.multi_reduction <add>, %106, %cst_36 [1] : vector<16x16xf32> to vector<16xf32>
    %110 = vector.shape_cast %109 : vector<16xf32> to vector<16x1xf32>
    %111 = arith.addf %110, %108 : vector<16x1xf32>
    %cst_37 = arith.constant dense<0.000000e+00> : vector<16x16xf32>
    %112 = tpu.matmul %106, %90, %cst_37 {dimension_numbers = #tpu.dot_dimension_numbers<[1], [0], [0], [1], [0, 0, 1, 1], [], []>} : vector<16x16xf32>, vector<16x16xf32>, vector<16x16xf32> -> vector<16x16xf32>
    %113 = vector.broadcast %108 : vector<16x1xf32> to vector<16x16xf32>
    %114 = vector.broadcast %92 : vector<1x16xf32> to vector<16x16xf32>
    %115 = arith.mulf %113, %114 : vector<16x16xf32>
    %116 = arith.addf %112, %115 : vector<16x16xf32>
    %117 = vector.broadcast %111 : vector<16x1xf32> to vector<16x16xf32>
    %118 = arith.divf %116, %117 : vector<16x16xf32>
    %cst_38 = arith.constant dense<0.000000e+00> : vector<16x32xf32>
    %119 = tpu.matmul %118, %93, %cst_38 {dimension_numbers = #tpu.dot_dimension_numbers<[1], [0], [0], [1], [0, 0, 1, 1], [], []>} : vector<16x16xf32>, vector<16x32xf32>, vector<16x32xf32> -> vector<16x32xf32>
    %120 = arith.addf %87, %119 : vector<16x32xf32>
    %121 = vector.extract_strided_slice %15 {offsets = [16, 16], sizes = [16, 16], strides = [1, 1]} : vector<64x96xf32> to vector<16x16xf32>
    %122 = vector.extract_strided_slice %15 {offsets = [16, 48], sizes = [16, 16], strides = [1, 1]} : vector<64x96xf32> to vector<16x16xf32>
    %123 = vector.extract_strided_slice %15 {offsets = [16, 80], sizes = [16, 16], strides = [1, 1]} : vector<64x96xf32> to vector<16x16xf32>
    %124 = vector.extract_strided_slice %16 {offsets = [1, 0], sizes = [1, 16], strides = [1, 1]} : vector<2x16xf32> to vector<1x16xf32>
    %125 = vector.extract_strided_slice %17 {offsets = [1, 0], sizes = [1, 16], strides = [1, 1]} : vector<2x16xf32> to vector<1x16xf32>
    %126 = vector.extract_strided_slice %18 {offsets = [16, 0], sizes = [16, 32], strides = [1, 1]} : vector<32x32xf32> to vector<16x32xf32>
    %cst_39 = arith.constant 2.500000e-01 : f32
    %127 = vector.broadcast %cst_39 : f32 to vector<16x16xf32>
    %128 = arith.mulf %121, %127 : vector<16x16xf32>
    %cst_40 = arith.constant dense<0.000000e+00> : vector<16x16xf32>
    %129 = tpu.matmul %128, %122, %cst_40 {dimension_numbers = #tpu.dot_dimension_numbers<[1], [1], [0], [0], [0, 0, 1, 0], [], []>} : vector<16x16xf32>, vector<16x16xf32>, vector<16x16xf32> -> vector<16x16xf32>
    %130 = vector.broadcast %124 : vector<1x16xf32> to vector<16x16xf32>
    %131 = arith.mulf %128, %130 : vector<16x16xf32>
    %cst_41 = arith.constant dense<0.000000e+00> : vector<16xf32>
    %132 = vector.multi_reduction <add>, %131, %cst_41 [1] : vector<16x16xf32> to vector<16xf32>
    %133 = vector.shape_cast %132 : vector<16xf32> to vector<16x1xf32>
    %cst_42 = arith.constant dense<0xFF800000> : vector<16xf32>
    %134 = vector.multi_reduction <maximumf>, %129, %cst_42 [1] : vector<16x16xf32> to vector<16xf32>
    %135 = vector.shape_cast %134 : vector<16xf32> to vector<16x1xf32>
    %136 = arith.maximumf %135, %133 : vector<16x1xf32>
    %137 = vector.broadcast %136 : vector<16x1xf32> to vector<16x16xf32>
    %138 = arith.subf %129, %137 : vector<16x16xf32>
    %139 = math.exp %138 : vector<16x16xf32>
    %140 = arith.subf %133, %136 : vector<16x1xf32>
    %141 = math.exp %140 : vector<16x1xf32>
    %cst_43 = arith.constant dense<0.000000e+00> : vector<16xf32>
    %142 = vector.multi_reduction <add>, %139, %cst_43 [1] : vector<16x16xf32> to vector<16xf32>
    %143 = vector.shape_cast %142 : vector<16xf32> to vector<16x1xf32>
    %144 = arith.addf %143, %141 : vector<16x1xf32>
    %cst_44 = arith.constant dense<0.000000e+00> : vector<16x16xf32>
    %145 = tpu.matmul %139, %123, %cst_44 {dimension_numbers = #tpu.dot_dimension_numbers<[1], [0], [0], [1], [0, 0, 1, 1], [], []>} : vector<16x16xf32>, vector<16x16xf32>, vector<16x16xf32> -> vector<16x16xf32>
    %146 = vector.broadcast %141 : vector<16x1xf32> to vector<16x16xf32>
    %147 = vector.broadcast %125 : vector<1x16xf32> to vector<16x16xf32>
    %148 = arith.mulf %146, %147 : vector<16x16xf32>
    %149 = arith.addf %145, %148 : vector<16x16xf32>
    %150 = vector.broadcast %144 : vector<16x1xf32> to vector<16x16xf32>
    %151 = arith.divf %149, %150 : vector<16x16xf32>
    %cst_45 = arith.constant dense<0.000000e+00> : vector<16x32xf32>
    %152 = tpu.matmul %151, %126, %cst_45 {dimension_numbers = #tpu.dot_dimension_numbers<[1], [0], [0], [1], [0, 0, 1, 1], [], []>} : vector<16x16xf32>, vector<16x32xf32>, vector<16x32xf32> -> vector<16x32xf32>
    %153 = arith.addf %120, %152 : vector<16x32xf32>
    %c16 = arith.constant 16 : index
    %c0_46 = arith.constant 0 : index
    %154 = vector.load %arg7[%c16, %c0_46] : memref<64x32xf32, #tpu.memory_space<vmem>>, vector<16x32xf32>
    tpu.vector_store %arg7[%c16, %c0_46], %153 {strides = array<i32>} : memref<64x32xf32, #tpu.memory_space<vmem>>, vector<16x32xf32>,
    %cst_47 = arith.constant 0.000000e+00 : f32
    %155 = vector.broadcast %cst_47 : f32 to vector<16x32xf32>
    %156 = vector.extract_strided_slice %15 {offsets = [32, 0], sizes = [16, 16], strides = [1, 1]} : vector<64x96xf32> to vector<16x16xf32>
    %157 = vector.extract_strided_slice %15 {offsets = [32, 32], sizes = [16, 16], strides = [1, 1]} : vector<64x96xf32> to vector<16x16xf32>
    %158 = vector.extract_strided_slice %15 {offsets = [32, 64], sizes = [16, 16], strides = [1, 1]} : vector<64x96xf32> to vector<16x16xf32>
    %159 = vector.extract_strided_slice %16 {offsets = [0, 0], sizes = [1, 16], strides = [1, 1]} : vector<2x16xf32> to vector<1x16xf32>
    %160 = vector.extract_strided_slice %17 {offsets = [0, 0], sizes = [1, 16], strides = [1, 1]} : vector<2x16xf32> to vector<1x16xf32>
    %161 = vector.extract_strided_slice %18 {offsets = [0, 0], sizes = [16, 32], strides = [1, 1]} : vector<32x32xf32> to vector<16x32xf32>
    %cst_48 = arith.constant 2.500000e-01 : f32
    %162 = vector.broadcast %cst_48 : f32 to vector<16x16xf32>
    %163 = arith.mulf %156, %162 : vector<16x16xf32>
    %cst_49 = arith.constant dense<0.000000e+00> : vector<16x16xf32>
    %164 = tpu.matmul %163, %157, %cst_49 {dimension_numbers = #tpu.dot_dimension_numbers<[1], [1], [0], [0], [0, 0, 1, 0], [], []>} : vector<16x16xf32>, vector<16x16xf32>, vector<16x16xf32> -> vector<16x16xf32>
    %165 = vector.broadcast %159 : vector<1x16xf32> to vector<16x16xf32>
    %166 = arith.mulf %163, %165 : vector<16x16xf32>
    %cst_50 = arith.constant dense<0.000000e+00> : vector<16xf32>
    %167 = vector.multi_reduction <add>, %166, %cst_50 [1] : vector<16x16xf32> to vector<16xf32>
    %168 = vector.shape_cast %167 : vector<16xf32> to vector<16x1xf32>
    %cst_51 = arith.constant dense<0xFF800000> : vector<16xf32>
    %169 = vector.multi_reduction <maximumf>, %164, %cst_51 [1] : vector<16x16xf32> to vector<16xf32>
    %170 = vector.shape_cast %169 : vector<16xf32> to vector<16x1xf32>
    %171 = arith.maximumf %170, %168 : vector<16x1xf32>
    %172 = vector.broadcast %171 : vector<16x1xf32> to vector<16x16xf32>
    %173 = arith.subf %164, %172 : vector<16x16xf32>
    %174 = math.exp %173 : vector<16x16xf32>
    %175 = arith.subf %168, %171 : vector<16x1xf32>
    %176 = math.exp %175 : vector<16x1xf32>
    %cst_52 = arith.constant dense<0.000000e+00> : vector<16xf32>
    %177 = vector.multi_reduction <add>, %174, %cst_52 [1] : vector<16x16xf32> to vector<16xf32>
    %178 = vector.shape_cast %177 : vector<16xf32> to vector<16x1xf32>
    %179 = arith.addf %178, %176 : vector<16x1xf32>
    %cst_53 = arith.constant dense<0.000000e+00> : vector<16x16xf32>
    %180 = tpu.matmul %174, %158, %cst_53 {dimension_numbers = #tpu.dot_dimension_numbers<[1], [0], [0], [1], [0, 0, 1, 1], [], []>} : vector<16x16xf32>, vector<16x16xf32>, vector<16x16xf32> -> vector<16x16xf32>
    %181 = vector.broadcast %176 : vector<16x1xf32> to vector<16x16xf32>
    %182 = vector.broadcast %160 : vector<1x16xf32> to vector<16x16xf32>
    %183 = arith.mulf %181, %182 : vector<16x16xf32>
    %184 = arith.addf %180, %183 : vector<16x16xf32>
    %185 = vector.broadcast %179 : vector<16x1xf32> to vector<16x16xf32>
    %186 = arith.divf %184, %185 : vector<16x16xf32>
    %cst_54 = arith.constant dense<0.000000e+00> : vector<16x32xf32>
    %187 = tpu.matmul %186, %161, %cst_54 {dimension_numbers = #tpu.dot_dimension_numbers<[1], [0], [0], [1], [0, 0, 1, 1], [], []>} : vector<16x16xf32>, vector<16x32xf32>, vector<16x32xf32> -> vector<16x32xf32>
    %188 = arith.addf %155, %187 : vector<16x32xf32>
    %189 = vector.extract_strided_slice %15 {offsets = [32, 16], sizes = [16, 16], strides = [1, 1]} : vector<64x96xf32> to vector<16x16xf32>
    %190 = vector.extract_strided_slice %15 {offsets = [32, 48], sizes = [16, 16], strides = [1, 1]} : vector<64x96xf32> to vector<16x16xf32>
    %191 = vector.extract_strided_slice %15 {offsets = [32, 80], sizes = [16, 16], strides = [1, 1]} : vector<64x96xf32> to vector<16x16xf32>
    %192 = vector.extract_strided_slice %16 {offsets = [1, 0], sizes = [1, 16], strides = [1, 1]} : vector<2x16xf32> to vector<1x16xf32>
    %193 = vector.extract_strided_slice %17 {offsets = [1, 0], sizes = [1, 16], strides = [1, 1]} : vector<2x16xf32> to vector<1x16xf32>
    %194 = vector.extract_strided_slice %18 {offsets = [16, 0], sizes = [16, 32], strides = [1, 1]} : vector<32x32xf32> to vector<16x32xf32>
    %cst_55 = arith.constant 2.500000e-01 : f32
    %195 = vector.broadcast %cst_55 : f32 to vector<16x16xf32>
    %196 = arith.mulf %189, %195 : vector<16x16xf32>
    %cst_56 = arith.constant dense<0.000000e+00> : vector<16x16xf32>
    %197 = tpu.matmul %196, %190, %cst_56 {dimension_numbers = #tpu.dot_dimension_numbers<[1], [1], [0], [0], [0, 0, 1, 0], [], []>} : vector<16x16xf32>, vector<16x16xf32>, vector<16x16xf32> -> vector<16x16xf32>
    %198 = vector.broadcast %192 : vector<1x16xf32> to vector<16x16xf32>
    %199 = arith.mulf %196, %198 : vector<16x16xf32>
    %cst_57 = arith.constant dense<0.000000e+00> : vector<16xf32>
    %200 = vector.multi_reduction <add>, %199, %cst_57 [1] : vector<16x16xf32> to vector<16xf32>
    %201 = vector.shape_cast %200 : vector<16xf32> to vector<16x1xf32>
    %cst_58 = arith.constant dense<0xFF800000> : vector<16xf32>
    %202 = vector.multi_reduction <maximumf>, %197, %cst_58 [1] : vector<16x16xf32> to vector<16xf32>
    %203 = vector.shape_cast %202 : vector<16xf32> to vector<16x1xf32>
    %204 = arith.maximumf %203, %201 : vector<16x1xf32>
    %205 = vector.broadcast %204 : vector<16x1xf32> to vector<16x16xf32>
    %206 = arith.subf %197, %205 : vector<16x16xf32>
    %207 = math.exp %206 : vector<16x16xf32>
    %208 = arith.subf %201, %204 : vector<16x1xf32>
    %209 = math.exp %208 : vector<16x1xf32>
    %cst_59 = arith.constant dense<0.000000e+00> : vector<16xf32>
    %210 = vector.multi_reduction <add>, %207, %cst_59 [1] : vector<16x16xf32> to vector<16xf32>
    %211 = vector.shape_cast %210 : vector<16xf32> to vector<16x1xf32>
    %212 = arith.addf %211, %209 : vector<16x1xf32>
    %cst_60 = arith.constant dense<0.000000e+00> : vector<16x16xf32>
    %213 = tpu.matmul %207, %191, %cst_60 {dimension_numbers = #tpu.dot_dimension_numbers<[1], [0], [0], [1], [0, 0, 1, 1], [], []>} : vector<16x16xf32>, vector<16x16xf32>, vector<16x16xf32> -> vector<16x16xf32>
    %214 = vector.broadcast %209 : vector<16x1xf32> to vector<16x16xf32>
    %215 = vector.broadcast %193 : vector<1x16xf32> to vector<16x16xf32>
    %216 = arith.mulf %214, %215 : vector<16x16xf32>
    %217 = arith.addf %213, %216 : vector<16x16xf32>
    %218 = vector.broadcast %212 : vector<16x1xf32> to vector<16x16xf32>
    %219 = arith.divf %217, %218 : vector<16x16xf32>
    %cst_61 = arith.constant dense<0.000000e+00> : vector<16x32xf32>
    %220 = tpu.matmul %219, %194, %cst_61 {dimension_numbers = #tpu.dot_dimension_numbers<[1], [0], [0], [1], [0, 0, 1, 1], [], []>} : vector<16x16xf32>, vector<16x32xf32>, vector<16x32xf32> -> vector<16x32xf32>
    %221 = arith.addf %188, %220 : vector<16x32xf32>
    %c32 = arith.constant 32 : index
    %c0_62 = arith.constant 0 : index
    %222 = vector.load %arg7[%c32, %c0_62] : memref<64x32xf32, #tpu.memory_space<vmem>>, vector<16x32xf32>
    tpu.vector_store %arg7[%c32, %c0_62], %221 {strides = array<i32>} : memref<64x32xf32, #tpu.memory_space<vmem>>, vector<16x32xf32>,
    %cst_63 = arith.constant 0.000000e+00 : f32
    %223 = vector.broadcast %cst_63 : f32 to vector<16x32xf32>
    %224 = vector.extract_strided_slice %15 {offsets = [48, 0], sizes = [16, 16], strides = [1, 1]} : vector<64x96xf32> to vector<16x16xf32>
    %225 = vector.extract_strided_slice %15 {offsets = [48, 32], sizes = [16, 16], strides = [1, 1]} : vector<64x96xf32> to vector<16x16xf32>
    %226 = vector.extract_strided_slice %15 {offsets = [48, 64], sizes = [16, 16], strides = [1, 1]} : vector<64x96xf32> to vector<16x16xf32>
    %227 = vector.extract_strided_slice %16 {offsets = [0, 0], sizes = [1, 16], strides = [1, 1]} : vector<2x16xf32> to vector<1x16xf32>
    %228 = vector.extract_strided_slice %17 {offsets = [0, 0], sizes = [1, 16], strides = [1, 1]} : vector<2x16xf32> to vector<1x16xf32>
    %229 = vector.extract_strided_slice %18 {offsets = [0, 0], sizes = [16, 32], strides = [1, 1]} : vector<32x32xf32> to vector<16x32xf32>
    %cst_64 = arith.constant 2.500000e-01 : f32
    %230 = vector.broadcast %cst_64 : f32 to vector<16x16xf32>
    %231 = arith.mulf %224, %230 : vector<16x16xf32>
    %cst_65 = arith.constant dense<0.000000e+00> : vector<16x16xf32>
    %232 = tpu.matmul %231, %225, %cst_65 {dimension_numbers = #tpu.dot_dimension_numbers<[1], [1], [0], [0], [0, 0, 1, 0], [], []>} : vector<16x16xf32>, vector<16x16xf32>, vector<16x16xf32> -> vector<16x16xf32>
    %233 = vector.broadcast %227 : vector<1x16xf32> to vector<16x16xf32>
    %234 = arith.mulf %231, %233 : vector<16x16xf32>
    %cst_66 = arith.constant dense<0.000000e+00> : vector<16xf32>
    %235 = vector.multi_reduction <add>, %234, %cst_66 [1] : vector<16x16xf32> to vector<16xf32>
    %236 = vector.shape_cast %235 : vector<16xf32> to vector<16x1xf32>
    %cst_67 = arith.constant dense<0xFF800000> : vector<16xf32>
    %237 = vector.multi_reduction <maximumf>, %232, %cst_67 [1] : vector<16x16xf32> to vector<16xf32>
    %238 = vector.shape_cast %237 : vector<16xf32> to vector<16x1xf32>
    %239 = arith.maximumf %238, %236 : vector<16x1xf32>
    %240 = vector.broadcast %239 : vector<16x1xf32> to vector<16x16xf32>
    %241 = arith.subf %232, %240 : vector<16x16xf32>
    %242 = math.exp %241 : vector<16x16xf32>
    %243 = arith.subf %236, %239 : vector<16x1xf32>
    %244 = math.exp %243 : vector<16x1xf32>
    %cst_68 = arith.constant dense<0.000000e+00> : vector<16xf32>
    %245 = vector.multi_reduction <add>, %242, %cst_68 [1] : vector<16x16xf32> to vector<16xf32>
    %246 = vector.shape_cast %245 : vector<16xf32> to vector<16x1xf32>
    %247 = arith.addf %246, %244 : vector<16x1xf32>
    %cst_69 = arith.constant dense<0.000000e+00> : vector<16x16xf32>
    %248 = tpu.matmul %242, %226, %cst_69 {dimension_numbers = #tpu.dot_dimension_numbers<[1], [0], [0], [1], [0, 0, 1, 1], [], []>} : vector<16x16xf32>, vector<16x16xf32>, vector<16x16xf32> -> vector<16x16xf32>
    %249 = vector.broadcast %244 : vector<16x1xf32> to vector<16x16xf32>
    %250 = vector.broadcast %228 : vector<1x16xf32> to vector<16x16xf32>
    %251 = arith.mulf %249, %250 : vector<16x16xf32>
    %252 = arith.addf %248, %251 : vector<16x16xf32>
    %253 = vector.broadcast %247 : vector<16x1xf32> to vector<16x16xf32>
    %254 = arith.divf %252, %253 : vector<16x16xf32>
    %cst_70 = arith.constant dense<0.000000e+00> : vector<16x32xf32>
    %255 = tpu.matmul %254, %229, %cst_70 {dimension_numbers = #tpu.dot_dimension_numbers<[1], [0], [0], [1], [0, 0, 1, 1], [], []>} : vector<16x16xf32>, vector<16x32xf32>, vector<16x32xf32> -> vector<16x32xf32>
    %256 = arith.addf %223, %255 : vector<16x32xf32>
    %257 = vector.extract_strided_slice %15 {offsets = [48, 16], sizes = [16, 16], strides = [1, 1]} : vector<64x96xf32> to vector<16x16xf32>
    %258 = vector.extract_strided_slice %15 {offsets = [48, 48], sizes = [16, 16], strides = [1, 1]} : vector<64x96xf32> to vector<16x16xf32>
    %259 = vector.extract_strided_slice %15 {offsets = [48, 80], sizes = [16, 16], strides = [1, 1]} : vector<64x96xf32> to vector<16x16xf32>
    %260 = vector.extract_strided_slice %16 {offsets = [1, 0], sizes = [1, 16], strides = [1, 1]} : vector<2x16xf32> to vector<1x16xf32>
    %261 = vector.extract_strided_slice %17 {offsets = [1, 0], sizes = [1, 16], strides = [1, 1]} : vector<2x16xf32> to vector<1x16xf32>
    %262 = vector.extract_strided_slice %18 {offsets = [16, 0], sizes = [16, 32], strides = [1, 1]} : vector<32x32xf32> to vector<16x32xf32>
    %cst_71 = arith.constant 2.500000e-01 : f32
    %263 = vector.broadcast %cst_71 : f32 to vector<16x16xf32>
    %264 = arith.mulf %257, %263 : vector<16x16xf32>
    %cst_72 = arith.constant dense<0.000000e+00> : vector<16x16xf32>
    %265 = tpu.matmul %264, %258, %cst_72 {dimension_numbers = #tpu.dot_dimension_numbers<[1], [1], [0], [0], [0, 0, 1, 0], [], []>} : vector<16x16xf32>, vector<16x16xf32>, vector<16x16xf32> -> vector<16x16xf32>
    %266 = vector.broadcast %260 : vector<1x16xf32> to vector<16x16xf32>
    %267 = arith.mulf %264, %266 : vector<16x16xf32>
    %cst_73 = arith.constant dense<0.000000e+00> : vector<16xf32>
    %268 = vector.multi_reduction <add>, %267, %cst_73 [1] : vector<16x16xf32> to vector<16xf32>
    %269 = vector.shape_cast %268 : vector<16xf32> to vector<16x1xf32>
    %cst_74 = arith.constant dense<0xFF800000> : vector<16xf32>
    %270 = vector.multi_reduction <maximumf>, %265, %cst_74 [1] : vector<16x16xf32> to vector<16xf32>
    %271 = vector.shape_cast %270 : vector<16xf32> to vector<16x1xf32>
    %272 = arith.maximumf %271, %269 : vector<16x1xf32>
    %273 = vector.broadcast %272 : vector<16x1xf32> to vector<16x16xf32>
    %274 = arith.subf %265, %273 : vector<16x16xf32>
    %275 = math.exp %274 : vector<16x16xf32>
    %276 = arith.subf %269, %272 : vector<16x1xf32>
    %277 = math.exp %276 : vector<16x1xf32>
    %cst_75 = arith.constant dense<0.000000e+00> : vector<16xf32>
    %278 = vector.multi_reduction <add>, %275, %cst_75 [1] : vector<16x16xf32> to vector<16xf32>
    %279 = vector.shape_cast %278 : vector<16xf32> to vector<16x1xf32>
    %280 = arith.addf %279, %277 : vector<16x1xf32>
    %cst_76 = arith.constant dense<0.000000e+00> : vector<16x16xf32>
    %281 = tpu.matmul %275, %259, %cst_76 {dimension_numbers = #tpu.dot_dimension_numbers<[1], [0], [0], [1], [0, 0, 1, 1], [], []>} : vector<16x16xf32>, vector<16x16xf32>, vector<16x16xf32> -> vector<16x16xf32>
    %282 = vector.broadcast %277 : vector<16x1xf32> to vector<16x16xf32>
    %283 = vector.broadcast %261 : vector<1x16xf32> to vector<16x16xf32>
    %284 = arith.mulf %282, %283 : vector<16x16xf32>
    %285 = arith.addf %281, %284 : vector<16x16xf32>
    %286 = vector.broadcast %280 : vector<16x1xf32> to vector<16x16xf32>
    %287 = arith.divf %285, %286 : vector<16x16xf32>
    %cst_77 = arith.constant dense<0.000000e+00> : vector<16x32xf32>
    %288 = tpu.matmul %287, %262, %cst_77 {dimension_numbers = #tpu.dot_dimension_numbers<[1], [0], [0], [1], [0, 0, 1, 1], [], []>} : vector<16x16xf32>, vector<16x32xf32>, vector<16x32xf32> -> vector<16x32xf32>
    %289 = arith.addf %256, %288 : vector<16x32xf32>
    %c48 = arith.constant 48 : index
    %c0_78 = arith.constant 0 : index
    %290 = vector.load %arg7[%c48, %c0_78] : memref<64x32xf32, #tpu.memory_space<vmem>>, vector<16x32xf32>
    tpu.vector_store %arg7[%c48, %c0_78], %289 {strides = array<i32>} : memref<64x32xf32, #tpu.memory_space<vmem>>, vector<16x32xf32>,
    return
  }
  func.func @transform_0(%arg0: i32) -> (i32, i32) {
    %c0_i32 = arith.constant 0 : i32
    %c0_i32_0 = arith.constant 0 : i32
    return %arg0, %c0_i32 : i32, i32
  }
  func.func @transform_1(%arg0: i32) -> (i32, i32) {
    %c0_i32 = arith.constant 0 : i32
    %c0_i32_0 = arith.constant 0 : i32
    %c0_i32_1 = arith.constant 0 : i32
    return %c0_i32, %c0_i32_0 : i32, i32
  }
  func.func @transform_2(%arg0: i32) -> (i32, i32) {
    %c0_i32 = arith.constant 0 : i32
    %c0_i32_0 = arith.constant 0 : i32
    %c0_i32_1 = arith.constant 0 : i32
    return %c0_i32, %c0_i32_0 : i32, i32
  }
  func.func @transform_3(%arg0: i32) -> (i32, i32) {
    %c0_i32 = arith.constant 0 : i32
    %c0_i32_0 = arith.constant 0 : i32
    %c0_i32_1 = arith.constant 0 : i32
    return %c0_i32, %c0_i32_0 : i32, i32
  }
  func.func @transform_4(%arg0: i32) -> (i32, i32) {
    %c0_i32 = arith.constant 0 : i32
    %c0_i32_0 = arith.constant 0 : i32
    %c0_i32_1 = arith.constant 0 : i32
    return %c0_i32, %c0_i32_0 : i32, i32
  }
  func.func @transform_5(%arg0: i32) -> (i32, i32) {
    %c0_i32 = arith.constant 0 : i32
    %c0_i32_0 = arith.constant 0 : i32
    %c0_i32_1 = arith.constant 0 : i32
    return %c0_i32, %c0_i32_0 : i32, i32
  }
  func.func @transform_6(%arg0: i32) -> (i32, i32) {
    %c0_i32 = arith.constant 0 : i32
    %c0_i32_0 = arith.constant 0 : i32
    return %arg0, %c0_i32 : i32, i32
  }
}

module attributes {stable_mosaic.version = 11 : i64} {
  func.func @_fused_cross_attn_kernel(%arg0: i32, %arg1: memref<16x32xf32, #tpu.memory_space<vmem>>, %arg2: memref<16x32xf32, #tpu.memory_space<vmem>>, %arg3: memref<1x32xf32, #tpu.memory_space<vmem>>, %arg4: memref<32x64xf32, #tpu.memory_space<vmem>>, %arg5: memref<32x128xf32, #tpu.memory_space<vmem>>, %arg6: memref<4x16xf32, #tpu.memory_space<vmem>>, %arg7: memref<4x16xf32, #tpu.memory_space<vmem>>, %arg8: memref<64x32xf32, #tpu.memory_space<vmem>>, %arg9: memref<16x32xf32, #tpu.memory_space<vmem>>) attributes {dimension_semantics = [#tpu.dimension_semantics<parallel>], iteration_bounds = array<i64: 2>, scalar_prefetch = 0 : i64, scratch_operands = 0 : i64, tpu.core_type = #tpu.core_type<tc>, window_params = [{transform_indices = @transform_0, window_bounds = array<i64: 16, 32>}, {transform_indices = @transform_1, window_bounds = array<i64: 16, 32>}, {pipeline_mode = #tpu.pipeline_mode<synchronous>, transform_indices = @transform_2, window_bounds = array<i64: 1, 32>}, {pipeline_mode = #tpu.pipeline_mode<synchronous>, transform_indices = @transform_3, window_bounds = array<i64: 32, 64>}, {pipeline_mode = #tpu.pipeline_mode<synchronous>, transform_indices = @transform_4, window_bounds = array<i64: 32, 128>}, {pipeline_mode = #tpu.pipeline_mode<synchronous>, transform_indices = @transform_5, window_bounds = array<i64: 4, 16>}, {pipeline_mode = #tpu.pipeline_mode<synchronous>, transform_indices = @transform_6, window_bounds = array<i64: 4, 16>}, {pipeline_mode = #tpu.pipeline_mode<synchronous>, transform_indices = @transform_7, window_bounds = array<i64: 64, 32>}, {transform_indices = @transform_8, window_bounds = array<i64: 16, 32>}]} {
    %c0 = arith.constant 0 : index
    %c0_0 = arith.constant 0 : index
    %0 = vector.load %arg3[%c0, %c0_0] : memref<1x32xf32, #tpu.memory_space<vmem>>, vector<1x32xf32>
    %c0_1 = arith.constant 0 : index
    %c0_2 = arith.constant 0 : index
    %1 = vector.load %arg1[%c0_1, %c0_2] : memref<16x32xf32, #tpu.memory_space<vmem>>, vector<16x32xf32>
    %2 = arith.mulf %1, %1 : vector<16x32xf32>
    %cst = arith.constant dense<0.000000e+00> : vector<16xf32>
    %3 = vector.multi_reduction <add>, %2, %cst [1] : vector<16x32xf32> to vector<16xf32>
    %4 = vector.shape_cast %3 : vector<16xf32> to vector<16x1xf32>
    %5 = math.sqrt %4 : vector<16x1xf32>
    %cst_3 = arith.constant 9.99999996E-13 : f32
    %6 = vector.broadcast %cst_3 : f32 to vector<16x1xf32>
    %7 = arith.maximumf %5, %6 : vector<16x1xf32>
    %8 = vector.broadcast %7 : vector<16x1xf32> to vector<16x32xf32>
    %9 = arith.divf %1, %8 : vector<16x32xf32>
    %cst_4 = arith.constant 5.65685415 : f32
    %10 = vector.broadcast %cst_4 : f32 to vector<16x32xf32>
    %11 = arith.mulf %9, %10 : vector<16x32xf32>
    %12 = vector.broadcast %0 : vector<1x32xf32> to vector<16x32xf32>
    %13 = arith.mulf %11, %12 : vector<16x32xf32>
    %c0_5 = arith.constant 0 : index
    %c0_6 = arith.constant 0 : index
    %14 = vector.load %arg2[%c0_5, %c0_6] : memref<16x32xf32, #tpu.memory_space<vmem>>, vector<16x32xf32>
    %15 = arith.mulf %14, %14 : vector<16x32xf32>
    %cst_7 = arith.constant dense<0.000000e+00> : vector<16xf32>
    %16 = vector.multi_reduction <add>, %15, %cst_7 [1] : vector<16x32xf32> to vector<16xf32>
    %17 = vector.shape_cast %16 : vector<16xf32> to vector<16x1xf32>
    %18 = math.sqrt %17 : vector<16x1xf32>
    %cst_8 = arith.constant 9.99999996E-13 : f32
    %19 = vector.broadcast %cst_8 : f32 to vector<16x1xf32>
    %20 = arith.maximumf %18, %19 : vector<16x1xf32>
    %21 = vector.broadcast %20 : vector<16x1xf32> to vector<16x32xf32>
    %22 = arith.divf %14, %21 : vector<16x32xf32>
    %cst_9 = arith.constant 5.65685415 : f32
    %23 = vector.broadcast %cst_9 : f32 to vector<16x32xf32>
    %24 = arith.mulf %22, %23 : vector<16x32xf32>
    %25 = vector.broadcast %0 : vector<1x32xf32> to vector<16x32xf32>
    %26 = arith.mulf %24, %25 : vector<16x32xf32>
    %c0_10 = arith.constant 0 : index
    %c0_11 = arith.constant 0 : index
    %27 = vector.load %arg4[%c0_10, %c0_11] : memref<32x64xf32, #tpu.memory_space<vmem>>, vector<32x64xf32>
    %cst_12 = arith.constant dense<0.000000e+00> : vector<16x64xf32>
    %28 = tpu.matmul %13, %27, %cst_12 {dimension_numbers = #tpu.dot_dimension_numbers<[1], [0], [0], [1], [0, 0, 1, 1], [], []>} : vector<16x32xf32>, vector<32x64xf32>, vector<16x64xf32> -> vector<16x64xf32>
    %c0_13 = arith.constant 0 : index
    %c0_14 = arith.constant 0 : index
    %29 = vector.load %arg5[%c0_13, %c0_14] : memref<32x128xf32, #tpu.memory_space<vmem>>, vector<32x128xf32>
    %cst_15 = arith.constant dense<0.000000e+00> : vector<16x128xf32>
    %30 = tpu.matmul %26, %29, %cst_15 {dimension_numbers = #tpu.dot_dimension_numbers<[1], [0], [0], [1], [0, 0, 1, 1], [], []>} : vector<16x32xf32>, vector<32x128xf32>, vector<16x128xf32> -> vector<16x128xf32>
    %c0_16 = arith.constant 0 : index
    %c0_17 = arith.constant 0 : index
    %31 = vector.load %arg6[%c0_16, %c0_17] : memref<4x16xf32, #tpu.memory_space<vmem>>, vector<4x16xf32>
    %c0_18 = arith.constant 0 : index
    %c0_19 = arith.constant 0 : index
    %32 = vector.load %arg7[%c0_18, %c0_19] : memref<4x16xf32, #tpu.memory_space<vmem>>, vector<4x16xf32>
    %c0_20 = arith.constant 0 : index
    %c0_21 = arith.constant 0 : index
    %33 = vector.load %arg8[%c0_20, %c0_21] : memref<64x32xf32, #tpu.memory_space<vmem>>, vector<64x32xf32>
    %cst_22 = arith.constant 0.000000e+00 : f32
    %34 = vector.broadcast %cst_22 : f32 to vector<16x32xf32>
    %35 = vector.extract_strided_slice %28 {offsets = [0, 0], sizes = [16, 16], strides = [1, 1]} : vector<16x64xf32> to vector<16x16xf32>
    %36 = vector.extract_strided_slice %30 {offsets = [0, 0], sizes = [16, 16], strides = [1, 1]} : vector<16x128xf32> to vector<16x16xf32>
    %37 = vector.extract_strided_slice %30 {offsets = [0, 64], sizes = [16, 16], strides = [1, 1]} : vector<16x128xf32> to vector<16x16xf32>
    %38 = vector.extract_strided_slice %31 {offsets = [0, 0], sizes = [1, 16], strides = [1, 1]} : vector<4x16xf32> to vector<1x16xf32>
    %39 = vector.extract_strided_slice %32 {offsets = [0, 0], sizes = [1, 16], strides = [1, 1]} : vector<4x16xf32> to vector<1x16xf32>
    %40 = vector.extract_strided_slice %33 {offsets = [0, 0], sizes = [16, 32], strides = [1, 1]} : vector<64x32xf32> to vector<16x32xf32>
    %cst_23 = arith.constant 2.500000e-01 : f32
    %41 = vector.broadcast %cst_23 : f32 to vector<16x16xf32>
    %42 = arith.mulf %35, %41 : vector<16x16xf32>
    %cst_24 = arith.constant dense<0.000000e+00> : vector<16x16xf32>
    %43 = tpu.matmul %42, %36, %cst_24 {dimension_numbers = #tpu.dot_dimension_numbers<[1], [1], [0], [0], [0, 0, 1, 0], [], []>} : vector<16x16xf32>, vector<16x16xf32>, vector<16x16xf32> -> vector<16x16xf32>
    %44 = vector.broadcast %38 : vector<1x16xf32> to vector<16x16xf32>
    %45 = arith.mulf %42, %44 : vector<16x16xf32>
    %cst_25 = arith.constant dense<0.000000e+00> : vector<16xf32>
    %46 = vector.multi_reduction <add>, %45, %cst_25 [1] : vector<16x16xf32> to vector<16xf32>
    %47 = vector.shape_cast %46 : vector<16xf32> to vector<16x1xf32>
    %cst_26 = arith.constant dense<0xFF800000> : vector<16xf32>
    %48 = vector.multi_reduction <maximumf>, %43, %cst_26 [1] : vector<16x16xf32> to vector<16xf32>
    %49 = vector.shape_cast %48 : vector<16xf32> to vector<16x1xf32>
    %50 = arith.maximumf %49, %47 : vector<16x1xf32>
    %51 = vector.broadcast %50 : vector<16x1xf32> to vector<16x16xf32>
    %52 = arith.subf %43, %51 : vector<16x16xf32>
    %53 = math.exp %52 : vector<16x16xf32>
    %54 = arith.subf %47, %50 : vector<16x1xf32>
    %55 = math.exp %54 : vector<16x1xf32>
    %cst_27 = arith.constant dense<0.000000e+00> : vector<16xf32>
    %56 = vector.multi_reduction <add>, %53, %cst_27 [1] : vector<16x16xf32> to vector<16xf32>
    %57 = vector.shape_cast %56 : vector<16xf32> to vector<16x1xf32>
    %58 = arith.addf %57, %55 : vector<16x1xf32>
    %cst_28 = arith.constant dense<0.000000e+00> : vector<16x16xf32>
    %59 = tpu.matmul %53, %37, %cst_28 {dimension_numbers = #tpu.dot_dimension_numbers<[1], [0], [0], [1], [0, 0, 1, 1], [], []>} : vector<16x16xf32>, vector<16x16xf32>, vector<16x16xf32> -> vector<16x16xf32>
    %60 = vector.broadcast %55 : vector<16x1xf32> to vector<16x16xf32>
    %61 = vector.broadcast %39 : vector<1x16xf32> to vector<16x16xf32>
    %62 = arith.mulf %60, %61 : vector<16x16xf32>
    %63 = arith.addf %59, %62 : vector<16x16xf32>
    %64 = vector.broadcast %58 : vector<16x1xf32> to vector<16x16xf32>
    %65 = arith.divf %63, %64 : vector<16x16xf32>
    %cst_29 = arith.constant dense<0.000000e+00> : vector<16x32xf32>
    %66 = tpu.matmul %65, %40, %cst_29 {dimension_numbers = #tpu.dot_dimension_numbers<[1], [0], [0], [1], [0, 0, 1, 1], [], []>} : vector<16x16xf32>, vector<16x32xf32>, vector<16x32xf32> -> vector<16x32xf32>
    %67 = arith.addf %34, %66 : vector<16x32xf32>
    %68 = vector.extract_strided_slice %28 {offsets = [0, 16], sizes = [16, 16], strides = [1, 1]} : vector<16x64xf32> to vector<16x16xf32>
    %69 = vector.extract_strided_slice %30 {offsets = [0, 16], sizes = [16, 16], strides = [1, 1]} : vector<16x128xf32> to vector<16x16xf32>
    %70 = vector.extract_strided_slice %30 {offsets = [0, 80], sizes = [16, 16], strides = [1, 1]} : vector<16x128xf32> to vector<16x16xf32>
    %71 = vector.extract_strided_slice %31 {offsets = [1, 0], sizes = [1, 16], strides = [1, 1]} : vector<4x16xf32> to vector<1x16xf32>
    %72 = vector.extract_strided_slice %32 {offsets = [1, 0], sizes = [1, 16], strides = [1, 1]} : vector<4x16xf32> to vector<1x16xf32>
    %73 = vector.extract_strided_slice %33 {offsets = [16, 0], sizes = [16, 32], strides = [1, 1]} : vector<64x32xf32> to vector<16x32xf32>
    %cst_30 = arith.constant 2.500000e-01 : f32
    %74 = vector.broadcast %cst_30 : f32 to vector<16x16xf32>
    %75 = arith.mulf %68, %74 : vector<16x16xf32>
    %cst_31 = arith.constant dense<0.000000e+00> : vector<16x16xf32>
    %76 = tpu.matmul %75, %69, %cst_31 {dimension_numbers = #tpu.dot_dimension_numbers<[1], [1], [0], [0], [0, 0, 1, 0], [], []>} : vector<16x16xf32>, vector<16x16xf32>, vector<16x16xf32> -> vector<16x16xf32>
    %77 = vector.broadcast %71 : vector<1x16xf32> to vector<16x16xf32>
    %78 = arith.mulf %75, %77 : vector<16x16xf32>
    %cst_32 = arith.constant dense<0.000000e+00> : vector<16xf32>
    %79 = vector.multi_reduction <add>, %78, %cst_32 [1] : vector<16x16xf32> to vector<16xf32>
    %80 = vector.shape_cast %79 : vector<16xf32> to vector<16x1xf32>
    %cst_33 = arith.constant dense<0xFF800000> : vector<16xf32>
    %81 = vector.multi_reduction <maximumf>, %76, %cst_33 [1] : vector<16x16xf32> to vector<16xf32>
    %82 = vector.shape_cast %81 : vector<16xf32> to vector<16x1xf32>
    %83 = arith.maximumf %82, %80 : vector<16x1xf32>
    %84 = vector.broadcast %83 : vector<16x1xf32> to vector<16x16xf32>
    %85 = arith.subf %76, %84 : vector<16x16xf32>
    %86 = math.exp %85 : vector<16x16xf32>
    %87 = arith.subf %80, %83 : vector<16x1xf32>
    %88 = math.exp %87 : vector<16x1xf32>
    %cst_34 = arith.constant dense<0.000000e+00> : vector<16xf32>
    %89 = vector.multi_reduction <add>, %86, %cst_34 [1] : vector<16x16xf32> to vector<16xf32>
    %90 = vector.shape_cast %89 : vector<16xf32> to vector<16x1xf32>
    %91 = arith.addf %90, %88 : vector<16x1xf32>
    %cst_35 = arith.constant dense<0.000000e+00> : vector<16x16xf32>
    %92 = tpu.matmul %86, %70, %cst_35 {dimension_numbers = #tpu.dot_dimension_numbers<[1], [0], [0], [1], [0, 0, 1, 1], [], []>} : vector<16x16xf32>, vector<16x16xf32>, vector<16x16xf32> -> vector<16x16xf32>
    %93 = vector.broadcast %88 : vector<16x1xf32> to vector<16x16xf32>
    %94 = vector.broadcast %72 : vector<1x16xf32> to vector<16x16xf32>
    %95 = arith.mulf %93, %94 : vector<16x16xf32>
    %96 = arith.addf %92, %95 : vector<16x16xf32>
    %97 = vector.broadcast %91 : vector<16x1xf32> to vector<16x16xf32>
    %98 = arith.divf %96, %97 : vector<16x16xf32>
    %cst_36 = arith.constant dense<0.000000e+00> : vector<16x32xf32>
    %99 = tpu.matmul %98, %73, %cst_36 {dimension_numbers = #tpu.dot_dimension_numbers<[1], [0], [0], [1], [0, 0, 1, 1], [], []>} : vector<16x16xf32>, vector<16x32xf32>, vector<16x32xf32> -> vector<16x32xf32>
    %100 = arith.addf %67, %99 : vector<16x32xf32>
    %101 = vector.extract_strided_slice %28 {offsets = [0, 32], sizes = [16, 16], strides = [1, 1]} : vector<16x64xf32> to vector<16x16xf32>
    %102 = vector.extract_strided_slice %30 {offsets = [0, 32], sizes = [16, 16], strides = [1, 1]} : vector<16x128xf32> to vector<16x16xf32>
    %103 = vector.extract_strided_slice %30 {offsets = [0, 96], sizes = [16, 16], strides = [1, 1]} : vector<16x128xf32> to vector<16x16xf32>
    %104 = vector.extract_strided_slice %31 {offsets = [2, 0], sizes = [1, 16], strides = [1, 1]} : vector<4x16xf32> to vector<1x16xf32>
    %105 = vector.extract_strided_slice %32 {offsets = [2, 0], sizes = [1, 16], strides = [1, 1]} : vector<4x16xf32> to vector<1x16xf32>
    %106 = vector.extract_strided_slice %33 {offsets = [32, 0], sizes = [16, 32], strides = [1, 1]} : vector<64x32xf32> to vector<16x32xf32>
    %cst_37 = arith.constant 2.500000e-01 : f32
    %107 = vector.broadcast %cst_37 : f32 to vector<16x16xf32>
    %108 = arith.mulf %101, %107 : vector<16x16xf32>
    %cst_38 = arith.constant dense<0.000000e+00> : vector<16x16xf32>
    %109 = tpu.matmul %108, %102, %cst_38 {dimension_numbers = #tpu.dot_dimension_numbers<[1], [1], [0], [0], [0, 0, 1, 0], [], []>} : vector<16x16xf32>, vector<16x16xf32>, vector<16x16xf32> -> vector<16x16xf32>
    %110 = vector.broadcast %104 : vector<1x16xf32> to vector<16x16xf32>
    %111 = arith.mulf %108, %110 : vector<16x16xf32>
    %cst_39 = arith.constant dense<0.000000e+00> : vector<16xf32>
    %112 = vector.multi_reduction <add>, %111, %cst_39 [1] : vector<16x16xf32> to vector<16xf32>
    %113 = vector.shape_cast %112 : vector<16xf32> to vector<16x1xf32>
    %cst_40 = arith.constant dense<0xFF800000> : vector<16xf32>
    %114 = vector.multi_reduction <maximumf>, %109, %cst_40 [1] : vector<16x16xf32> to vector<16xf32>
    %115 = vector.shape_cast %114 : vector<16xf32> to vector<16x1xf32>
    %116 = arith.maximumf %115, %113 : vector<16x1xf32>
    %117 = vector.broadcast %116 : vector<16x1xf32> to vector<16x16xf32>
    %118 = arith.subf %109, %117 : vector<16x16xf32>
    %119 = math.exp %118 : vector<16x16xf32>
    %120 = arith.subf %113, %116 : vector<16x1xf32>
    %121 = math.exp %120 : vector<16x1xf32>
    %cst_41 = arith.constant dense<0.000000e+00> : vector<16xf32>
    %122 = vector.multi_reduction <add>, %119, %cst_41 [1] : vector<16x16xf32> to vector<16xf32>
    %123 = vector.shape_cast %122 : vector<16xf32> to vector<16x1xf32>
    %124 = arith.addf %123, %121 : vector<16x1xf32>
    %cst_42 = arith.constant dense<0.000000e+00> : vector<16x16xf32>
    %125 = tpu.matmul %119, %103, %cst_42 {dimension_numbers = #tpu.dot_dimension_numbers<[1], [0], [0], [1], [0, 0, 1, 1], [], []>} : vector<16x16xf32>, vector<16x16xf32>, vector<16x16xf32> -> vector<16x16xf32>
    %126 = vector.broadcast %121 : vector<16x1xf32> to vector<16x16xf32>
    %127 = vector.broadcast %105 : vector<1x16xf32> to vector<16x16xf32>
    %128 = arith.mulf %126, %127 : vector<16x16xf32>
    %129 = arith.addf %125, %128 : vector<16x16xf32>
    %130 = vector.broadcast %124 : vector<16x1xf32> to vector<16x16xf32>
    %131 = arith.divf %129, %130 : vector<16x16xf32>
    %cst_43 = arith.constant dense<0.000000e+00> : vector<16x32xf32>
    %132 = tpu.matmul %131, %106, %cst_43 {dimension_numbers = #tpu.dot_dimension_numbers<[1], [0], [0], [1], [0, 0, 1, 1], [], []>} : vector<16x16xf32>, vector<16x32xf32>, vector<16x32xf32> -> vector<16x32xf32>
    %133 = arith.addf %100, %132 : vector<16x32xf32>
    %134 = vector.extract_strided_slice %28 {offsets = [0, 48], sizes = [16, 16], strides = [1, 1]} : vector<16x64xf32> to vector<16x16xf32>
    %135 = vector.extract_strided_slice %30 {offsets = [0, 48], sizes = [16, 16], strides = [1, 1]} : vector<16x128xf32> to vector<16x16xf32>
    %136 = vector.extract_strided_slice %30 {offsets = [0, 112], sizes = [16, 16], strides = [1, 1]} : vector<16x128xf32> to vector<16x16xf32>
    %137 = vector.extract_strided_slice %31 {offsets = [3, 0], sizes = [1, 16], strides = [1, 1]} : vector<4x16xf32> to vector<1x16xf32>
    %138 = vector.extract_strided_slice %32 {offsets = [3, 0], sizes = [1, 16], strides = [1, 1]} : vector<4x16xf32> to vector<1x16xf32>
    %139 = vector.extract_strided_slice %33 {offsets = [48, 0], sizes = [16, 32], strides = [1, 1]} : vector<64x32xf32> to vector<16x32xf32>
    %cst_44 = arith.constant 2.500000e-01 : f32
    %140 = vector.broadcast %cst_44 : f32 to vector<16x16xf32>
    %141 = arith.mulf %134, %140 : vector<16x16xf32>
    %cst_45 = arith.constant dense<0.000000e+00> : vector<16x16xf32>
    %142 = tpu.matmul %141, %135, %cst_45 {dimension_numbers = #tpu.dot_dimension_numbers<[1], [1], [0], [0], [0, 0, 1, 0], [], []>} : vector<16x16xf32>, vector<16x16xf32>, vector<16x16xf32> -> vector<16x16xf32>
    %143 = vector.broadcast %137 : vector<1x16xf32> to vector<16x16xf32>
    %144 = arith.mulf %141, %143 : vector<16x16xf32>
    %cst_46 = arith.constant dense<0.000000e+00> : vector<16xf32>
    %145 = vector.multi_reduction <add>, %144, %cst_46 [1] : vector<16x16xf32> to vector<16xf32>
    %146 = vector.shape_cast %145 : vector<16xf32> to vector<16x1xf32>
    %cst_47 = arith.constant dense<0xFF800000> : vector<16xf32>
    %147 = vector.multi_reduction <maximumf>, %142, %cst_47 [1] : vector<16x16xf32> to vector<16xf32>
    %148 = vector.shape_cast %147 : vector<16xf32> to vector<16x1xf32>
    %149 = arith.maximumf %148, %146 : vector<16x1xf32>
    %150 = vector.broadcast %149 : vector<16x1xf32> to vector<16x16xf32>
    %151 = arith.subf %142, %150 : vector<16x16xf32>
    %152 = math.exp %151 : vector<16x16xf32>
    %153 = arith.subf %146, %149 : vector<16x1xf32>
    %154 = math.exp %153 : vector<16x1xf32>
    %cst_48 = arith.constant dense<0.000000e+00> : vector<16xf32>
    %155 = vector.multi_reduction <add>, %152, %cst_48 [1] : vector<16x16xf32> to vector<16xf32>
    %156 = vector.shape_cast %155 : vector<16xf32> to vector<16x1xf32>
    %157 = arith.addf %156, %154 : vector<16x1xf32>
    %cst_49 = arith.constant dense<0.000000e+00> : vector<16x16xf32>
    %158 = tpu.matmul %152, %136, %cst_49 {dimension_numbers = #tpu.dot_dimension_numbers<[1], [0], [0], [1], [0, 0, 1, 1], [], []>} : vector<16x16xf32>, vector<16x16xf32>, vector<16x16xf32> -> vector<16x16xf32>
    %159 = vector.broadcast %154 : vector<16x1xf32> to vector<16x16xf32>
    %160 = vector.broadcast %138 : vector<1x16xf32> to vector<16x16xf32>
    %161 = arith.mulf %159, %160 : vector<16x16xf32>
    %162 = arith.addf %158, %161 : vector<16x16xf32>
    %163 = vector.broadcast %157 : vector<16x1xf32> to vector<16x16xf32>
    %164 = arith.divf %162, %163 : vector<16x16xf32>
    %cst_50 = arith.constant dense<0.000000e+00> : vector<16x32xf32>
    %165 = tpu.matmul %164, %139, %cst_50 {dimension_numbers = #tpu.dot_dimension_numbers<[1], [0], [0], [1], [0, 0, 1, 1], [], []>} : vector<16x16xf32>, vector<16x32xf32>, vector<16x32xf32> -> vector<16x32xf32>
    %166 = arith.addf %133, %165 : vector<16x32xf32>
    %c0_51 = arith.constant 0 : index
    %c0_52 = arith.constant 0 : index
    %167 = vector.load %arg9[%c0_51, %c0_52] : memref<16x32xf32, #tpu.memory_space<vmem>>, vector<16x32xf32>
    tpu.vector_store %arg9[%c0_51, %c0_52], %166 {strides = array<i32>} : memref<16x32xf32, #tpu.memory_space<vmem>>, vector<16x32xf32>,
    return
  }
  func.func @transform_0(%arg0: i32) -> (i32, i32) {
    %c0_i32 = arith.constant 0 : i32
    %c0_i32_0 = arith.constant 0 : i32
    return %arg0, %c0_i32 : i32, i32
  }
  func.func @transform_1(%arg0: i32) -> (i32, i32) {
    %c0_i32 = arith.constant 0 : i32
    %c0_i32_0 = arith.constant 0 : i32
    return %arg0, %c0_i32 : i32, i32
  }
  func.func @transform_2(%arg0: i32) -> (i32, i32) {
    %c0_i32 = arith.constant 0 : i32
    %c0_i32_0 = arith.constant 0 : i32
    %c0_i32_1 = arith.constant 0 : i32
    return %c0_i32, %c0_i32_0 : i32, i32
  }
  func.func @transform_3(%arg0: i32) -> (i32, i32) {
    %c0_i32 = arith.constant 0 : i32
    %c0_i32_0 = arith.constant 0 : i32
    %c0_i32_1 = arith.constant 0 : i32
    return %c0_i32, %c0_i32_0 : i32, i32
  }
  func.func @transform_4(%arg0: i32) -> (i32, i32) {
    %c0_i32 = arith.constant 0 : i32
    %c0_i32_0 = arith.constant 0 : i32
    %c0_i32_1 = arith.constant 0 : i32
    return %c0_i32, %c0_i32_0 : i32, i32
  }
  func.func @transform_5(%arg0: i32) -> (i32, i32) {
    %c0_i32 = arith.constant 0 : i32
    %c0_i32_0 = arith.constant 0 : i32
    %c0_i32_1 = arith.constant 0 : i32
    return %c0_i32, %c0_i32_0 : i32, i32
  }
  func.func @transform_6(%arg0: i32) -> (i32, i32) {
    %c0_i32 = arith.constant 0 : i32
    %c0_i32_0 = arith.constant 0 : i32
    %c0_i32_1 = arith.constant 0 : i32
    return %c0_i32, %c0_i32_0 : i32, i32
  }
  func.func @transform_7(%arg0: i32) -> (i32, i32) {
    %c0_i32 = arith.constant 0 : i32
    %c0_i32_0 = arith.constant 0 : i32
    %c0_i32_1 = arith.constant 0 : i32
    return %c0_i32, %c0_i32_0 : i32, i32
  }
  func.func @transform_8(%arg0: i32) -> (i32, i32) {
    %c0_i32 = arith.constant 0 : i32
    %c0_i32_0 = arith.constant 0 : i32
    return %arg0, %c0_i32 : i32, i32
  }
}

module attributes {stable_mosaic.version = 11 : i64} {
  func.func @_ff_kernel(%arg0: i32, %arg1: memref<128x32xf32, #tpu.memory_space<vmem>>, %arg2: memref<1x32xf32, #tpu.memory_space<vmem>>, %arg3: memref<1x32xf32, #tpu.memory_space<vmem>>, %arg4: memref<32x16xf32, #tpu.memory_space<vmem>>, %arg5: memref<1x16xf32, #tpu.memory_space<vmem>>, %arg6: memref<16x32xf32, #tpu.memory_space<vmem>>, %arg7: memref<1x32xf32, #tpu.memory_space<vmem>>, %arg8: memref<128x32xf32, #tpu.memory_space<vmem>>) attributes {dimension_semantics = [#tpu.dimension_semantics<parallel>], iteration_bounds = array<i64: 1>, scalar_prefetch = 0 : i64, scratch_operands = 0 : i64, tpu.core_type = #tpu.core_type<tc>, window_params = [{transform_indices = @transform_0, window_bounds = array<i64: 128, 32>}, {pipeline_mode = #tpu.pipeline_mode<synchronous>, transform_indices = @transform_1, window_bounds = array<i64: 1, 32>}, {pipeline_mode = #tpu.pipeline_mode<synchronous>, transform_indices = @transform_2, window_bounds = array<i64: 1, 32>}, {pipeline_mode = #tpu.pipeline_mode<synchronous>, transform_indices = @transform_3, window_bounds = array<i64: 32, 16>}, {pipeline_mode = #tpu.pipeline_mode<synchronous>, transform_indices = @transform_4, window_bounds = array<i64: 1, 16>}, {pipeline_mode = #tpu.pipeline_mode<synchronous>, transform_indices = @transform_5, window_bounds = array<i64: 16, 32>}, {pipeline_mode = #tpu.pipeline_mode<synchronous>, transform_indices = @transform_6, window_bounds = array<i64: 1, 32>}, {transform_indices = @transform_7, window_bounds = array<i64: 128, 32>}]} {
    %c0 = arith.constant 0 : index
    %c0_0 = arith.constant 0 : index
    %0 = vector.load %arg1[%c0, %c0_0] : memref<128x32xf32, #tpu.memory_space<vmem>>, vector<128x32xf32>
    %cst = arith.constant dense<0.000000e+00> : vector<128xf32>
    %1 = vector.multi_reduction <add>, %0, %cst [1] : vector<128x32xf32> to vector<128xf32>
    %2 = vector.shape_cast %1 : vector<128xf32> to vector<128x1xf32>
    %cst_1 = arith.constant 3.200000e+01 : f32
    %3 = vector.broadcast %cst_1 : f32 to vector<128x1xf32>
    %4 = arith.divf %2, %3 : vector<128x1xf32>
    %5 = vector.broadcast %4 : vector<128x1xf32> to vector<128x32xf32>
    %6 = arith.subf %0, %5 : vector<128x32xf32>
    %7 = arith.mulf %6, %6 : vector<128x32xf32>
    %cst_2 = arith.constant dense<0.000000e+00> : vector<128xf32>
    %8 = vector.multi_reduction <add>, %7, %cst_2 [1] : vector<128x32xf32> to vector<128xf32>
    %9 = vector.shape_cast %8 : vector<128xf32> to vector<128x1xf32>
    %cst_3 = arith.constant 3.200000e+01 : f32
    %10 = vector.broadcast %cst_3 : f32 to vector<128x1xf32>
    %11 = arith.divf %9, %10 : vector<128x1xf32>
    %12 = vector.broadcast %4 : vector<128x1xf32> to vector<128x32xf32>
    %13 = arith.subf %0, %12 : vector<128x32xf32>
    %cst_4 = arith.constant 9.99999974E-6 : f32
    %14 = vector.broadcast %cst_4 : f32 to vector<128x1xf32>
    %15 = arith.addf %11, %14 : vector<128x1xf32>
    %16 = math.rsqrt %15 : vector<128x1xf32>
    %17 = vector.broadcast %16 : vector<128x1xf32> to vector<128x32xf32>
    %18 = arith.mulf %13, %17 : vector<128x32xf32>
    %c0_5 = arith.constant 0 : index
    %c0_6 = arith.constant 0 : index
    %19 = vector.load %arg2[%c0_5, %c0_6] : memref<1x32xf32, #tpu.memory_space<vmem>>, vector<1x32xf32>
    %20 = vector.broadcast %19 : vector<1x32xf32> to vector<128x32xf32>
    %21 = arith.mulf %18, %20 : vector<128x32xf32>
    %c0_7 = arith.constant 0 : index
    %c0_8 = arith.constant 0 : index
    %22 = vector.load %arg3[%c0_7, %c0_8] : memref<1x32xf32, #tpu.memory_space<vmem>>, vector<1x32xf32>
    %23 = vector.broadcast %22 : vector<1x32xf32> to vector<128x32xf32>
    %24 = arith.addf %21, %23 : vector<128x32xf32>
    %c0_9 = arith.constant 0 : index
    %c0_10 = arith.constant 0 : index
    %25 = vector.load %arg4[%c0_9, %c0_10] : memref<32x16xf32, #tpu.memory_space<vmem>>, vector<32x16xf32>
    %cst_11 = arith.constant dense<0.000000e+00> : vector<128x16xf32>
    %26 = tpu.matmul %24, %25, %cst_11 {dimension_numbers = #tpu.dot_dimension_numbers<[1], [0], [0], [1], [0, 0, 1, 1], [], []>} : vector<128x32xf32>, vector<32x16xf32>, vector<128x16xf32> -> vector<128x16xf32>
    %c0_12 = arith.constant 0 : index
    %c0_13 = arith.constant 0 : index
    %27 = vector.load %arg5[%c0_12, %c0_13] : memref<1x16xf32, #tpu.memory_space<vmem>>, vector<1x16xf32>
    %28 = vector.broadcast %27 : vector<1x16xf32> to vector<128x16xf32>
    %29 = arith.addf %26, %28 : vector<128x16xf32>
    %cst_14 = arith.constant 5.000000e-01 : f32
    %30 = vector.broadcast %cst_14 : f32 to vector<128x16xf32>
    %31 = arith.mulf %30, %29 : vector<128x16xf32>
    %cst_15 = arith.constant 0.707106769 : f32
    %32 = vector.broadcast %cst_15 : f32 to vector<128x16xf32>
    %33 = arith.mulf %29, %32 : vector<128x16xf32>
    %cst_16 = arith.constant 0.000000e+00 : f32
    %34 = vector.broadcast %cst_16 : f32 to vector<128x16xf32>
    %35 = arith.cmpf olt, %33, %34 : vector<128x16xf32>
    %cst_17 = arith.constant -1.000000e+00 : f32
    %cst_18 = arith.constant 1.000000e+00 : f32
    %36 = vector.broadcast %cst_17 : f32 to vector<128x16xf32>
    %37 = vector.broadcast %cst_18 : f32 to vector<128x16xf32>
    %38 = arith.select %35, %36, %37 : vector<128x16xi1>, vector<128x16xf32>
    %39 = math.absf %33 : vector<128x16xf32>
    %cst_19 = arith.constant 0.327591091 : f32
    %40 = vector.broadcast %cst_19 : f32 to vector<128x16xf32>
    %41 = arith.mulf %40, %39 : vector<128x16xf32>
    %cst_20 = arith.constant 1.000000e+00 : f32
    %42 = vector.broadcast %cst_20 : f32 to vector<128x16xf32>
    %43 = arith.addf %42, %41 : vector<128x16xf32>
    %cst_21 = arith.constant 1.000000e+00 : f32
    %44 = vector.broadcast %cst_21 : f32 to vector<128x16xf32>
    %45 = arith.divf %44, %43 : vector<128x16xf32>
    %cst_22 = arith.constant 1.06140542 : f32
    %46 = vector.broadcast %cst_22 : f32 to vector<128x16xf32>
    %47 = arith.mulf %46, %45 : vector<128x16xf32>
    %cst_23 = arith.constant -1.45315206 : f32
    %48 = vector.broadcast %cst_23 : f32 to vector<128x16xf32>
    %49 = arith.addf %47, %48 : vector<128x16xf32>
    %50 = arith.mulf %49, %45 : vector<128x16xf32>
    %cst_24 = arith.constant 1.42141378 : f32
    %51 = vector.broadcast %cst_24 : f32 to vector<128x16xf32>
    %52 = arith.addf %50, %51 : vector<128x16xf32>
    %53 = arith.mulf %52, %45 : vector<128x16xf32>
    %cst_25 = arith.constant -0.284496725 : f32
    %54 = vector.broadcast %cst_25 : f32 to vector<128x16xf32>
    %55 = arith.addf %53, %54 : vector<128x16xf32>
    %56 = arith.mulf %55, %45 : vector<128x16xf32>
    %cst_26 = arith.constant 0.254829586 : f32
    %57 = vector.broadcast %cst_26 : f32 to vector<128x16xf32>
    %58 = arith.addf %56, %57 : vector<128x16xf32>
    %59 = arith.mulf %58, %45 : vector<128x16xf32>
    %cst_27 = arith.constant 0.000000e+00 : f32
    %60 = vector.broadcast %cst_27 : f32 to vector<128x16xf32>
    %61 = arith.subf %60, %39 : vector<128x16xf32>
    %62 = arith.mulf %61, %39 : vector<128x16xf32>
    %63 = math.exp %62 : vector<128x16xf32>
    %64 = arith.mulf %59, %63 : vector<128x16xf32>
    %cst_28 = arith.constant 1.000000e+00 : f32
    %65 = vector.broadcast %cst_28 : f32 to vector<128x16xf32>
    %66 = arith.subf %65, %64 : vector<128x16xf32>
    %67 = arith.mulf %38, %66 : vector<128x16xf32>
    %cst_29 = arith.constant 1.000000e+00 : f32
    %68 = vector.broadcast %cst_29 : f32 to vector<128x16xf32>
    %69 = arith.addf %68, %67 : vector<128x16xf32>
    %70 = arith.mulf %31, %69 : vector<128x16xf32>
    %c0_30 = arith.constant 0 : index
    %c0_31 = arith.constant 0 : index
    %71 = vector.load %arg6[%c0_30, %c0_31] : memref<16x32xf32, #tpu.memory_space<vmem>>, vector<16x32xf32>
    %cst_32 = arith.constant dense<0.000000e+00> : vector<128x32xf32>
    %72 = tpu.matmul %70, %71, %cst_32 {dimension_numbers = #tpu.dot_dimension_numbers<[1], [0], [0], [1], [0, 0, 1, 1], [], []>} : vector<128x16xf32>, vector<16x32xf32>, vector<128x32xf32> -> vector<128x32xf32>
    %c0_33 = arith.constant 0 : index
    %c0_34 = arith.constant 0 : index
    %73 = vector.load %arg7[%c0_33, %c0_34] : memref<1x32xf32, #tpu.memory_space<vmem>>, vector<1x32xf32>
    %74 = vector.broadcast %73 : vector<1x32xf32> to vector<128x32xf32>
    %75 = arith.addf %72, %74 : vector<128x32xf32>
    %c0_35 = arith.constant 0 : index
    %c0_36 = arith.constant 0 : index
    %76 = vector.load %arg8[%c0_35, %c0_36] : memref<128x32xf32, #tpu.memory_space<vmem>>, vector<128x32xf32>
    tpu.vector_store %arg8[%c0_35, %c0_36], %75 {strides = array<i32>} : memref<128x32xf32, #tpu.memory_space<vmem>>, vector<128x32xf32>,
    return
  }
  func.func @transform_0(%arg0: i32) -> (i32, i32) {
    %c0_i32 = arith.constant 0 : i32
    %c0_i32_0 = arith.constant 0 : i32
    return %arg0, %c0_i32 : i32, i32
  }
  func.func @transform_1(%arg0: i32) -> (i32, i32) {
    %c0_i32 = arith.constant 0 : i32
    %c0_i32_0 = arith.constant 0 : i32
    %c0_i32_1 = arith.constant 0 : i32
    return %c0_i32, %c0_i32_0 : i32, i32
  }
  func.func @transform_2(%arg0: i32) -> (i32, i32) {
    %c0_i32 = arith.constant 0 : i32
    %c0_i32_0 = arith.constant 0 : i32
    %c0_i32_1 = arith.constant 0 : i32
    return %c0_i32, %c0_i32_0 : i32, i32
  }
  func.func @transform_3(%arg0: i32) -> (i32, i32) {
    %c0_i32 = arith.constant 0 : i32
    %c0_i32_0 = arith.constant 0 : i32
    %c0_i32_1 = arith.constant 0 : i32
    return %c0_i32, %c0_i32_0 : i32, i32
  }
  func.func @transform_4(%arg0: i32) -> (i32, i32) {
    %c0_i32 = arith.constant 0 : i32
    %c0_i32_0 = arith.constant 0 : i32
    %c0_i32_1 = arith.constant 0 : i32
    return %c0_i32, %c0_i32_0 : i32, i32
  }
  func.func @transform_5(%arg0: i32) -> (i32, i32) {
    %c0_i32 = arith.constant 0 : i32
    %c0_i32_0 = arith.constant 0 : i32
    %c0_i32_1 = arith.constant 0 : i32
    return %c0_i32, %c0_i32_0 : i32, i32
  }
  func.func @transform_6(%arg0: i32) -> (i32, i32) {
    %c0_i32 = arith.constant 0 : i32
    %c0_i32_0 = arith.constant 0 : i32
    %c0_i32_1 = arith.constant 0 : i32
    return %c0_i32, %c0_i32_0 : i32, i32
  }
  func.func @transform_7(%arg0: i32) -> (i32, i32) {
    %c0_i32 = arith.constant 0 : i32
    %c0_i32_0 = arith.constant 0 : i32
    return %arg0, %c0_i32 : i32, i32
  }
}

module attributes {stable_mosaic.version = 11 : i64} {
  func.func @_ff_kernel(%arg0: i32, %arg1: memref<32x32xf32, #tpu.memory_space<vmem>>, %arg2: memref<1x32xf32, #tpu.memory_space<vmem>>, %arg3: memref<1x32xf32, #tpu.memory_space<vmem>>, %arg4: memref<32x128xf32, #tpu.memory_space<vmem>>, %arg5: memref<1x128xf32, #tpu.memory_space<vmem>>, %arg6: memref<128x32xf32, #tpu.memory_space<vmem>>, %arg7: memref<1x32xf32, #tpu.memory_space<vmem>>, %arg8: memref<32x32xf32, #tpu.memory_space<vmem>>) attributes {dimension_semantics = [#tpu.dimension_semantics<parallel>], iteration_bounds = array<i64: 1>, scalar_prefetch = 0 : i64, scratch_operands = 0 : i64, tpu.core_type = #tpu.core_type<tc>, window_params = [{transform_indices = @transform_0, window_bounds = array<i64: 32, 32>}, {pipeline_mode = #tpu.pipeline_mode<synchronous>, transform_indices = @transform_1, window_bounds = array<i64: 1, 32>}, {pipeline_mode = #tpu.pipeline_mode<synchronous>, transform_indices = @transform_2, window_bounds = array<i64: 1, 32>}, {pipeline_mode = #tpu.pipeline_mode<synchronous>, transform_indices = @transform_3, window_bounds = array<i64: 32, 128>}, {pipeline_mode = #tpu.pipeline_mode<synchronous>, transform_indices = @transform_4, window_bounds = array<i64: 1, 128>}, {pipeline_mode = #tpu.pipeline_mode<synchronous>, transform_indices = @transform_5, window_bounds = array<i64: 128, 32>}, {pipeline_mode = #tpu.pipeline_mode<synchronous>, transform_indices = @transform_6, window_bounds = array<i64: 1, 32>}, {transform_indices = @transform_7, window_bounds = array<i64: 32, 32>}]} {
    %c0 = arith.constant 0 : index
    %c0_0 = arith.constant 0 : index
    %0 = vector.load %arg1[%c0, %c0_0] : memref<32x32xf32, #tpu.memory_space<vmem>>, vector<32x32xf32>
    %cst = arith.constant dense<0.000000e+00> : vector<32xf32>
    %1 = vector.multi_reduction <add>, %0, %cst [1] : vector<32x32xf32> to vector<32xf32>
    %2 = vector.shape_cast %1 : vector<32xf32> to vector<32x1xf32>
    %cst_1 = arith.constant 3.200000e+01 : f32
    %3 = vector.broadcast %cst_1 : f32 to vector<32x1xf32>
    %4 = arith.divf %2, %3 : vector<32x1xf32>
    %5 = vector.broadcast %4 : vector<32x1xf32> to vector<32x32xf32>
    %6 = arith.subf %0, %5 : vector<32x32xf32>
    %7 = arith.mulf %6, %6 : vector<32x32xf32>
    %cst_2 = arith.constant dense<0.000000e+00> : vector<32xf32>
    %8 = vector.multi_reduction <add>, %7, %cst_2 [1] : vector<32x32xf32> to vector<32xf32>
    %9 = vector.shape_cast %8 : vector<32xf32> to vector<32x1xf32>
    %cst_3 = arith.constant 3.200000e+01 : f32
    %10 = vector.broadcast %cst_3 : f32 to vector<32x1xf32>
    %11 = arith.divf %9, %10 : vector<32x1xf32>
    %12 = vector.broadcast %4 : vector<32x1xf32> to vector<32x32xf32>
    %13 = arith.subf %0, %12 : vector<32x32xf32>
    %cst_4 = arith.constant 9.99999974E-6 : f32
    %14 = vector.broadcast %cst_4 : f32 to vector<32x1xf32>
    %15 = arith.addf %11, %14 : vector<32x1xf32>
    %16 = math.rsqrt %15 : vector<32x1xf32>
    %17 = vector.broadcast %16 : vector<32x1xf32> to vector<32x32xf32>
    %18 = arith.mulf %13, %17 : vector<32x32xf32>
    %c0_5 = arith.constant 0 : index
    %c0_6 = arith.constant 0 : index
    %19 = vector.load %arg2[%c0_5, %c0_6] : memref<1x32xf32, #tpu.memory_space<vmem>>, vector<1x32xf32>
    %20 = vector.broadcast %19 : vector<1x32xf32> to vector<32x32xf32>
    %21 = arith.mulf %18, %20 : vector<32x32xf32>
    %c0_7 = arith.constant 0 : index
    %c0_8 = arith.constant 0 : index
    %22 = vector.load %arg3[%c0_7, %c0_8] : memref<1x32xf32, #tpu.memory_space<vmem>>, vector<1x32xf32>
    %23 = vector.broadcast %22 : vector<1x32xf32> to vector<32x32xf32>
    %24 = arith.addf %21, %23 : vector<32x32xf32>
    %c0_9 = arith.constant 0 : index
    %c0_10 = arith.constant 0 : index
    %25 = vector.load %arg4[%c0_9, %c0_10] : memref<32x128xf32, #tpu.memory_space<vmem>>, vector<32x128xf32>
    %cst_11 = arith.constant dense<0.000000e+00> : vector<32x128xf32>
    %26 = tpu.matmul %24, %25, %cst_11 {dimension_numbers = #tpu.dot_dimension_numbers<[1], [0], [0], [1], [0, 0, 1, 1], [], []>} : vector<32x32xf32>, vector<32x128xf32>, vector<32x128xf32> -> vector<32x128xf32>
    %c0_12 = arith.constant 0 : index
    %c0_13 = arith.constant 0 : index
    %27 = vector.load %arg5[%c0_12, %c0_13] : memref<1x128xf32, #tpu.memory_space<vmem>>, vector<1x128xf32>
    %28 = vector.broadcast %27 : vector<1x128xf32> to vector<32x128xf32>
    %29 = arith.addf %26, %28 : vector<32x128xf32>
    %cst_14 = arith.constant 5.000000e-01 : f32
    %30 = vector.broadcast %cst_14 : f32 to vector<32x128xf32>
    %31 = arith.mulf %30, %29 : vector<32x128xf32>
    %cst_15 = arith.constant 0.707106769 : f32
    %32 = vector.broadcast %cst_15 : f32 to vector<32x128xf32>
    %33 = arith.mulf %29, %32 : vector<32x128xf32>
    %cst_16 = arith.constant 0.000000e+00 : f32
    %34 = vector.broadcast %cst_16 : f32 to vector<32x128xf32>
    %35 = arith.cmpf olt, %33, %34 : vector<32x128xf32>
    %cst_17 = arith.constant -1.000000e+00 : f32
    %cst_18 = arith.constant 1.000000e+00 : f32
    %36 = vector.broadcast %cst_17 : f32 to vector<32x128xf32>
    %37 = vector.broadcast %cst_18 : f32 to vector<32x128xf32>
    %38 = arith.select %35, %36, %37 : vector<32x128xi1>, vector<32x128xf32>
    %39 = math.absf %33 : vector<32x128xf32>
    %cst_19 = arith.constant 0.327591091 : f32
    %40 = vector.broadcast %cst_19 : f32 to vector<32x128xf32>
    %41 = arith.mulf %40, %39 : vector<32x128xf32>
    %cst_20 = arith.constant 1.000000e+00 : f32
    %42 = vector.broadcast %cst_20 : f32 to vector<32x128xf32>
    %43 = arith.addf %42, %41 : vector<32x128xf32>
    %cst_21 = arith.constant 1.000000e+00 : f32
    %44 = vector.broadcast %cst_21 : f32 to vector<32x128xf32>
    %45 = arith.divf %44, %43 : vector<32x128xf32>
    %cst_22 = arith.constant 1.06140542 : f32
    %46 = vector.broadcast %cst_22 : f32 to vector<32x128xf32>
    %47 = arith.mulf %46, %45 : vector<32x128xf32>
    %cst_23 = arith.constant -1.45315206 : f32
    %48 = vector.broadcast %cst_23 : f32 to vector<32x128xf32>
    %49 = arith.addf %47, %48 : vector<32x128xf32>
    %50 = arith.mulf %49, %45 : vector<32x128xf32>
    %cst_24 = arith.constant 1.42141378 : f32
    %51 = vector.broadcast %cst_24 : f32 to vector<32x128xf32>
    %52 = arith.addf %50, %51 : vector<32x128xf32>
    %53 = arith.mulf %52, %45 : vector<32x128xf32>
    %cst_25 = arith.constant -0.284496725 : f32
    %54 = vector.broadcast %cst_25 : f32 to vector<32x128xf32>
    %55 = arith.addf %53, %54 : vector<32x128xf32>
    %56 = arith.mulf %55, %45 : vector<32x128xf32>
    %cst_26 = arith.constant 0.254829586 : f32
    %57 = vector.broadcast %cst_26 : f32 to vector<32x128xf32>
    %58 = arith.addf %56, %57 : vector<32x128xf32>
    %59 = arith.mulf %58, %45 : vector<32x128xf32>
    %cst_27 = arith.constant 0.000000e+00 : f32
    %60 = vector.broadcast %cst_27 : f32 to vector<32x128xf32>
    %61 = arith.subf %60, %39 : vector<32x128xf32>
    %62 = arith.mulf %61, %39 : vector<32x128xf32>
    %63 = math.exp %62 : vector<32x128xf32>
    %64 = arith.mulf %59, %63 : vector<32x128xf32>
    %cst_28 = arith.constant 1.000000e+00 : f32
    %65 = vector.broadcast %cst_28 : f32 to vector<32x128xf32>
    %66 = arith.subf %65, %64 : vector<32x128xf32>
    %67 = arith.mulf %38, %66 : vector<32x128xf32>
    %cst_29 = arith.constant 1.000000e+00 : f32
    %68 = vector.broadcast %cst_29 : f32 to vector<32x128xf32>
    %69 = arith.addf %68, %67 : vector<32x128xf32>
    %70 = arith.mulf %31, %69 : vector<32x128xf32>
    %c0_30 = arith.constant 0 : index
    %c0_31 = arith.constant 0 : index
    %71 = vector.load %arg6[%c0_30, %c0_31] : memref<128x32xf32, #tpu.memory_space<vmem>>, vector<128x32xf32>
    %cst_32 = arith.constant dense<0.000000e+00> : vector<32x32xf32>
    %72 = tpu.matmul %70, %71, %cst_32 {dimension_numbers = #tpu.dot_dimension_numbers<[1], [0], [0], [1], [0, 0, 1, 1], [], []>} : vector<32x128xf32>, vector<128x32xf32>, vector<32x32xf32> -> vector<32x32xf32>
    %c0_33 = arith.constant 0 : index
    %c0_34 = arith.constant 0 : index
    %73 = vector.load %arg7[%c0_33, %c0_34] : memref<1x32xf32, #tpu.memory_space<vmem>>, vector<1x32xf32>
    %74 = vector.broadcast %73 : vector<1x32xf32> to vector<32x32xf32>
    %75 = arith.addf %72, %74 : vector<32x32xf32>
    %c0_35 = arith.constant 0 : index
    %c0_36 = arith.constant 0 : index
    %76 = vector.load %arg8[%c0_35, %c0_36] : memref<32x32xf32, #tpu.memory_space<vmem>>, vector<32x32xf32>
    tpu.vector_store %arg8[%c0_35, %c0_36], %75 {strides = array<i32>} : memref<32x32xf32, #tpu.memory_space<vmem>>, vector<32x32xf32>,
    return
  }
  func.func @transform_0(%arg0: i32) -> (i32, i32) {
    %c0_i32 = arith.constant 0 : i32
    %c0_i32_0 = arith.constant 0 : i32
    return %arg0, %c0_i32 : i32, i32
  }
  func.func @transform_1(%arg0: i32) -> (i32, i32) {
    %c0_i32 = arith.constant 0 : i32
    %c0_i32_0 = arith.constant 0 : i32
    %c0_i32_1 = arith.constant 0 : i32
    return %c0_i32, %c0_i32_0 : i32, i32
  }
  func.func @transform_2(%arg0: i32) -> (i32, i32) {
    %c0_i32 = arith.constant 0 : i32
    %c0_i32_0 = arith.constant 0 : i32
    %c0_i32_1 = arith.constant 0 : i32
    return %c0_i32, %c0_i32_0 : i32, i32
  }
  func.func @transform_3(%arg0: i32) -> (i32, i32) {
    %c0_i32 = arith.constant 0 : i32
    %c0_i32_0 = arith.constant 0 : i32
    %c0_i32_1 = arith.constant 0 : i32
    return %c0_i32, %c0_i32_0 : i32, i32
  }
  func.func @transform_4(%arg0: i32) -> (i32, i32) {
    %c0_i32 = arith.constant 0 : i32
    %c0_i32_0 = arith.constant 0 : i32
    %c0_i32_1 = arith.constant 0 : i32
    return %c0_i32, %c0_i32_0 : i32, i32
  }
  func.func @transform_5(%arg0: i32) -> (i32, i32) {
    %c0_i32 = arith.constant 0 : i32
    %c0_i32_0 = arith.constant 0 : i32
    %c0_i32_1 = arith.constant 0 : i32
    return %c0_i32, %c0_i32_0 : i32, i32
  }
  func.func @transform_6(%arg0: i32) -> (i32, i32) {
    %c0_i32 = arith.constant 0 : i32
    %c0_i32_0 = arith.constant 0 : i32
    %c0_i32_1 = arith.constant 0 : i32
    return %c0_i32, %c0_i32_0 : i32, i32
  }
  func.func @transform_7(%arg0: i32) -> (i32, i32) {
    %c0_i32 = arith.constant 0 : i32
    %c0_i32_0 = arith.constant 0 : i32
    return %arg0, %c0_i32 : i32, i32
  }
}

</mosaic_0001>

<bundles_post_ra>
// kernel: transformer_forward.8
= control target key start
LH: loop header
LB: loop body
LE: loop exit
PB: predicated region body
PF: predicated region fallthrough
CT: control target
= control target key end

     0   :  { %s3850_s21 = smov 0   ;;  %s4537_s0 = inlined_call_operand.vmem [shape: f32[128,32], index: 0, kind: input, shape index: {}]   ;;  %s4538_s1 = inlined_call_operand.vmem [shape: f32[1,32], index: 1, kind: input, shape index: {}]   ;;  %s4539_s2 = inlined_call_operand.vmem [shape: f32[32,96], index: 2, kind: input, shape index: {}]   ;;  %s4540_s3 = inlined_call_operand.vmem [shape: f32[2,16], index: 3, kind: input, shape index: {}]   ;;  %s4541_s4 = inlined_call_operand.vmem [shape: f32[2,16], index: 4, kind: input, shape index: {}]   ;;  %s4542_s5 = inlined_call_operand.vmem [shape: f32[32,32], index: 5, kind: input, shape index: {}]   ;;  %s4543_s6 = inlined_call_operand.vmem [shape: f32[128,32], index: 6, kind: output, shape index: {}]  }
   0x1 LB: > { %s3071_s22 = sadd.s32 4294967295, %s3807_s21   ;;  %p3075_p0 = scmp.ge.s32.totalorder %s3807_s21, 1  ;;  %s3807_s21 = sphi %s3850_s21, %s16_s21  }
   0x2   : > { %p213_p1 = scmp.lt.s32.totalorder %s3807_s21, 3 }
   0x4   : > { %p214_p2 = pnand %p3075_p0, %p213_p1 }
   0x5   : > { %s3076_s23 = sshll.u32 (!%p214_p2), %s3071_s22, 3  ;;  %vm272_vm0 = vcmask (!%p214_p2), 261120   ;;  %v399_v6 = vld [vmem:[%s4539_s2] sm:$0xff] (!%p214_p2)  ;;  %v400_v7 = vld [vmem:[%s4539_s2 + $0x8] sm:$0xff] (!%p214_p2)  ;;  %v401_v8 = vld [vmem:[%s4539_s2 + $0x10] sm:$0xff] (!%p214_p2)  ;;  %v632_v38 = vlaneseq (!%p214_p2)  ;;  %vm546_vm5 = vcmask (!%p214_p2), 130048  }
   0x6   : > { %217 = sbr.rel (%p214_p2) target bundleno = 2606 (0xa2e), region = 44  ;;  %p244_p3 = scmp.lt.s32.totalorder (!%p214_p2), %s3076_s23, 15  ;;  %v3451_v9 = vpack.c.bf16 (!%p214_p2), %v400_v7, %v399_v6  ;;  %v402_v10 = vld [vmem:[%s4539_s2 + $0x18] sm:$0xff] (!%p214_p2)  ;;  %v3887_v28 = vld [vmem:[%s4538_s1] ss:$0 sm:$0xff] (!%p214_p2)  ;;  %vm3930_vm6 = vmpackc.low (!%p214_p2), %vm546_vm5, %vm546_vm5 }
   0x7   : > { %v3455_v11 = vpack.c.bf16 (!%p214_p2), %v402_v10, %v401_v8  ;;  %v3895_v39 = vshrl.u32 (!%p214_p2), %v632_v38, 7  ;;  %v3901_v41 = vld [vmem:[%s4540_s3] sm:$0x3] (!%p214_p2)  ;;  %s3809_s16 = smov (!%p214_p2), 96   ;;  %s3810_s17 = smov (!%p214_p2), 80  }
   0x8   : > { %3452 = vmatprep.subr.bf16.mxu0 (!%p214_p2), %v3451_v9  ;;  %s3811_s18 = smov (!%p214_p2), 64   ;;  %s3812_s19 = smov (!%p214_p2), 112  }
   0x9   : > { %3454 = vmatpush3.bf16.msra.mxu0 (!%p214_p2), %v3451_v9  ;;  %v634_v40 = vsub.s32 (!%p214_p2), 0, %v3895_v39  ;;  %s3813_s20 = smov (!%p214_p2), 16   ;;  %s3814_s22 = smov (!%p214_p2), 48  }
   0xa   : > { %3456 = vmatprep.subr.bf16.mxu0 (!%p214_p2), %v3455_v11 }
   0xb   : > { %v3906_v42 = vrot.slane (!%p214_p2), %v3901_v41, %v634_v40 }
   0xd   : > { %s4547_s23 = smov (!%p244_p3, %s3076_s23), 15  ;;  %3458 = vmatpush3.bf16.msra.mxu0 %v3455_v11 }
   0xe   : > { %s3077_s24 = sshll.u32 %s4547_s23, 3 }
   0xf   : > { %s3866_s27 = scalar_lea.vmem %s4537_s0, %s3077_s24  ;;  %s4322_s13 = scalar_lea.vmem %s4543_s6, %s3077_s24 }
  0x10   : > { %v255_v0 = vld [vmem:[%s3866_s27] sm:$0xff]  ;;  %v256_v1 = vld [vmem:[%s3866_s27 + $0x8] sm:$0xff]  ;;  %v257_v35 = vld [vmem:[%s3866_s27 + $0x10] sm:$0xff] }
  0x11   : > { %v264_v2 = vmul.f32 %v255_v0, %v255_v0  ;;  %v265_v3 = vmul.f32 %v256_v1, %v256_v1  ;;  %v266_v36 = vmul.f32 %v257_v35, %v257_v35  ;;  %v258_v50 = vld [vmem:[%s3866_s27 + $0x18] sm:$0xff] }
  0x12   : > { %v267_v52 = vmul.f32 %v258_v50, %v258_v50 }
  0x13   : > { %v273_v4 = vsel %vm272_vm0, %v264_v2, 0.0  ;;  %v276_v5 = vsel %vm272_vm0, %v265_v3, 0.0  ;;  %v279_v37 = vsel %vm272_vm0, %v266_v36, 0.0 }
  0x14   : > { %274 = vadd.xlane.f32.xlu0 %v273_v4  ;;  %v282_v54 = vsel %vm272_vm0, %v267_v52, 0.0 }
  0x18   : > { %277 = vadd.xlane.f32.xlu0 %v276_v5 }
  0x1c   : > { %280 = vadd.xlane.f32.xlu0 %v279_v37 }
  0xa1   : > { %v275_v12 = vpop.xlane.xlu0 %274 }
  0xa2   : > { %3673 = vrsqrt.f32 %v275_v12  ;;  %vm299_vm1 = vcmp.eq.f32.partialorder %v275_v12, inf  ;;  %v302_v16 = vand.u32 2147483648, %v275_v12  ;;  %vm301_vm2 = vcmp.eq.f32.partialorder %v275_v12, 0.0 }
  0xa5   : > { %v278_v13 = vpop.xlane.xlu0 %277 }
  0xa6   : > { %3675 = vrsqrt.f32 %v278_v13  ;;  %vm306_vm3 = vcmp.eq.f32.partialorder %v278_v13, inf  ;;  %v309_v22 = vand.u32 2147483648, %v278_v13  ;;  %vm308_vm4 = vcmp.eq.f32.partialorder %v278_v13, 0.0 }
  0xa9   : > { %v281_v60 = vpop.xlane.xlu0 %280 }
  0xaa   : > { %vm313_vm7 = vcmp.eq.f32.partialorder %v281_v60, inf  ;;  %vm315_vm8 = vcmp.eq.f32.partialorder %v281_v60, 0.0 }
  0xac   : > { %v3674_v14 = vpop.eup %3673 }
  0xad   : > { %v298_v15 = vmul.f32 %v3674_v14, %v275_v12 }
  0xaf   : > { %v300_v17 = vsel %vm299_vm1, %v275_v12, %v298_v15 }
  0xb0   : > { %v3676_v18 = vpop.eup %3675  ;;  %v303_v19 = vsel %vm301_vm2, %v302_v16, %v300_v17 }
  0xb1   : > { %v353_v20 = vmax.f32 %v303_v19, 1e-12  ;;  %v305_v21 = vmul.f32 %v3676_v18, %v278_v13 }
  0xb3   : > { %3677 = vrcp.f32 %v353_v20  ;;  %v307_v23 = vsel %vm306_vm3, %v278_v13, %v305_v21 }
  0xb4   : > { %v310_v24 = vsel %vm308_vm4, %v309_v22, %v307_v23  ;;  %v862_v23 = vsub.s32 1, %v3895_v39 }
  0xb5   : > { %v354_v25 = vmax.f32 %v310_v24, 1e-12 }
  0xb6   : > { %v863_v24 = vrot.slane %v3901_v41, %v862_v23 }
  0xb7   : > { %3679 = vrcp.f32 %v354_v25 }
  0xb8   : > { %3681 = vrsqrt.f32 %v281_v60 }
  0xbd   : > { %v3678_v26 = vpop.eup %3677 }
  0xbe   : > { %v362_v27 = vmul.f32 %v3678_v26, %v255_v0 }
  0xc0   : > { %v377_v29 = vmul.f32 5.656854, %v362_v27 }
  0xc1   : > { %v3680_v30 = vpop.eup %3679 }
  0xc2   : > { %v391_v31 = vmul.f32 %v3887_v28, %v377_v29  ;;  %v364_v32 = vmul.f32 %v3680_v30, %v256_v1  ;;  %v3682_v61 = vpop.eup %3681  ;;  %v316_v1 = vand.u32 2147483648, %v281_v60 }
  0xc3   : > { %v312_v63 = vmul.f32 %v3682_v61, %v281_v60  ;;  %v4005_v61 = vld [vmem:[%s3866_s27 + $0x28] sm:$0xff] }
  0xc4   : > { %3271 = vmatprep.mubr.msk.f32.mxu0 %vm272_vm0, %v391_v31  ;;  %v378_v33 = vmul.f32 5.656854, %v364_v32 }
  0xc5   : > { %v314_v2 = vsel %vm313_vm7, %v281_v60, %v312_v63  ;;  %v4002_v60 = vld [vmem:[%s3866_s27 + $0x30] sm:$0xff] }
  0xc6   : > { %v392_v34 = vmul.f32 %v3887_v28, %v378_v33  ;;  %v317_v3 = vsel %vm315_vm8, %v316_v1, %v314_v2  ;;  %v269_v1 = vmul.f32 %v4005_v61, %v4005_v61  ;;  %v4013_v2 = vld [vmem:[%s3866_s27 + $0x38] sm:$0xff] }
  0xc7   : > { %v355_v4 = vmax.f32 %v317_v3, 1e-12 }
  0xc8   : > { %3272 = vmatmul.mubr.msk.f32.vlgmr.msra.gmra.mrb[0].mxu0 %vm272_vm0, %v392_v34 }
 0x19b   : > { %v3273_v43 = vpop.f32.mrb[0].mxu0 }
 0x19c   : > { %v3908_v44 = vmul.f32 0.25, %v3273_v43  ;;  %v493_v45 = vpop.f32.mrb[1].mxu0 }
 0x19d   : > { %v3910_v46 = vpack.i.bf16 %v3273_v43, %v493_v45  ;;  %v3912_v47 = vmul.f32 0.25, %v493_v45 }
 0x19e   : > { %v637_v48 = vmul.f32 %v3906_v42, %v3908_v44 }
 0x19f   : > { %3594 = vrot.lane.b32.xlu1 %v3910_v46, %s3809_s16  ;;  %3287 = vmatprep.mubr.msk.f32.mxu1 %vm546_vm5, %v3912_v47  ;;  %v636_v51 = vmul.f32 %v3906_v42, %v3912_v47 }
 0x1a0   : > { %v641_v49 = vsel %vm546_vm5, %v637_v48, 0.0 }
 0x1a1   : > { %642 = vadd.xlane.f32.xlu0 %v641_v49  ;;  %v638_v53 = vsel %vm546_vm5, %v636_v51, 0.0 }
 0x1c3   : > { %639 = vadd.xlane.f32.xlu1 %v638_v53 }
 0x1c7   : > { %283 = vadd.xlane.f32.xlu1 %v282_v54 }
 0x1d8   : > { %3604 = vrot.lane.b32.xlu1 %v3910_v46, %s3810_s17 }
 0x211   : > { %v3595_v55 = vpop.permute.xlu1 %3594 }
 0x212   : > { %v3597_v56 = vunpack.i.h.bf16 %v3595_v55  ;;  %v3596_v57 = vunpack.i.l.bf16 %v3595_v55 }
 0x214   : > { %v3459_v59 = vpack.c.bf16 %v3597_v56, %v3596_v57 }
 0x216   : > { %3461 = vmatprep.subr.msk.bf16.mxu1 %vm3930_vm6, %v3459_v59 }
 0x217   : > { %3464 = vmatpush3.bf16.xpose.msk.msra.mxu1 %vm3930_vm6, %v3459_v59 }
 0x21e   : > { %3288 = vmatmul.mubr.msk.f32.vlgmr.msra.gmra.mrb[0].mxu1 %vm546_vm5, %v3908_v44 }
 0x22e   : > { %v3962_v27 = vpop.xlane.xlu0 %642 }
 0x250   : > { %v3940_v62 = vpop.xlane.xlu1 %639 }
 0x254   : > { %v284_v0 = vpop.xlane.xlu1 %283 }
 0x255   : > { %3683 = vrsqrt.f32 %v284_v0  ;;  %vm320_vm9 = vcmp.eq.f32.partialorder %v284_v0, inf  ;;  %v323_v6 = vand.u32 2147483648, %v284_v0  ;;  %vm322_vm10 = vcmp.eq.f32.partialorder %v284_v0, 0.0 }
 0x256   : > { %3685 = vrcp.f32 %v355_v4  ;;  %v271_v4 = vmul.f32 %v4013_v2, %v4013_v2 }
 0x258   : > { %v3605_v33 = vpop.permute.xlu1 %3604 }
 0x259   : > { %v3607_v37 = vunpack.i.h.bf16 %v3605_v33  ;;  %v3606_v38 = vunpack.i.l.bf16 %v3605_v33 }
 0x25b   : > { %v3469_v52 = vpack.c.bf16 %v3607_v37, %v3606_v38 }
 0x25f   : > { %v3684_v5 = vpop.eup %3683 }
 0x260   : > { %v319_v7 = vmul.f32 %v3684_v5, %v284_v0  ;;  %v3686_v11 = vpop.eup %3685  ;;  %v288_v5 = vsel %vm272_vm0, %v269_v1, 0.0 }
 0x261   : > { %v366_v12 = vmul.f32 %v3686_v11, %v257_v35 }
 0x262   : > { %v321_v8 = vsel %vm320_vm9, %v284_v0, %v319_v7  ;;  %v270_v0 = vmul.f32 %v4002_v60, %v4002_v60 }
 0x263   : > { %v324_v9 = vsel %vm322_vm10, %v323_v6, %v321_v8  ;;  %v379_v13 = vmul.f32 5.656854, %v366_v12  ;;  %v294_v6 = vsel %vm272_vm0, %v271_v4, 0.0 }
 0x264   : > { %v356_v10 = vmax.f32 %v324_v9, 1e-12  ;;  %v291_v3 = vsel %vm272_vm0, %v270_v0, 0.0 }
 0x265   : > { %v393_v15 = vmul.f32 %v3887_v28, %v379_v13 }
 0x266   : > { %3687 = vrcp.f32 %v356_v10 }
 0x267   : > { %3274 = vmatprep.mubr.msk.f32.mxu0 %vm272_vm0, %v393_v15 }
 0x270   : > { %v3688_v14 = vpop.eup %3687 }
 0x271   : > { %v368_v16 = vmul.f32 %v3688_v14, %v258_v50 }
 0x273   : > { %v380_v17 = vmul.f32 5.656854, %v368_v16 }
 0x275   : > { %v394_v18 = vmul.f32 %v3887_v28, %v380_v17 }
 0x277   : > { %3275 = vmatmul.mubr.msk.f32.gmra.mrb[2].mxu0 %vm272_vm0, %v394_v18 }
 0x2f1   : > { %v3289_v19 = vpop.f32.mrb[0].mxu1 }
 0x2f2   : > { %v623_v20 = vpop.f32.mrb[1].mxu1  ;;  %v647_v21 = vsel %vm546_vm5, %v3289_v19, -inf }
 0x2f3   : > { %648 = vmax.xlane.f32.xlu0 %v647_v21  ;;  %v644_v22 = vsel %vm546_vm5, %v623_v20, -inf }
 0x2f7   : > { %645 = vmax.xlane.f32.xlu0 %v644_v22 }
 0x30d   : > { %3599 = vrot.lane.b32.xlu0 %v3910_v46, %s3811_s18 }
 0x311   : > { %769 = vrot.lane.b32.xlu0 %v3912_v47, %s3812_s19 }
 0x315   : > { %771 = vrot.lane.b32.xlu0 %v3908_v44, %s3812_s19 }
 0x319   : > { %865 = vrot.lane.b32.xlu0 %v863_v24, %s3813_s20 }
 0x34a   : > { %v3958_v25 = vpop.f32.mrb[2].mxu0 }
 0x34b   : > { %v3960_v26 = vpop.f32.mrb[3].mxu0  ;;  %v4029_v12 = vmul.f32 0.25, %v3958_v25 }
 0x34c   : > { %v4022_v7 = vpack.i.bf16 %v3958_v25, %v3960_v26 }
 0x380   : > { %v649_v29 = vpop.xlane.xlu0 %648 }
 0x381   : > { %v3965_v30 = vmax.f32 %v649_v29, %v3962_v27 }
 0x383   : > { %v659_v31 = vsub.f32 %v3962_v27, %v3965_v30  ;;  %v653_v34 = vsub.f32 %v3289_v19, %v3965_v30  ;;  %v4045_v27 = vld [vmem:[%s4541_s4] sm:$0x3] }
 0x384   : > { %v646_v32 = vpop.xlane.xlu0 %645 }
 0x385   : > { %v3971_v35 = vmax.f32 %v646_v32, %v3940_v62  ;;  %v656_v43 = vmul.f32 1.442695, %v653_v34 }
 0x387   : > { %v652_v36 = vsub.f32 %v623_v20, %v3971_v35 }
 0x388   : > { %v3600_v41 = vpop.permute.xlu0 %3599 }
 0x389   : > { %v654_v45 = vmul.f32 1.442695, %v652_v36  ;;  %v3602_v48 = vunpack.i.h.bf16 %v3600_v41  ;;  %v3601_v49 = vunpack.i.l.bf16 %v3600_v41  ;;  %v658_v36 = vsub.f32 %v3940_v62, %v3971_v35 }
 0x38b   : > { %3689 = vpow2.f32 %v654_v45  ;;  %v3465_v50 = vpack.c.bf16 %v3602_v48, %v3601_v49 }
 0x38c   : > { %v770_v51 = vpop.permute.xlu0 %769  ;;  %3691 = vpow2.f32 %v656_v43 }
 0x38d   : > { %3466 = vmatprep.subr.bf16.mxu1 %v3465_v50 }
 0x38e   : > { %3468 = vmatpush3.bf16.msra.mxu1 %v3465_v50 }
 0x38f   : > { %3471 = vmatprep.subr.msk.bf16.mxu1 %vm3930_vm6, %v3469_v52 }
 0x390   : > { %v772_v53 = vpop.permute.xlu0 %771 }
 0x394   : > { %v3976_v54 = vpop.permute.xlu0 %865 }
 0x395   : > { %v3978_v55 = vpop.eup %3689  ;;  %v869_v56 = vmul.f32 %v3976_v54, %v3908_v44  ;;  %v868_v57 = vmul.f32 %v3976_v54, %v3912_v47  ;;  %v3997_v44 = vld [vmem:[%s3866_s27 + $0x20] sm:$0xff]  ;;  %v1487_v13 = vmul.f32 %v4029_v12, %v3976_v54 }
 0x396   : > { %3294 = vmatprep.mubr.msk.f32.mxu1 %vm546_vm5, %v3978_v55  ;;  %v3986_v59 = vpop.eup %3691  ;;  %v268_v47 = vmul.f32 %v3997_v44, %v3997_v44 }
 0x397   : > { %874 = vrot.lane.b32.xlu1 %v869_v56, %s3812_s19  ;;  %872 = vrot.lane.b32.xlu0 %v868_v57, %s3812_s19  ;;  %v660_v56 = vmul.f32 1.442695, %v658_v36 }
 0x398   : > { %3295 = vmatmul.mubr.msk.f32.vlgmr.msra.gmra.mrb[2].mxu1 %vm546_vm5, %v3986_v59  ;;  %v285_v63 = vsel %vm272_vm0, %v268_v47, 0.0 }
 0x399   : > { %3474 = vmatpush3.bf16.xpose.msk.msra.mxu1 %vm3930_vm6, %v3469_v52  ;;  %3301 = vmatprep.mubr.msk.f32.mxu1 %vm546_vm5, %v770_v51  ;;  %v662_v51 = vmul.f32 1.442695, %v659_v31 }
 0x3a0   : > { %3302 = vmatmul.mubr.msk.f32.vlgmr.msra.gmra.mrb[4].mxu1 %vm546_vm5, %v772_v53 }
 0x3b6   : > { %286 = vadd.xlane.f32.xlu0 %v285_v63 }
 0x3ba   : > { %292 = vadd.xlane.f32.xlu0 %v291_v3 }
 0x3bb   : > { %289 = vadd.xlane.f32.xlu1 %v288_v5 }
 0x3be   : > { %295 = vadd.xlane.f32.xlu0 %v294_v6 }
 0x409   : > { %v873_v8 = vpop.permute.xlu0 %872  ;;  %v875_v10 = vpop.permute.xlu1 %874 }
 0x40a   : > { %v878_v9 = vsel %vm546_vm5, %v873_v8, 0.0  ;;  %v881_v11 = vsel %vm546_vm5, %v875_v10, 0.0 }
 0x40b   : > { %879 = vadd.xlane.f32.xlu0 %v878_v9 }
 0x40f   : > { %882 = vadd.xlane.f32.xlu0 %v881_v11 }
 0x425   : > { %3609 = vrot.lane.b32.xlu0 %v3910_v46, %s3814_s22 }
 0x429   : > { %1397 = vrot.lane.b32.xlu0 %v4029_v12, %s3812_s19 }
 0x42d   : > { %1492 = vrot.lane.b32.xlu0 %v1487_v13, %s3812_s19 }
 0x443   : > { %v287_v14 = vpop.xlane.xlu0 %286 }
 0x444   : > { %3693 = vrsqrt.f32 %v287_v14  ;;  %vm327_vm11 = vcmp.eq.f32.partialorder %v287_v14, inf  ;;  %v330_v18 = vand.u32 2147483648, %v287_v14  ;;  %vm329_vm12 = vcmp.eq.f32.partialorder %v287_v14, 0.0 }
 0x447   : > { %v293_v15 = vpop.xlane.xlu0 %292 }
 0x448   : > { %v290_v16 = vpop.xlane.xlu1 %289  ;;  %3695 = vrsqrt.f32 %v293_v15  ;;  %vm341_vm13 = vcmp.eq.f32.partialorder %v293_v15, inf  ;;  %vm343_vm14 = vcmp.eq.f32.partialorder %v293_v15, 0.0  ;;  %v344_v24 = vand.u32 2147483648, %v293_v15 }
 0x449   : > { %3697 = vrsqrt.f32 %v290_v16  ;;  %vm334_vm15 = vcmp.eq.f32.partialorder %v290_v16, inf  ;;  %v337_v32 = vand.u32 2147483648, %v290_v16  ;;  %vm336_vm1 = vcmp.eq.f32.partialorder %v290_v16, 0.0 }
 0x44b   : > { %v296_v17 = vpop.xlane.xlu0 %295 }
 0x44c   : > { %3699 = vrsqrt.f32 %v296_v17  ;;  %vm348_vm2 = vcmp.eq.f32.partialorder %v296_v17, inf  ;;  %v351_v45 = vand.u32 2147483648, %v296_v17  ;;  %vm350_vm3 = vcmp.eq.f32.partialorder %v296_v17, 0.0 }
 0x44e   : > { %v3694_v46 = vpop.eup %3693 }
 0x44f   : > { %v326_v19 = vmul.f32 %v3694_v46, %v287_v14 }
 0x451   : > { %v328_v20 = vsel %vm327_vm11, %v287_v14, %v326_v19 }
 0x452   : > { %v3696_v21 = vpop.eup %3695  ;;  %v331_v22 = vsel %vm329_vm12, %v330_v18, %v328_v20 }
 0x453   : > { %v3698_v25 = vpop.eup %3697  ;;  %v357_v29 = vmax.f32 %v331_v22, 1e-12  ;;  %v340_v33 = vmul.f32 %v3696_v21, %v293_v15 }
 0x454   : > { %v333_v34 = vmul.f32 %v3698_v25, %v290_v16 }
 0x455   : > { %3701 = vrcp.f32 %v357_v29  ;;  %v342_v37 = vsel %vm341_vm13, %v293_v15, %v340_v33 }
 0x456   : > { %v3700_v38 = vpop.eup %3699  ;;  %v335_v41 = vsel %vm334_vm15, %v290_v16, %v333_v34  ;;  %v345_v43 = vsel %vm343_vm14, %v344_v24, %v342_v37 }
 0x457   : > { %v338_v48 = vsel %vm336_vm1, %v337_v32, %v335_v41  ;;  %v359_v49 = vmax.f32 %v345_v43, 1e-12  ;;  %v347_v50 = vmul.f32 %v3700_v38, %v296_v17 }
 0x458   : > { %v358_v52 = vmax.f32 %v338_v48, 1e-12 }
 0x459   : > { %3703 = vrcp.f32 %v359_v49  ;;  %v349_v53 = vsel %vm348_vm2, %v296_v17, %v347_v50 }
 0x45a   : > { %3705 = vrcp.f32 %v358_v52  ;;  %v352_v62 = vsel %vm350_vm3, %v351_v45, %v349_v53 }
 0x45b   : > { %v360_v35 = vmax.f32 %v352_v62, 1e-12  ;;  %3707 = vpow2.f32 %v662_v51 }
 0x45d   : > { %3709 = vrcp.f32 %v360_v35 }
 0x45e   : > { %3711 = vpow2.f32 %v660_v56 }
 0x45f   : > { %v3702_v57 = vpop.eup %3701 }
 0x460   : > { %v370_v47 = vmul.f32 %v3702_v57, %v3997_v44  ;;  %v4055_v44 = vrot.slane %v4045_v27, %v634_v40 }
 0x462   : > { %v381_v63 = vmul.f32 5.656854, %v370_v47 }
 0x463   : > { %v3704_v0 = vpop.eup %3703 }
 0x464   : > { %v3706_v30 = vpop.eup %3705  ;;  %v395_v31 = vmul.f32 %v3887_v28, %v381_v63  ;;  %v374_v1 = vmul.f32 %v3704_v0, %v4002_v60 }
 0x465   : > { %v372_v3 = vmul.f32 %v3706_v30, %v4005_v61  ;;  %v4050_v4 = vpop.eup %3707 }
 0x466   : > { %3277 = vmatprep.mubr.msk.f32.mxu0 %vm272_vm0, %v395_v31  ;;  %v383_v5 = vmul.f32 5.656854, %v374_v1  ;;  %v677_v11 = vmul.f32 %v4050_v4, %v4055_v44 }
 0x467   : > { %v3710_v6 = vpop.eup %3709  ;;  %v382_v8 = vmul.f32 5.656854, %v372_v3 }
 0x468   : > { %v4058_v9 = vpop.eup %3711  ;;  %v397_v10 = vmul.f32 %v3887_v28, %v383_v5  ;;  %v376_v60 = vmul.f32 %v3710_v6, %v4013_v2 }
 0x469   : > { %v396_v61 = vmul.f32 %v3887_v28, %v382_v8  ;;  %v676_v40 = vmul.f32 %v4058_v9, %v4055_v44 }
 0x46a   : > { %v384_v13 = vmul.f32 5.656854, %v376_v60 }
 0x46b   : > { %v3296_v14 = vpop.f32.mrb[2].mxu1  ;;  %3278 = vmatmul.mubr.msk.f32.gmra.mrb[4].mxu0 %vm272_vm0, %v396_v61  ;;  %v667_v61 = vsel %vm546_vm5, %v3986_v59, 0.0 }
 0x46c   : > { %v4068_v15 = vadd.f32 %v3296_v14, %v677_v11  ;;  %v756_v16 = vpop.f32.mrb[3].mxu1  ;;  %3280 = vmatprep.mubr.msk.f32.mxu0 %vm272_vm0, %v397_v10  ;;  %v398_v17 = vmul.f32 %v3887_v28, %v384_v13  ;;  %v1173_v28 = vmul.f32 0.25, %v3960_v26  ;;  %v664_v10 = vsel %vm546_vm5, %v3978_v55, 0.0 }
 0x46d   : > { %v4072_v2 = vadd.f32 %v756_v16, %v676_v40  ;;  %v1267_v13 = vmul.f32 %v4029_v12, %v3906_v42 }
 0x46e   : > { %v1486_v21 = vmul.f32 %v1173_v28, %v3976_v54  ;;  %v1266_v60 = vmul.f32 %v1173_v28, %v3906_v42 }
 0x46f   : > { %3281 = vmatmul.mubr.msk.f32.gmra.mrb[6].mxu0 %vm272_vm0, %v398_v17  ;;  %v1271_v40 = vsel %vm546_vm5, %v1267_v13, 0.0 }
 0x470   : > { %v1268_v11 = vsel %vm546_vm5, %v1266_v60, 0.0 }
 0x473   : > { %v3303_v46 = vpop.f32.mrb[4].mxu1 }
 0x474   : > { %v851_v18 = vpop.f32.mrb[5].mxu1  ;;  %v887_v19 = vsel %vm546_vm5, %v3303_v46, -inf }
 0x475   : > { %888 = vmax.xlane.f32.xlu1 %v887_v19  ;;  %v884_v20 = vsel %vm546_vm5, %v851_v18, -inf  ;;  %v536_v19 = vld [vmem:[%s4542_s5 + $0x10] sm:$0xff] }
 0x479   : > { %885 = vmax.xlane.f32.xlu1 %v884_v20  ;;  %v537_v20 = vld [vmem:[%s4542_s5 + $0x18] sm:$0xff] }
 0x48a   : > { %3614 = vrot.lane.b32.xlu1 %v4022_v7, %s3809_s16 }
 0x48e   : > { %3619 = vrot.lane.b32.xlu1 %v4022_v7, %s3810_s17 }
 0x492   : > { %1395 = vrot.lane.b32.xlu1 %v1173_v28, %s3812_s19 }
 0x496   : > { %1490 = vrot.lane.b32.xlu1 %v1486_v21, %s3812_s19  ;;  %v534_v21 = vld [vmem:[%s4542_s5] sm:$0xff] }
 0x498   : > { %v4085_v22 = vpop.xlane.xlu0 %879 }
 0x49c   : > { %v4087_v24 = vpop.xlane.xlu0 %882 }
 0x4a0   : > { %v3610_v25 = vpop.permute.xlu0 %3609 }
 0x4a1   : > { %v3612_v29 = vunpack.i.h.bf16 %v3610_v25  ;;  %v3611_v32 = vunpack.i.l.bf16 %v3610_v25  ;;  %v535_v25 = vld [vmem:[%s4542_s5 + $0x8] sm:$0xff] }
 0x4a3   : > { %v3475_v33 = vpack.c.bf16 %v3612_v29, %v3611_v32  ;;  %v4163_v29 = vpack.c.bf16 %v535_v25, %v534_v21 }
 0x4a4   : > { %v1398_v63 = vpop.permute.xlu0 %1397 }
 0x4a5   : > { %3476 = vmatprep.subr.bf16.mxu0 %v3475_v33 }
 0x4a6   : > { %3478 = vmatpush3.bf16.msra.mxu0 %v3475_v33 }
 0x4a8   : > { %v1493_v17 = vpop.permute.xlu0 %1492 }
 0x4a9   : > { %v1499_v59 = vsel %vm546_vm5, %v1493_v17, 0.0 }
 0x502   : > { %v889_v34 = vpop.xlane.xlu1 %888 }
 0x503   : > { %v4090_v36 = vmax.f32 %v889_v34, %v4087_v24 }
 0x505   : > { %v893_v26 = vsub.f32 %v3303_v46, %v4090_v36 }
 0x506   : > { %v886_v37 = vpop.xlane.xlu1 %885 }
 0x507   : > { %v4094_v38 = vmax.f32 %v886_v37, %v4085_v22  ;;  %v896_v43 = vmul.f32 1.442695, %v893_v26 }
 0x509   : > { %v892_v41 = vsub.f32 %v851_v18, %v4094_v38 }
 0x50a   : > { %v3615_v45 = vpop.permute.xlu1 %3614 }
 0x50b   : > { %v894_v48 = vmul.f32 1.442695, %v892_v41  ;;  %v3617_v49 = vunpack.i.h.bf16 %v3615_v45  ;;  %v3616_v50 = vunpack.i.l.bf16 %v3615_v45 }
 0x50d   : > { %3713 = vpow2.f32 %v894_v48  ;;  %v3487_v51 = vpack.c.bf16 %v3617_v49, %v3616_v50 }
 0x50e   : > { %3715 = vpow2.f32 %v896_v43  ;;  %v3620_v52 = vpop.permute.xlu1 %3619 }
 0x50f   : > { %3489 = vmatprep.subr.msk.bf16.mxu0 %vm3930_vm6, %v3487_v51  ;;  %v3622_v53 = vunpack.i.h.bf16 %v3620_v52  ;;  %v3621_v56 = vunpack.i.l.bf16 %v3620_v52 }
 0x511   : > { %v3497_v57 = vpack.c.bf16 %v3622_v53, %v3621_v56 }
 0x512   : > { %v1396_v47 = vpop.permute.xlu1 %1395 }
 0x516   : > { %v1491_v16 = vpop.permute.xlu1 %1490 }
 0x517   : > { %v3714_v62 = vpop.eup %3713  ;;  %v1496_v55 = vsel %vm546_vm5, %v1491_v16, 0.0 }
 0x518   : > { %v3716_v35 = vpop.eup %3715  ;;  %3308 = vmatprep.mubr.msk.f32.mxu0 %vm546_vm5, %v3714_v62  ;;  %v904_v46 = vsel %vm546_vm5, %v3714_v62, 0.0  ;;  %v899_v62 = vsub.f32 %v4087_v24, %v4090_v36 }
 0x519   : > { %3309 = vmatmul.mubr.msk.f32.vlgmr.msra.gmra.mrb[8].mxu0 %vm546_vm5, %v3716_v35  ;;  %v907_v14 = vsel %vm546_vm5, %v3716_v35, 0.0  ;;  %v898_v35 = vsub.f32 %v4085_v22, %v4094_v38 }
 0x51a   : > { %3492 = vmatpush3.bf16.xpose.msk.msra.mxu0 %vm3930_vm6, %v3487_v51  ;;  %3329 = vmatprep.mubr.msk.f32.mxu0 %vm546_vm5, %v1173_v28  ;;  %v4150_v28 = vpack.c.bf16 %v537_v20, %v536_v19 }
 0x51b   : > { %3499 = vmatprep.subr.msk.bf16.mxu0 %vm3930_vm6, %v3497_v57 }
 0x51c   : > { %3480 = vmatprep.subr.bf16.mxu1 %v4150_v28 }
 0x51d   : > { %3482 = vmatpush3.bf16.msra.mxu1 %v4150_v28 }
 0x51e   : > { %3484 = vmatprep.subr.bf16.mxu1 %v4163_v29 }
 0x521   : > { %3330 = vmatmul.mubr.msk.f32.vlgmr.msra.gmra.mrb[10].mxu0 %vm546_vm5, %v4029_v12 }
 0x522   : > { %3502 = vmatpush3.bf16.xpose.msk.msra.mxu0 %vm3930_vm6, %v3497_v57  ;;  %3343 = vmatprep.mubr.msk.f32.mxu0 %vm546_vm5, %v1396_v47  ;;  %v902_v57 = vmul.f32 1.442695, %v899_v62  ;;  %v900_v47 = vmul.f32 1.442695, %v898_v35 }
 0x524   : > { %3717 = vpow2.f32 %v902_v57 }
 0x525   : > { %3719 = vpow2.f32 %v900_v47 }
 0x529   : > { %3344 = vmatmul.mubr.msk.f32.vlgmr.msra.gmra.mrb[12].mxu0 %vm546_vm5, %v1398_v63  ;;  %v4194_v63 = vrot.slane %v4045_v27, %v862_v23 }
 0x53e   : > { %v3279_v0 = vpop.f32.mrb[4].mxu0 }
 0x53f   : > { %v513_v30 = vpop.f32.mrb[5].mxu0  ;;  %v1788_v6 = vmul.f32 0.25, %v3279_v0 }
 0x540   : > { %v4112_v31 = vpack.i.bf16 %v3279_v0, %v513_v30  ;;  %v1787_v1 = vmul.f32 0.25, %v513_v30  ;;  %v3718_v0 = vpop.eup %3717 }
 0x541   : > { %v2101_v18 = vmul.f32 %v1788_v6, %v3976_v54  ;;  %v1881_v51 = vmul.f32 %v1788_v6, %v3906_v42  ;;  %v3720_v30 = vpop.eup %3719 }
 0x542   : > { %v4114_v3 = vpop.f32.mrb[6].mxu0  ;;  %3629 = vrot.lane.b32.xlu0 %v4112_v31, %s3810_s17  ;;  %3624 = vrot.lane.b32.xlu1 %v4112_v31, %s3809_s16  ;;  %v2100_v12 = vmul.f32 %v1787_v1, %v3976_v54  ;;  %v1880_v49 = vmul.f32 %v1787_v1, %v3906_v42 }
 0x543   : > { %v523_v5 = vpop.f32.mrb[7].mxu0  ;;  %3371 = vmatprep.mubr.msk.f32.mxu0 %vm546_vm5, %v1787_v1  ;;  %v1885_v53 = vsel %vm546_vm5, %v1881_v51, 0.0 }
 0x544   : > { %v4122_v8 = vpack.i.bf16 %v4114_v3, %v523_v5  ;;  %v4165_v32 = vmul.f32 0.25, %v523_v5  ;;  %v1882_v50 = vsel %vm546_vm5, %v1880_v49, 0.0 }
 0x546   : > { %2011 = vrot.lane.b32.xlu0 %v1788_v6, %s3812_s19  ;;  %2009 = vrot.lane.b32.xlu1 %v1787_v1, %s3812_s19  ;;  %v917_v1 = vmul.f32 %v3718_v0, %v4194_v63 }
 0x565   : > { %665 = vadd.xlane.f32.xlu0 %v664_v10 }
 0x569   : > { %668 = vadd.xlane.f32.xlu0 %v667_v61 }
 0x56a   : > { %1269 = vadd.xlane.f32.xlu1 %v1268_v11 }
 0x56d   : > { %908 = vadd.xlane.f32.xlu0 %v907_v14 }
 0x56e   : > { %1272 = vadd.xlane.f32.xlu1 %v1271_v40 }
 0x572   : > { %1497 = vadd.xlane.f32.xlu1 %v1496_v55 }
 0x576   : > { %1500 = vadd.xlane.f32.xlu1 %v1499_v59 }
 0x57a   : > { %905 = vadd.xlane.f32.xlu1 %v904_v46 }
 0x58b   : > { %3634 = vrot.lane.b32.xlu1 %v4022_v7, %s3811_s18 }
 0x58f   : > { %2104 = vrot.lane.b32.xlu1 %v2100_v12, %s3812_s19 }
 0x593   : > { %2106 = vrot.lane.b32.xlu1 %v2101_v18, %s3812_s19 }
 0x597   : > { %3644 = vrot.lane.b32.xlu1 %v4122_v8, %s3809_s16 }
 0x59b   : > { %2623 = vrot.lane.b32.xlu1 %v4165_v32, %s3812_s19 }
 0x5b4   : > { %v3625_v33 = vpop.permute.xlu1 %3624  ;;  %v3630_v34 = vpop.permute.xlu0 %3629 }
 0x5b5   : > { %v3627_v26 = vunpack.i.h.bf16 %v3625_v33  ;;  %v3626_v37 = vunpack.i.l.bf16 %v3625_v33  ;;  %v3632_v41 = vunpack.i.h.bf16 %v3630_v34  ;;  %v3631_v43 = vunpack.i.l.bf16 %v3630_v34 }
 0x5b7   : > { %v3515_v45 = vpack.c.bf16 %v3627_v26, %v3626_v37  ;;  %v3525_v48 = vpack.c.bf16 %v3632_v41, %v3631_v43 }
 0x5b8   : > { %v2010_v52 = vpop.permute.xlu1 %2009  ;;  %v2012_v56 = vpop.permute.xlu0 %2011 }
 0x5b9   : > { %3517 = vmatprep.subr.msk.bf16.mxu0 %vm3930_vm6, %v3515_v45 }
 0x5ba   : > { %3520 = vmatpush3.bf16.xpose.msk.msra.mxu0 %vm3930_vm6, %v3515_v45 }
 0x5bb   : > { %3527 = vmatprep.subr.msk.bf16.mxu0 %vm3930_vm6, %v3525_v48 }
 0x5bf   : > { %1883 = vadd.xlane.f32.xlu1 %v1882_v50 }
 0x5c1   : > { %3372 = vmatmul.mubr.msk.f32.vlgmr.msra.gmra.mrb[14].mxu0 %vm546_vm5, %v1788_v6  ;;  %v916_v6 = vmul.f32 %v3720_v30, %v4194_v63 }
 0x5c2   : > { %3530 = vmatpush3.bf16.xpose.msk.msra.mxu0 %vm3930_vm6, %v3525_v48  ;;  %3385 = vmatprep.mubr.msk.f32.mxu0 %vm546_vm5, %v2010_v52 }
 0x5c3   : > { %1886 = vadd.xlane.f32.xlu1 %v1885_v53 }
 0x5c9   : > { %3386 = vmatmul.mubr.msk.f32.vlgmr.msra.gmra.mrb[16].mxu0 %vm546_vm5, %v2012_v56 }
 0x5ca   : > { %3413 = vmatprep.mubr.msk.f32.mxu0 %vm546_vm5, %v4165_v32 }
 0x5ec   : > { %v3310_v5 = vpop.f32.mrb[8].mxu0 }
 0x5ed   : > { %v1002_v24 = vadd.f32 %v3310_v5, %v917_v1  ;;  %v996_v36 = vpop.f32.mrb[9].mxu0 }
 0x5ee   : > { %v997_v10 = vadd.f32 %v996_v36, %v916_v6 }
 0x5f2   : > { %v666_v22 = vpop.xlane.xlu0 %665 }
 0x5f3   : > { %v670_v38 = vadd.f32 %v4058_v9, %v666_v22 }
 0x5f4   : > { %v4199_v60 = vpop.f32.mrb[10].mxu0 }
 0x5f5   : > { %3721 = vrcp.f32 %v670_v38  ;;  %v4201_v39 = vpop.f32.mrb[11].mxu0  ;;  %v1277_v23 = vsel %vm546_vm5, %v4199_v60, -inf }
 0x5f6   : > { %1278 = vmax.xlane.f32.xlu0 %v1277_v23  ;;  %v669_v27 = vpop.xlane.xlu0 %668  ;;  %v1274_v13 = vsel %vm546_vm5, %v4201_v39, -inf }
 0x5f7   : > { %v671_v61 = vadd.f32 %v4050_v4, %v669_v27  ;;  %v4206_v11 = vpop.xlane.xlu1 %1269 }
 0x5f9   : > { %3723 = vrcp.f32 %v671_v61 }
 0x5fa   : > { %1275 = vmax.xlane.f32.xlu0 %v1274_v13  ;;  %v909_v9 = vpop.xlane.xlu0 %908 }
 0x5fb   : > { %v911_v14 = vadd.f32 %v3718_v0, %v909_v9  ;;  %v4210_v40 = vpop.xlane.xlu1 %1272 }
 0x5fc   : > { %v4212_v16 = vpop.f32.mrb[12].mxu0 }
 0x5fd   : > { %3725 = vrcp.f32 %v911_v14  ;;  %v4214_v55 = vpop.f32.mrb[13].mxu0  ;;  %v1505_v17 = vsel %vm546_vm5, %v4212_v16, -inf }
 0x5fe   : > { %1506 = vmax.xlane.f32.xlu0 %v1505_v17  ;;  %v1502_v12 = vsel %vm546_vm5, %v4214_v55, -inf }
 0x5ff   : > { %v3722_v4 = vpop.eup %3721  ;;  %v4218_v59 = vpop.xlane.xlu1 %1497 }
 0x600   : > { %v766_v46 = vmul.f32 %v3722_v4, %v4072_v2 }
 0x602   : > { %1503 = vmax.xlane.f32.xlu0 %v1502_v12 }
 0x603   : > { %v3724_v18 = vpop.eup %3723  ;;  %v4223_v19 = vpop.xlane.xlu1 %1500 }
 0x604   : > { %v768_v20 = vmul.f32 %v3724_v18, %v4068_v15 }
 0x607   : > { %v3726_v21 = vpop.eup %3725  ;;  %v906_v25 = vpop.xlane.xlu1 %905 }
 0x608   : > { %v910_v33 = vadd.f32 %v3720_v30, %v906_v25  ;;  %v1008_v34 = vmul.f32 %v3726_v21, %v1002_v24 }
 0x60a   : > { %3727 = vrcp.f32 %v910_v33 }
 0x60b   : > { %v3635_v26 = vpop.permute.xlu1 %3634 }
 0x60c   : > { %v3637_v45 = vunpack.i.h.bf16 %v3635_v26  ;;  %v3636_v48 = vunpack.i.l.bf16 %v3635_v26 }
 0x60e   : > { %v3493_v51 = vpack.c.bf16 %v3637_v45, %v3636_v48  ;;  %v2714_v48 = vmul.f32 %v4165_v32, %v3976_v54 }
 0x60f   : > { %v2105_v37 = vpop.permute.xlu1 %2104 }
 0x610   : > { %v2110_v41 = vsel %vm546_vm5, %v2105_v37, 0.0 }
 0x611   : > { %2111 = vadd.xlane.f32.xlu1 %v2110_v41 }
 0x613   : > { %v2107_v2 = vpop.permute.xlu1 %2106 }
 0x614   : > { %v3728_v43 = vpop.eup %3727  ;;  %v2113_v49 = vsel %vm546_vm5, %v2107_v2, 0.0 }
 0x615   : > { %2114 = vadd.xlane.f32.xlu1 %v2113_v49  ;;  %v1006_v50 = vmul.f32 %v3728_v43, %v997_v10 }
 0x617   : > { %3315 = vmatprep.mubr.msk.f32.mxu1 %vm546_vm5, %v1006_v50  ;;  %v3645_v15 = vpop.permute.xlu1 %3644  ;;  %v2494_v50 = vmul.f32 %v4165_v32, %v3906_v42 }
 0x618   : > { %3639 = vrot.lane.b32.xlu0 %v4022_v7, %s3814_s22  ;;  %v3647_v52 = vunpack.i.h.bf16 %v3645_v15  ;;  %v3646_v53 = vunpack.i.l.bf16 %v3645_v15  ;;  %3316 = vmatmul.mubr.msk.f32.vlgmr.msra.gmra.mrb[6].mxu1 %vm546_vm5, %v1008_v34  ;;  %v4241_v7 = vmul.f32 0.25, %v4114_v3 }
 0x619   : > { %3486 = vmatpush3.bf16.msra.mxu1 %v4163_v29  ;;  %3322 = vmatprep.mubr.msk.f32.mxu1 %vm546_vm5, %v766_v46  ;;  %v2496_v15 = vsel %vm546_vm5, %v2494_v50, 0.0 }
 0x61a   : > { %v3543_v56 = vpack.c.bf16 %v3647_v52, %v3646_v53  ;;  %3494 = vmatprep.subr.bf16.mxu1 %v3493_v51  ;;  %v2715_v49 = vmul.f32 %v4241_v7, %v3976_v54 }
 0x61b   : > { %v2624_v62 = vpop.permute.xlu1 %2623 }
 0x61c   : > { %3649 = vrot.lane.b32.xlu0 %v4122_v8, %s3810_s17  ;;  %3545 = vmatprep.subr.msk.bf16.mxu0 %vm3930_vm6, %v3543_v56 }
 0x61d   : > { %3548 = vmatpush3.bf16.xpose.msk.msra.mxu0 %vm3930_vm6, %v3543_v56 }
 0x620   : > { %2625 = vrot.lane.b32.xlu0 %v4241_v7, %s3812_s19  ;;  %3323 = vmatmul.mubr.msk.f32.vlgmr.msra.gmra.mrb[6].mxu1 %vm546_vm5, %v768_v20 }
 0x621   : > { %3496 = vmatpush3.bf16.msra.mxu1 %v3493_v51  ;;  %v2495_v51 = vmul.f32 %v4241_v7, %v3906_v42 }
 0x623   : > { %v2499_v52 = vsel %vm546_vm5, %v2495_v51, 0.0 }
 0x624   : > { %3414 = vmatmul.mubr.msk.f32.vlgmr.msra.gmra.mrb[18].mxu0 %vm546_vm5, %v4241_v7 }
 0x625   : > { %3427 = vmatprep.mubr.msk.f32.mxu0 %vm546_vm5, %v2624_v62 }
 0x64c   : > { %v4338_v62 = vpop.xlane.xlu1 %1883 }
 0x683   : > { %v1279_v35 = vpop.xlane.xlu0 %1278 }
 0x684   : > { %v4250_v57 = vmax.f32 %v1279_v35, %v4210_v40 }
 0x686   : > { %v1283_v3 = vsub.f32 %v4199_v60, %v4250_v57  ;;  %v1289_v7 = vsub.f32 %v4210_v40, %v4250_v57 }
 0x687   : > { %v1276_v47 = vpop.xlane.xlu0 %1275 }
 0x688   : > { %v4255_v0 = vmax.f32 %v1276_v47, %v4206_v11  ;;  %v1286_v1 = vmul.f32 1.442695, %v1283_v3  ;;  %v1292_v35 = vmul.f32 1.442695, %v1289_v7  ;;  %v4340_v3 = vpop.xlane.xlu1 %1886 }
 0x68a   : > { %v1282_v30 = vsub.f32 %v4201_v39, %v4255_v0  ;;  %v1288_v50 = vsub.f32 %v4206_v11, %v4255_v0 }
 0x68b   : > { %v1507_v5 = vpop.xlane.xlu0 %1506 }
 0x68c   : > { %v1284_v6 = vmul.f32 1.442695, %v1282_v30  ;;  %v4260_v24 = vmax.f32 %v1507_v5, %v4223_v19 }
 0x68e   : > { %3729 = vpow2.f32 %v1284_v6  ;;  %v1511_v36 = vsub.f32 %v4212_v16, %v4260_v24 }
 0x68f   : > { %3731 = vpow2.f32 %v1286_v1  ;;  %v1504_v10 = vpop.xlane.xlu0 %1503 }
 0x690   : > { %v4265_v22 = vmax.f32 %v1504_v10, %v4218_v59  ;;  %v1514_v60 = vmul.f32 1.442695, %v1511_v36 }
 0x692   : > { %v1510_v38 = vsub.f32 %v4214_v55, %v4265_v22  ;;  %v1516_v51 = vsub.f32 %v4218_v59, %v4265_v22 }
 0x693   : > { %v3640_v39 = vpop.permute.xlu0 %3639 }
 0x694   : > { %v1512_v23 = vmul.f32 1.442695, %v1510_v38  ;;  %v3642_v27 = vunpack.i.h.bf16 %v3640_v39  ;;  %v3641_v61 = vunpack.i.l.bf16 %v3640_v39  ;;  %v4269_v13 = vpop.f32.mrb[14].mxu0 }
 0x695   : > { %v4271_v9 = vpop.f32.mrb[15].mxu0  ;;  %v1891_v14 = vsel %vm546_vm5, %v4269_v13, -inf }
 0x696   : > { %3733 = vpow2.f32 %v1512_v23  ;;  %v3503_v16 = vpack.c.bf16 %v3642_v27, %v3641_v61  ;;  %1892 = vmax.xlane.f32.xlu0 %v1891_v14  ;;  %v1888_v18 = vsel %vm546_vm5, %v4271_v9, -inf }
 0x697   : > { %3735 = vpow2.f32 %v1514_v60  ;;  %v3650_v17 = vpop.permute.xlu0 %3649 }
 0x698   : > { %v3730_v4 = vpop.eup %3729  ;;  %v3652_v46 = vunpack.i.h.bf16 %v3650_v17  ;;  %v3651_v55 = vunpack.i.l.bf16 %v3650_v17  ;;  %3504 = vmatprep.subr.bf16.mxu1 %v3503_v16  ;;  %3737 = vpow2.f32 %v1292_v35 }
 0x699   : > { %v3732_v12 = vpop.eup %3731  ;;  %3336 = vmatprep.mubr.msk.f32.mxu1 %vm546_vm5, %v3730_v4  ;;  %v1294_v41 = vsel %vm546_vm5, %v3730_v4, 0.0 }
 0x69a   : > { %v3553_v20 = vpack.c.bf16 %v3652_v46, %v3651_v55  ;;  %3337 = vmatmul.mubr.msk.f32.vlgmr.msra.gmra.mrb[8].mxu1 %vm546_vm5, %v3732_v12  ;;  %1889 = vmax.xlane.f32.xlu0 %v1888_v18  ;;  %v1297_v25 = vsel %vm546_vm5, %v3732_v12, 0.0 }
 0x69b   : > { %3506 = vmatpush3.bf16.msra.mxu1 %v3503_v16  ;;  %v2626_v2 = vpop.permute.xlu0 %2625 }
 0x69c   : > { %3555 = vmatprep.subr.msk.bf16.mxu0 %vm3930_vm6, %v3553_v20  ;;  %v4281_v21 = vpop.f32.mrb[16].mxu0  ;;  %3508 = vmatprep.subr.bf16.mxu1 %v4150_v28 }
 0x69d   : > { %3558 = vmatpush3.bf16.xpose.msk.msra.mxu0 %vm3930_vm6, %v3553_v20  ;;  %v4287_v33 = vpop.f32.mrb[17].mxu0  ;;  %v2119_v45 = vsel %vm546_vm5, %v4281_v21, -inf }
 0x69e   : > { %1298 = vadd.xlane.f32.xlu0 %v1297_v25  ;;  %v2116_v43 = vsel %vm546_vm5, %v4287_v33, -inf  ;;  %v4345_v1 = vpop.xlane.xlu1 %2111 }
 0x6a0   : > { %v3734_v34 = vpop.eup %3733 }
 0x6a1   : > { %v3736_v26 = vpop.eup %3735  ;;  %3350 = vmatprep.mubr.msk.f32.mxu1 %vm546_vm5, %v3734_v34  ;;  %v1522_v37 = vsel %vm546_vm5, %v3734_v34, 0.0 }
 0x6a2   : > { %1523 = vadd.xlane.f32.xlu1 %v1522_v37  ;;  %3351 = vmatmul.mubr.msk.f32.vlgmr.msra.gmra.mrb[10].mxu1 %vm546_vm5, %v3736_v26  ;;  %v1525_v58 = vsel %vm546_vm5, %v3736_v26, 0.0  ;;  %v3738_v57 = vpop.eup %3737  ;;  %v4354_v38 = vpop.xlane.xlu1 %2114 }
 0x6a3   : > { %1295 = vadd.xlane.f32.xlu0 %v1294_v41  ;;  %3510 = vmatpush3.bf16.msra.mxu1 %v4150_v28 }
 0x6a4   : > { %3428 = vmatmul.mubr.msk.f32.vlgmr.msra.gmra.mrb[20].mxu0 %vm546_vm5, %v2626_v2  ;;  %3512 = vmatprep.subr.bf16.mxu1 %v4163_v29 }
 0x6a7   : > { %1526 = vadd.xlane.f32.xlu0 %v1525_v58 }
 0x6ab   : > { %2117 = vmax.xlane.f32.xlu0 %v2116_v43 }
 0x6af   : > { %2120 = vmax.xlane.f32.xlu0 %v2119_v45 }
 0x6b3   : > { %3654 = vrot.lane.b32.xlu1 %v4112_v31, %s3811_s18 }
 0x6b7   : > { %2718 = vrot.lane.b32.xlu1 %v2714_v48, %s3812_s19 }
 0x6bb   : > { %2720 = vrot.lane.b32.xlu1 %v2715_v49, %s3812_s19 }
 0x6c5   : > { %3659 = vrot.lane.b32.xlu0 %v4112_v31, %s3814_s22 }
 0x6df   : > { %2497 = vadd.xlane.f32.xlu1 %v2496_v15  ;;  %v1517_v15 = vsub.f32 %v4223_v19, %v4260_v24  ;;  %v1303_v19 = vmul.f32 %v3738_v57, %v4055_v44 }
 0x6e3   : > { %2500 = vadd.xlane.f32.xlu1 %v2499_v52  ;;  %v1520_v52 = vmul.f32 1.442695, %v1517_v15 }
 0x6f3   : > { %v3324_v54 = vpop.f32.mrb[6].mxu1 }
 0x6f4   : > { %1172 = vst.msk [vmem:[%s4322_s13 + $0x8] sm:$0xff] %vm272_vm0, %v3324_v54  ;;  %v1162_v31 = vpop.f32.mrb[7].mxu1  ;;  %v1518_v54 = vmul.f32 1.442695, %v1516_v51 }
 0x6f5   : > { %1171 = vst.msk [vmem:[%s4322_s13] sm:$0xff] %vm272_vm0, %v1162_v31 }
 0x6f7   : > { %v4328_v32 = vpop.f32.mrb[18].mxu0 }
 0x6f8   : > { %v4330_v42 = vpop.f32.mrb[19].mxu0  ;;  %v2505_v56 = vsel %vm546_vm5, %v4328_v32, -inf }
 0x6f9   : > { %v2502_v53 = vsel %vm546_vm5, %v4330_v42, -inf }
 0x6fa   : > { %2503 = vmax.xlane.f32.xlu0 %v2502_v53 }
 0x6fe   : > { %2506 = vmax.xlane.f32.xlu0 %v2505_v56 }
 0x723   : > { %v1893_v47 = vpop.xlane.xlu0 %1892 }
 0x724   : > { %v4343_v30 = vmax.f32 %v1893_v47, %v4340_v3 }
 0x726   : > { %v1897_v5 = vsub.f32 %v4269_v13, %v4343_v30 }
 0x727   : > { %v1890_v6 = vpop.xlane.xlu0 %1889 }
 0x728   : > { %v1900_v36 = vmul.f32 1.442695, %v1897_v5  ;;  %v4350_v10 = vmax.f32 %v1890_v6, %v4338_v62 }
 0x72a   : > { %3739 = vpow2.f32 %v1900_v36  ;;  %v1896_v40 = vsub.f32 %v4271_v9, %v4350_v10 }
 0x72b   : > { %v1299_v60 = vpop.xlane.xlu0 %1298 }
 0x72c   : > { %v1898_v39 = vmul.f32 1.442695, %v1896_v40  ;;  %v1301_v23 = vadd.f32 %v3738_v57, %v1299_v60 }
 0x72e   : > { %3741 = vpow2.f32 %v1898_v39 }
 0x72f   : > { %v1524_v27 = vpop.xlane.xlu1 %1523 }
 0x730   : > { %v1296_v61 = vpop.xlane.xlu0 %1295 }
 0x733   : > { %v4356_v14 = vpop.permute.xlu1 %3654 }
 0x734   : > { %v4358_v13 = vpop.eup %3739  ;;  %v1527_v16 = vpop.xlane.xlu0 %1526 }
 0x735   : > { %v1911_v17 = vsel %vm546_vm5, %v4358_v13, 0.0 }
 0x736   : > { %1912 = vadd.xlane.f32.xlu0 %v1911_v17 }
 0x737   : > { %v2719_v4 = vpop.permute.xlu1 %2718 }
 0x738   : > { %v4362_v9 = vpop.eup %3741  ;;  %v2724_v46 = vsel %vm546_vm5, %v2719_v4, 0.0  ;;  %v2118_v55 = vpop.xlane.xlu0 %2117 }
 0x739   : > { %2725 = vadd.xlane.f32.xlu1 %v2724_v46  ;;  %v4366_v12 = vmax.f32 %v2118_v55, %v4345_v1  ;;  %v1908_v18 = vsel %vm546_vm5, %v4362_v9, 0.0  ;;  %v3657_v46 = vunpack.i.h.bf16 %v4356_v14  ;;  %v3656_v55 = vunpack.i.l.bf16 %v4356_v14 }
 0x73a   : > { %1909 = vadd.xlane.f32.xlu0 %v1908_v18 }
 0x73b   : > { %v2124_v20 = vsub.f32 %v4287_v33, %v4366_v12  ;;  %v2721_v25 = vpop.permute.xlu1 %2720 }
 0x73c   : > { %v2727_v34 = vsel %vm546_vm5, %v2721_v25, 0.0  ;;  %v2121_v26 = vpop.xlane.xlu0 %2120 }
 0x73d   : > { %v2126_v37 = vmul.f32 1.442695, %v2124_v20  ;;  %2728 = vadd.xlane.f32.xlu1 %v2727_v34  ;;  %v4374_v41 = vmax.f32 %v2121_v26, %v4354_v38  ;;  %v3521_v26 = vpack.c.bf16 %v3657_v46, %v3656_v55  ;;  %v2130_v46 = vsub.f32 %v4345_v1, %v4366_v12 }
 0x73f   : > { %3743 = vpow2.f32 %v2126_v37  ;;  %v2125_v2 = vsub.f32 %v4281_v21, %v4374_v41  ;;  %v2131_v58 = vsub.f32 %v4354_v38, %v4374_v41  ;;  %v1290_v21 = vmul.f32 1.442695, %v1288_v50 }
 0x740   : > { %v3660_v37 = vpop.permute.xlu0 %3659  ;;  %v2132_v55 = vmul.f32 1.442695, %v2130_v46 }
 0x741   : > { %v2128_v43 = vmul.f32 1.442695, %v2125_v2  ;;  %v3662_v2 = vunpack.i.h.bf16 %v3660_v37 }
 0x743   : > { %3745 = vpow2.f32 %v2128_v43  ;;  %v3661_v43 = vunpack.i.l.bf16 %v3660_v37 }
 0x744   : > { %3747 = vpow2.f32 %v1290_v21 }
 0x745   : > { %3749 = vpow2.f32 %v1520_v52 }
 0x746   : > { %3751 = vpow2.f32 %v1518_v54 }
 0x747   : > { %3753 = vrcp.f32 %v1301_v23 }
 0x749   : > { %v4380_v45 = vpop.eup %3743 }
 0x74a   : > { %v2136_v33 = vsel %vm546_vm5, %v4380_v45, 0.0 }
 0x74b   : > { %2137 = vadd.xlane.f32.xlu1 %v2136_v33  ;;  %v3531_v33 = vpack.c.bf16 %v3662_v2, %v3661_v43 }
 0x74d   : > { %v4384_v48 = vpop.eup %3745 }
 0x74e   : > { %v2139_v49 = vsel %vm546_vm5, %v4384_v48, 0.0  ;;  %v3748_v31 = vpop.eup %3747 }
 0x74f   : > { %2140 = vadd.xlane.f32.xlu0 %v2139_v49  ;;  %v1300_v53 = vadd.f32 %v3748_v31, %v1296_v61  ;;  %v3750_v11 = vpop.eup %3749  ;;  %v1302_v59 = vmul.f32 %v3748_v31, %v4055_v44 }
 0x750   : > { %v3752_v0 = vpop.eup %3751  ;;  %v1529_v56 = vadd.f32 %v3750_v11, %v1527_v16  ;;  %v1531_v60 = vmul.f32 %v3750_v11, %v4194_v63 }
 0x751   : > { %3755 = vrcp.f32 %v1300_v53  ;;  %v1528_v7 = vadd.f32 %v3752_v0, %v1524_v27  ;;  %v3754_v47 = vpop.eup %3753  ;;  %v1530_v23 = vmul.f32 %v3752_v0, %v4194_v63 }
 0x752   : > { %3757 = vrcp.f32 %v1529_v56 }
 0x753   : > { %3759 = vrcp.f32 %v1528_v7 }
 0x75b   : > { %v3756_v6 = vpop.eup %3755 }
 0x75c   : > { %3664 = vrot.lane.b32.xlu1 %v4122_v8, %s3811_s18  ;;  %v3758_v57 = vpop.eup %3757 }
 0x75d   : > { %v3760_v4 = vpop.eup %3759 }
 0x76c   : > { %v4415_v49 = vpop.xlane.xlu1 %2497 }
 0x76d   : > { %v3338_v24 = vpop.f32.mrb[8].mxu1 }
 0x76e   : > { %v1388_v22 = vadd.f32 %v3338_v24, %v1303_v19  ;;  %v1382_v35 = vpop.f32.mrb[9].mxu1 }
 0x76f   : > { %v1383_v5 = vadd.f32 %v1382_v35, %v1302_v59 }
 0x770   : > { %v1394_v36 = vmul.f32 %v3754_v47, %v1388_v22  ;;  %v4429_v51 = vpop.xlane.xlu1 %2500 }
 0x771   : > { %v1392_v40 = vmul.f32 %v3756_v6, %v1383_v5 }
 0x775   : > { %v3352_v39 = vpop.f32.mrb[10].mxu1 }
 0x776   : > { %v1616_v27 = vadd.f32 %v3352_v39, %v1531_v60  ;;  %v1610_v61 = vpop.f32.mrb[11].mxu1 }
 0x777   : > { %v1611_v16 = vadd.f32 %v1610_v61, %v1530_v23  ;;  %v4400_v17 = vpop.f32.mrb[20].mxu0 }
 0x778   : > { %v1622_v18 = vmul.f32 %v3758_v57, %v1616_v27  ;;  %v4404_v20 = vpop.f32.mrb[21].mxu0  ;;  %v2733_v14 = vsel %vm546_vm5, %v4400_v17, -inf }
 0x779   : > { %v1620_v25 = vmul.f32 %v3760_v4, %v1611_v16  ;;  %v2730_v34 = vsel %vm546_vm5, %v4404_v20, -inf }
 0x77a   : > { %2731 = vmax.xlane.f32.xlu0 %v2730_v34 }
 0x77b   : > { %3357 = vmatprep.mubr.msk.f32.mxu1 %vm546_vm5, %v1620_v25 }
 0x77c   : > { %3358 = vmatmul.mubr.msk.f32.vlgmr.msra.gmra.mrb[12].mxu1 %vm546_vm5, %v1622_v18 }
 0x77d   : > { %3514 = vmatpush3.bf16.msra.mxu1 %v4163_v29  ;;  %3364 = vmatprep.mubr.msk.f32.mxu1 %vm546_vm5, %v1392_v40 }
 0x77e   : > { %3522 = vmatprep.subr.bf16.mxu1 %v3521_v26  ;;  %2734 = vmax.xlane.f32.xlu0 %v2733_v14 }
 0x784   : > { %3365 = vmatmul.mubr.msk.f32.vlgmr.msra.gmra.mrb[12].mxu1 %vm546_vm5, %v1394_v36 }
 0x785   : > { %3524 = vmatpush3.bf16.msra.mxu1 %v3521_v26  ;;  %3378 = vmatprep.mubr.msk.f32.mxu1 %vm546_vm5, %v4362_v9 }
 0x786   : > { %3532 = vmatprep.subr.bf16.mxu1 %v3531_v33 }
 0x787   : > { %v2504_v50 = vpop.xlane.xlu0 %2503 }
 0x788   : > { %3379 = vmatmul.mubr.msk.f32.vlgmr.msra.gmra.mrb[14].mxu1 %vm546_vm5, %v4358_v13  ;;  %v4422_v21 = vmax.f32 %v2504_v50, %v4415_v49 }
 0x789   : > { %3534 = vmatpush3.bf16.msra.mxu1 %v3531_v33  ;;  %3392 = vmatprep.mubr.msk.f32.mxu1 %vm546_vm5, %v4380_v45  ;;  %v1903_v45 = vsub.f32 %v4340_v3, %v4343_v30 }
 0x78a   : > { %v2516_v15 = vsub.f32 %v4415_v49, %v4422_v21  ;;  %3536 = vmatprep.subr.bf16.mxu1 %v4150_v28 }
 0x78b   : > { %v2507_v9 = vpop.xlane.xlu0 %2506  ;;  %v1906_v54 = vmul.f32 1.442695, %v1903_v45 }
 0x78c   : > { %3393 = vmatmul.mubr.msk.f32.vlgmr.msra.gmra.mrb[16].mxu1 %vm546_vm5, %v4384_v48  ;;  %v4434_v13 = vmax.f32 %v2507_v9, %v4429_v51  ;;  %v1902_v48 = vsub.f32 %v4338_v62, %v4350_v10  ;;  %v2510_v10 = vsub.f32 %v4330_v42, %v4422_v21 }
 0x78d   : > { %3538 = vmatpush3.bf16.msra.mxu1 %v4150_v28  ;;  %3761 = vpow2.f32 %v1906_v54 }
 0x78e   : > { %v2517_v52 = vsub.f32 %v4429_v51, %v4434_v13  ;;  %3540 = vmatprep.subr.bf16.mxu1 %v4163_v29  ;;  %v1904_v31 = vmul.f32 1.442695, %v1902_v48  ;;  %v2512_v47 = vmul.f32 1.442695, %v2510_v10  ;;  %v2511_v5 = vsub.f32 %v4328_v32, %v4434_v13 }
 0x790   : > { %3763 = vpow2.f32 %v1904_v31  ;;  %v2514_v60 = vmul.f32 1.442695, %v2511_v5  ;;  %v2520_v5 = vmul.f32 1.442695, %v2517_v52 }
 0x794   : > { %3669 = vrot.lane.b32.xlu0 %v4122_v8, %s3814_s22  ;;  %v2134_v8 = vmul.f32 1.442695, %v2131_v58 }
 0x796   : > { %3765 = vpow2.f32 %v2134_v8 }
 0x797   : > { %v3762_v53 = vpop.eup %3761 }
 0x798   : > { %v1917_v37 = vmul.f32 %v3762_v53, %v4055_v44 }
 0x79a   : > { %v3764_v56 = vpop.eup %3763 }
 0x79b   : > { %v1916_v1 = vmul.f32 %v3764_v56, %v4055_v44 }
 0x7a0   : > { %v3766_v24 = vpop.eup %3765 }
 0x7a1   : > { %v2145_v45 = vmul.f32 %v3766_v24, %v4194_v63 }
 0x7c3   : > { %v1913_v11 = vpop.xlane.xlu0 %1912 }
 0x7c4   : > { %v1915_v0 = vadd.f32 %v3762_v53, %v1913_v11 }
 0x7c6   : > { %v4449_v59 = vpop.xlane.xlu1 %2725 }
 0x7c7   : > { %v1910_v7 = vpop.xlane.xlu0 %1909 }
 0x7c8   : > { %v1914_v19 = vadd.f32 %v3764_v56, %v1910_v7 }
 0x7ca   : > { %v4460_v41 = vpop.xlane.xlu1 %2728 }
 0x7d8   : > { %v2138_v18 = vpop.xlane.xlu1 %2137 }
 0x7dc   : > { %v2141_v3 = vpop.xlane.xlu0 %2140  ;;  %v3665_v54 = vpop.permute.xlu1 %3664 }
 0x7dd   : > { %v2143_v30 = vadd.f32 %v3766_v24, %v2141_v3  ;;  %v3667_v3 = vunpack.i.h.bf16 %v3665_v54  ;;  %v3666_v56 = vunpack.i.l.bf16 %v3665_v54 }
 0x7df   : > { %v3549_v10 = vpack.c.bf16 %v3667_v3, %v3666_v56 }
 0x807   : > { %v2732_v62 = vpop.xlane.xlu0 %2731 }
 0x808   : > { %v4454_v22 = vmax.f32 %v2732_v62, %v4449_v59 }
 0x80a   : > { %v2738_v35 = vsub.f32 %v4404_v20, %v4454_v22  ;;  %v2744_v38 = vsub.f32 %v4449_v59, %v4454_v22 }
 0x80b   : > { %v2735_v58 = vpop.xlane.xlu0 %2734 }
 0x80c   : > { %v2740_v6 = vmul.f32 1.442695, %v2738_v35  ;;  %v4465_v36 = vmax.f32 %v2735_v58, %v4460_v41 }
 0x80e   : > { %3767 = vpow2.f32 %v2740_v6  ;;  %v2739_v42 = vsub.f32 %v4400_v17, %v4465_v36  ;;  %v2745_v40 = vsub.f32 %v4460_v41, %v4465_v36  ;;  %v2518_v6 = vmul.f32 1.442695, %v2516_v15 }
 0x80f   : > { %3769 = vpow2.f32 %v2512_v47  ;;  %v3670_v24 = vpop.permute.xlu0 %3669 }
 0x810   : > { %v2742_v39 = vmul.f32 1.442695, %v2739_v42  ;;  %v3672_v35 = vunpack.i.h.bf16 %v3670_v24  ;;  %v3671_v58 = vunpack.i.l.bf16 %v3670_v24  ;;  %v2748_v42 = vmul.f32 1.442695, %v2745_v40 }
 0x812   : > { %3771 = vpow2.f32 %v2742_v39  ;;  %v3559_v47 = vpack.c.bf16 %v3672_v35, %v3671_v58 }
 0x813   : > { %3773 = vpow2.f32 %v2514_v60 }
 0x814   : > { %3775 = vpow2.f32 %v2132_v55 }
 0x815   : > { %3777 = vrcp.f32 %v1915_v0 }
 0x816   : > { %3779 = vrcp.f32 %v1914_v19 }
 0x817   : > { %3781 = vrcp.f32 %v2143_v30 }
 0x818   : > { %v4471_v23 = vpop.eup %3767 }
 0x819   : > { %v2750_v32 = vsel %vm546_vm5, %v4471_v23, 0.0  ;;  %v3770_v27 = vpop.eup %3769 }
 0x81a   : > { %2751 = vadd.xlane.f32.xlu1 %v2750_v32  ;;  %v2522_v57 = vsel %vm546_vm5, %v3770_v27, 0.0 }
 0x81c   : > { %v4475_v61 = vpop.eup %3771 }
 0x81d   : > { %v2753_v16 = vsel %vm546_vm5, %v4475_v61, 0.0  ;;  %v3774_v17 = vpop.eup %3773 }
 0x81e   : > { %2523 = vadd.xlane.f32.xlu1 %v2522_v57  ;;  %2754 = vadd.xlane.f32.xlu0 %v2753_v16  ;;  %v2525_v4 = vsel %vm546_vm5, %v3774_v17, 0.0  ;;  %v3776_v20 = vpop.eup %3775 }
 0x81f   : > { %v2142_v25 = vadd.f32 %v3776_v20, %v2138_v18  ;;  %v3778_v43 = vpop.eup %3777  ;;  %v2144_v11 = vmul.f32 %v3776_v20, %v4194_v63 }
 0x820   : > { %v3780_v50 = vpop.eup %3779 }
 0x821   : > { %3783 = vrcp.f32 %v2142_v25  ;;  %v3782_v19 = vpop.eup %3781 }
 0x822   : > { %2526 = vadd.xlane.f32.xlu0 %v2525_v4  ;;  %3785 = vpow2.f32 %v2520_v5 }
 0x823   : > { %3787 = vpow2.f32 %v2518_v6 }
 0x824   : > { %3789 = vpow2.f32 %v2748_v42 }
 0x82b   : > { %v3784_v8 = vpop.eup %3783 }
 0x82c   : > { %v3786_v49 = vpop.eup %3785 }
 0x82d   : > { %v3788_v21 = vpop.eup %3787 }
 0x857   : > { %v3366_v34 = vpop.f32.mrb[12].mxu1 }
 0x858   : > { %1786 = vst.msk [vmem:[%s4322_s13 + $0x18] sm:$0xff] %vm272_vm0, %v3366_v34  ;;  %v1776_v26 = vpop.f32.mrb[13].mxu1 }
 0x859   : > { %1785 = vst.msk [vmem:[%s4322_s13 + $0x10] sm:$0xff] %vm272_vm0, %v1776_v26 }
 0x85b   : > { %v3380_v14 = vpop.f32.mrb[14].mxu1 }
 0x85c   : > { %v2002_v12 = vadd.f32 %v3380_v14, %v1917_v37  ;;  %v1996_v2 = vpop.f32.mrb[15].mxu1 }
 0x85d   : > { %v1997_v33 = vadd.f32 %v1996_v2, %v1916_v1 }
 0x85e   : > { %v2008_v9 = vmul.f32 %v3778_v43, %v2002_v12 }
 0x85f   : > { %v2006_v48 = vmul.f32 %v3780_v50, %v1997_v33  ;;  %v3394_v31 = vpop.f32.mrb[16].mxu1 }
 0x860   : > { %v2230_v0 = vadd.f32 %v3394_v31, %v2145_v45  ;;  %v2224_v7 = vpop.f32.mrb[17].mxu1 }
 0x861   : > { %v2225_v53 = vadd.f32 %v2224_v7, %v2144_v11 }
 0x862   : > { %v2236_v30 = vmul.f32 %v3782_v19, %v2230_v0 }
 0x863   : > { %v2234_v62 = vmul.f32 %v3784_v8, %v2225_v53 }
 0x865   : > { %3399 = vmatprep.mubr.msk.f32.mxu1 %vm546_vm5, %v2234_v62 }
 0x866   : > { %3400 = vmatmul.mubr.msk.f32.vlgmr.msra.gmra.mrb[18].mxu1 %vm546_vm5, %v2236_v30 }
 0x867   : > { %3542 = vmatpush3.bf16.msra.mxu1 %v4163_v29  ;;  %3406 = vmatprep.mubr.msk.f32.mxu1 %vm546_vm5, %v2006_v48 }
 0x868   : > { %3550 = vmatprep.subr.bf16.mxu1 %v3549_v10 }
 0x86e   : > { %3407 = vmatmul.mubr.msk.f32.vlgmr.msra.gmra.mrb[18].mxu1 %vm546_vm5, %v2008_v9 }
 0x86f   : > { %3552 = vmatpush3.bf16.msra.mxu1 %v3549_v10  ;;  %3420 = vmatprep.mubr.msk.f32.mxu1 %vm546_vm5, %v3770_v27  ;;  %v2530_v27 = vmul.f32 %v3788_v21, %v4055_v44 }
 0x870   : > { %3560 = vmatprep.subr.bf16.mxu1 %v3559_v47 }
 0x872   : > { %3421 = vmatmul.mubr.msk.f32.vlgmr.msra.gmra.mrb[20].mxu1 %vm546_vm5, %v3774_v17 }
 0x873   : > { %3562 = vmatpush3.bf16.msra.mxu1 %v3559_v47  ;;  %3434 = vmatprep.mubr.msk.f32.mxu1 %vm546_vm5, %v4471_v23  ;;  %v3790_v23 = vpop.eup %3789 }
 0x874   : > { %3564 = vmatprep.subr.bf16.mxu1 %v4150_v28  ;;  %v2759_v55 = vmul.f32 %v3790_v23, %v4194_v63 }
 0x876   : > { %3435 = vmatmul.mubr.msk.f32.vlgmr.msra.gmra.mrb[22].mxu1 %vm546_vm5, %v4475_v61 }
 0x877   : > { %3566 = vmatpush3.bf16.msra.mxu1 %v4150_v28  ;;  %v2746_v28 = vmul.f32 1.442695, %v2744_v38  ;;  %v2531_v38 = vmul.f32 %v3786_v49, %v4055_v44 }
 0x878   : > { %3568 = vmatprep.subr.bf16.mxu1 %v4163_v29 }
 0x879   : > { %3791 = vpow2.f32 %v2746_v28 }
 0x883   : > { %v3792_v41 = vpop.eup %3791 }
 0x884   : > { %v2758_v25 = vmul.f32 %v3792_v41, %v4194_v63 }
 0x8a7   : > { %v2752_v39 = vpop.xlane.xlu1 %2751 }
 0x8a8   : > { %v2756_v40 = vadd.f32 %v3792_v41, %v2752_v39 }
 0x8ab   : > { %v2755_v60 = vpop.xlane.xlu0 %2754  ;;  %v2524_v13 = vpop.xlane.xlu1 %2523 }
 0x8ac   : > { %v2528_v52 = vadd.f32 %v3788_v21, %v2524_v13  ;;  %v2757_v36 = vadd.f32 %v3790_v23, %v2755_v60 }
 0x8af   : > { %v2527_v51 = vpop.xlane.xlu0 %2526 }
 0x8b0   : > { %v2529_v15 = vadd.f32 %v3786_v49, %v2527_v51 }
 0x8b2   : > { %3793 = vrcp.f32 %v2529_v15 }
 0x8b3   : > { %3795 = vrcp.f32 %v2528_v52 }
 0x8b4   : > { %3797 = vrcp.f32 %v2757_v36 }
 0x8b5   : > { %3799 = vrcp.f32 %v2756_v40 }
 0x8bc   : > { %v3794_v16 = vpop.eup %3793 }
 0x8bd   : > { %v3796_v4 = vpop.eup %3795 }
 0x8be   : > { %v3798_v37 = vpop.eup %3797 }
 0x8bf   : > { %v3800_v1 = vpop.eup %3799 }
 0x941   : > { %v3408_v59 = vpop.f32.mrb[18].mxu1 }
 0x942   : > { %2400 = vst.msk [vmem:[%s4322_s13 + $0x28] sm:$0xff] %vm272_vm0, %v3408_v59  ;;  %v2390_v22 = vpop.f32.mrb[19].mxu1 }
 0x943   : > { %2399 = vst.msk [vmem:[%s4322_s13 + $0x20] sm:$0xff] %vm272_vm0, %v2390_v22 }
 0x945   : > { %v3422_v32 = vpop.f32.mrb[20].mxu1 }
 0x946   : > { %v2616_v61 = vadd.f32 %v3422_v32, %v2531_v38  ;;  %v2610_v57 = vpop.f32.mrb[21].mxu1 }
 0x947   : > { %v2611_v17 = vadd.f32 %v2610_v57, %v2530_v27 }
 0x948   : > { %v2622_v46 = vmul.f32 %v3794_v16, %v2616_v61 }
 0x949   : > { %v2620_v18 = vmul.f32 %v3796_v4, %v2611_v17  ;;  %v3436_v20 = vpop.f32.mrb[22].mxu1 }
 0x94a   : > { %v2844_v34 = vadd.f32 %v3436_v20, %v2759_v55  ;;  %v2838_v26 = vpop.f32.mrb[23].mxu1 }
 0x94b   : > { %v2839_v14 = vadd.f32 %v2838_v26, %v2758_v25 }
 0x94c   : > { %v2850_v44 = vmul.f32 %v3798_v37, %v2844_v34 }
 0x94d   : > { %v2848_v12 = vmul.f32 %v3800_v1, %v2839_v14 }
 0x94f   : > { %3441 = vmatprep.mubr.msk.f32.mxu1 %vm546_vm5, %v2848_v12 }
 0x950   : > { %3442 = vmatmul.mubr.msk.f32.vlgmr.msra.gmra.mrb[24].mxu1 %vm546_vm5, %v2850_v44 }
 0x951   : > { %3570 = vmatpush3.bf16.msra.mxu1 %v4163_v29  ;;  %3448 = vmatprep.mubr.msk.f32.mxu1 %vm546_vm5, %v2620_v18 }
 0x958   : > { %3449 = vmatmul.mubr.msk.f32.vlgmr.msra.gmra.mrb[24].mxu1 %vm546_vm5, %v2622_v46 }
 0xa2b   : > { %v3450_v2 = vpop.f32.mrb[24].mxu1 }
 0xa2c   : > { %3014 = vst.msk [vmem:[%s4322_s13 + $0x38] sm:$0xff] %vm272_vm0, %v3450_v2  ;;  %v3004_v63 = vpop.f32.mrb[25].mxu1 }
 0xa2d   : > { %3013 = vst.msk [vmem:[%s4322_s13 + $0x30] sm:$0xff] %vm272_vm0, %v3004_v63 }
 0xa2e PF: > { %s16_s21 = sadd.s32 1, %s3807_s21  }
 0xa2f   : > { %p13_p4 = scmp.ge.s32.totalorder %s16_s21, 4  }
 0xa31   :  { %15 = sbr.rel (!%p13_p4) target bundleno = 1 (0x1), region = 74 }

// kernel: transformer_forward.9
= control target key start
LH: loop header
LB: loop body
LE: loop exit
PB: predicated region body
PF: predicated region fallthrough
CT: control target
= control target key end

     0   :  { %s2400_s27 = smov 0   ;;  %s2726_s0 = inlined_call_operand.vmem [shape: f32[32,32], index: 0, kind: input, shape index: {}]   ;;  %s2727_s1 = inlined_call_operand.vmem [shape: f32[32,32], index: 1, kind: input, shape index: {}]   ;;  %s2728_s2 = inlined_call_operand.vmem [shape: f32[1,32], index: 2, kind: input, shape index: {}]   ;;  %s2729_s3 = inlined_call_operand.vmem [shape: f32[32,64], index: 3, kind: input, shape index: {}]   ;;  %s2730_s4 = inlined_call_operand.vmem [shape: f32[32,128], index: 4, kind: input, shape index: {}]   ;;  %s2731_s5 = inlined_call_operand.vmem [shape: f32[4,16], index: 5, kind: input, shape index: {}]   ;;  %s2732_s6 = inlined_call_operand.vmem [shape: f32[4,16], index: 6, kind: input, shape index: {}]   ;;  %s2733_s7 = inlined_call_operand.vmem [shape: f32[64,32], index: 7, kind: input, shape index: {}]   ;;  %s2734_s8 = inlined_call_operand.vmem [shape: f32[32,32], index: 8, kind: output, shape index: {}]  }
   0x1 LB: > { %s1932_s28 = sadd.s32 4294967295, %s2346_s27   ;;  %p1936_p0 = scmp.ge.s32.totalorder %s2346_s27, 1  ;;  %s2346_s27 = sphi %s2400_s27, %s18_s27  }
   0x2   : > { %p274_p1 = scmp.lt.s32.totalorder %s2346_s27, 3 }
   0x4   : > { %p275_p2 = pnand %p1936_p0, %p274_p1 }
   0x5   : > { %s1937_s29 = sshll.u32 (!%p275_p2), %s1932_s28, 1  ;;  %vm336_vm0 = vcmask (!%p275_p2), 261120   ;;  %v407_v12 = vld [vmem:[%s2729_s3] sm:$0xff] (!%p275_p2)  ;;  %v408_v13 = vld [vmem:[%s2729_s3 + $0x8] sm:$0xff] (!%p275_p2)  ;;  %v409_v17 = vld [vmem:[%s2729_s3 + $0x10] sm:$0xff] (!%p275_p2)  ;;  %vm589_vm9 = vcmask (!%p275_p2), 130048  }
   0x6   : > { %278 = sbr.rel (%p275_p2) target bundleno = 2279 (0x8e7), region = 52  ;;  %p314_p3 = scmp.lt.s32.totalorder (!%p275_p2), %s1937_s29, 3  ;;  %v492_v14 = vld [vmem:[%s2730_s4] sm:$0xff] (!%p275_p2)  ;;  %v2148_v15 = vpack.c.bf16 (!%p275_p2), %v408_v13, %v407_v12  ;;  %v493_v16 = vld [vmem:[%s2730_s4 + $0x8] sm:$0xff] (!%p275_p2)  ;;  %v410_v18 = vld [vmem:[%s2729_s3 + $0x18] sm:$0xff] (!%p275_p2) }
   0x7   : > { %v2156_v19 = vpack.c.bf16 (!%p275_p2), %v493_v16, %v492_v14  ;;  %v2152_v20 = vpack.c.bf16 (!%p275_p2), %v410_v18, %v409_v17  ;;  %v494_v21 = vld [vmem:[%s2730_s4 + $0x10] sm:$0xff] (!%p275_p2)  ;;  %v495_v22 = vld [vmem:[%s2730_s4 + $0x18] sm:$0xff] (!%p275_p2)  ;;  %v1943_v55 = vld [vmem:[%s2728_s2] ss:$0 sm:$0xff] (!%p275_p2)  ;;  %s2348_s15 = smov (!%p275_p2), 112   ;;  %s2349_s16 = smov (!%p275_p2), 64  }
   0x8   : > { %2149 = vmatprep.subr.bf16.mxu0 (!%p275_p2), %v2148_v15  ;;  %v2160_v23 = vpack.c.bf16 (!%p275_p2), %v495_v22, %v494_v21  ;;  %vm2486_vm10 = vmpackc.low (!%p275_p2), %vm589_vm9, %vm589_vm9  ;;  %s2350_s17 = smov (!%p275_p2), 16   ;;  %s2351_s18 = smov (!%p275_p2), 48   ;;  %v581_v13 = vld [vmem:[%s2733_s7 + $0x10] sm:$0xff] (!%p275_p2) }
   0x9   : > { %2157 = vmatprep.subr.bf16.mxu1 (!%p275_p2), %v2156_v19  ;;  %2151 = vmatpush3.bf16.msra.mxu0 (!%p275_p2), %v2148_v15  ;;  %s2352_s19 = smov (!%p275_p2), 96   ;;  %s2353_s20 = smov (!%p275_p2), 32  }
   0xa   : > { %2159 = vmatpush3.bf16.msra.mxu1 (!%p275_p2), %v2156_v19  ;;  %2153 = vmatprep.subr.bf16.mxu0 (!%p275_p2), %v2152_v20  ;;  %s2354_s21 = smov (!%p275_p2), 80  }
   0xb   : > { %2161 = vmatprep.subr.bf16.mxu1 (!%p275_p2), %v2160_v23 }
   0xd   : > { %s2738_s29 = smov (!%p314_p3, %s1937_s29), 3  ;;  %2155 = vmatpush3.bf16.msra.mxu0 %v2152_v20 }
   0xe   : > { %s2408_s30 = sshll.u32 %s2738_s29, 3  ;;  %2163 = vmatpush3.bf16.msra.mxu1 %v2160_v23 }
   0xf   : > { %s323_s11 = scalar_lea.vmem %s2727_s1, %s2408_s30  ;;  %s317_s14 = scalar_lea.vmem %s2726_s0, %s2408_s30 }
  0x10   : > { %v2418_v0 = vld [vmem:[%s323_s11] sm:$0xff]  ;;  %v2422_v2 = vld [vmem:[%s323_s11 + $0x8] sm:$0xff]  ;;  %s329_s22 = scalar_lea.vmem %s2734_s8, %s2408_s30 }
  0x11   : > { %v2420_v1 = vld [vmem:[%s317_s14] sm:$0xff]  ;;  %v375_v3 = vmul.f32 %v2418_v0, %v2418_v0  ;;  %v376_v5 = vmul.f32 %v2422_v2, %v2422_v2  ;;  %v2430_v6 = vld [vmem:[%s317_s14 + $0x8] sm:$0xff] }
  0x12   : > { %v334_v4 = vmul.f32 %v2420_v1, %v2420_v1  ;;  %v335_v7 = vmul.f32 %v2430_v6, %v2430_v6 }
  0x13   : > { %v377_v8 = vsel %vm336_vm0, %v375_v3, 0.0  ;;  %v380_v10 = vsel %vm336_vm0, %v376_v5, 0.0 }
  0x14   : > { %v337_v9 = vsel %vm336_vm0, %v334_v4, 0.0  ;;  %378 = vadd.xlane.f32.xlu0 %v377_v8  ;;  %v340_v11 = vsel %vm336_vm0, %v335_v7, 0.0 }
  0x15   : > { %338 = vadd.xlane.f32.xlu1 %v337_v9 }
  0x18   : > { %381 = vadd.xlane.f32.xlu0 %v380_v10 }
  0x19   : > { %341 = vadd.xlane.f32.xlu1 %v340_v11 }
  0xa1   : > { %v379_v24 = vpop.xlane.xlu0 %378 }
  0xa2   : > { %v339_v25 = vpop.xlane.xlu1 %338  ;;  %2276 = vrsqrt.f32 %v379_v24  ;;  %vm385_vm1 = vcmp.eq.f32.partialorder %v379_v24, inf  ;;  %v388_v31 = vand.u32 2147483648, %v379_v24  ;;  %vm387_vm2 = vcmp.eq.f32.partialorder %v379_v24, 0.0 }
  0xa3   : > { %2278 = vrsqrt.f32 %v339_v25  ;;  %vm345_vm3 = vcmp.eq.f32.partialorder %v339_v25, inf  ;;  %v348_v34 = vand.u32 2147483648, %v339_v25  ;;  %vm347_vm4 = vcmp.eq.f32.partialorder %v339_v25, 0.0 }
  0xa5   : > { %v382_v26 = vpop.xlane.xlu0 %381 }
  0xa6   : > { %v342_v27 = vpop.xlane.xlu1 %341  ;;  %2280 = vrsqrt.f32 %v382_v26  ;;  %vm392_vm5 = vcmp.eq.f32.partialorder %v382_v26, inf  ;;  %vm394_vm6 = vcmp.eq.f32.partialorder %v382_v26, 0.0  ;;  %v395_v43 = vand.u32 2147483648, %v382_v26 }
  0xa7   : > { %2282 = vrsqrt.f32 %v342_v27  ;;  %vm352_vm7 = vcmp.eq.f32.partialorder %v342_v27, inf  ;;  %v355_v46 = vand.u32 2147483648, %v342_v27  ;;  %vm354_vm8 = vcmp.eq.f32.partialorder %v342_v27, 0.0 }
  0xac   : > { %v2277_v28 = vpop.eup %2276 }
  0xad   : > { %v2279_v29 = vpop.eup %2278  ;;  %v384_v30 = vmul.f32 %v2277_v28, %v379_v24 }
  0xae   : > { %v344_v32 = vmul.f32 %v2279_v29, %v339_v25 }
  0xaf   : > { %v386_v33 = vsel %vm385_vm1, %v379_v24, %v384_v30 }
  0xb0   : > { %v2281_v35 = vpop.eup %2280  ;;  %v389_v36 = vsel %vm387_vm2, %v388_v31, %v386_v33  ;;  %v346_v37 = vsel %vm345_vm3, %v339_v25, %v344_v32 }
  0xb1   : > { %v2283_v38 = vpop.eup %2282  ;;  %v397_v39 = vmax.f32 %v389_v36, 1e-12  ;;  %v349_v40 = vsel %vm347_vm4, %v348_v34, %v346_v37  ;;  %v391_v41 = vmul.f32 %v2281_v35, %v382_v26 }
  0xb2   : > { %v357_v42 = vmax.f32 %v349_v40, 1e-12  ;;  %v351_v44 = vmul.f32 %v2283_v38, %v342_v27 }
  0xb3   : > { %2284 = vrcp.f32 %v397_v39  ;;  %v393_v45 = vsel %vm392_vm5, %v382_v26, %v391_v41 }
  0xb4   : > { %2286 = vrcp.f32 %v357_v42  ;;  %v396_v47 = vsel %vm394_vm6, %v395_v43, %v393_v45  ;;  %v353_v48 = vsel %vm352_vm7, %v342_v27, %v351_v44 }
  0xb5   : > { %v398_v49 = vmax.f32 %v396_v47, 1e-12  ;;  %v356_v50 = vsel %vm354_vm8, %v355_v46, %v353_v48 }
  0xb6   : > { %v358_v51 = vmax.f32 %v356_v50, 1e-12 }
  0xb7   : > { %2288 = vrcp.f32 %v398_v49 }
  0xb8   : > { %2290 = vrcp.f32 %v358_v51 }
  0xbd   : > { %v2285_v52 = vpop.eup %2284 }
  0xbe   : > { %v2287_v53 = vpop.eup %2286  ;;  %v400_v54 = vmul.f32 %v2285_v52, %v2418_v0 }
  0xbf   : > { %v360_v56 = vmul.f32 %v2287_v53, %v2420_v1  ;;  %v677_v1 = vlaneseq }
  0xc0   : > { %v403_v57 = vmul.f32 5.656854, %v400_v54 }
  0xc1   : > { %v2289_v58 = vpop.eup %2288  ;;  %v363_v59 = vmul.f32 5.656854, %v360_v56  ;;  %v2473_v8 = vshrl.u32 %v677_v1, 7 }
  0xc2   : > { %v2291_v60 = vpop.eup %2290  ;;  %v405_v61 = vmul.f32 %v1943_v55, %v403_v57  ;;  %v402_v62 = vmul.f32 %v2289_v58, %v2422_v2 }
  0xc3   : > { %v371_v63 = vmul.f32 %v1943_v55, %v363_v59  ;;  %v362_v3 = vmul.f32 %v2291_v60, %v2430_v6  ;;  %v679_v2 = vsub.s32 0, %v2473_v8  ;;  %v2479_v6 = vld [vmem:[%s2731_s5] sm:$0xf]  ;;  %v907_v23 = vsub.s32 1, %v2473_v8 }
  0xc4   : > { %2061 = vmatprep.mubr.msk.f32.mxu1 %vm336_vm0, %v405_v61  ;;  %v404_v4 = vmul.f32 5.656854, %v402_v62  ;;  %v1309_v58 = vsub.s32 2, %v2473_v8 }
  0xc5   : > { %2050 = vmatprep.mubr.msk.f32.mxu0 %vm336_vm0, %v371_v63  ;;  %v364_v0 = vmul.f32 5.656854, %v362_v3  ;;  %v680_v10 = vrot.slane %v2479_v6, %v679_v2  ;;  %v908_v24 = vrot.slane %v2479_v6, %v907_v23 }
  0xc6   : > { %v406_v5 = vmul.f32 %v1943_v55, %v404_v4  ;;  %v1310_v59 = vrot.slane %v2479_v6, %v1309_v58 }
  0xc7   : > { %v372_v7 = vmul.f32 %v1943_v55, %v364_v0 }
  0xc8   : > { %2062 = vmatmul.mubr.msk.f32.vlgmr.msra.gmra.mrb[0].mxu1 %vm336_vm0, %v406_v5 }
  0xc9   : > { %2051 = vmatmul.mubr.msk.f32.vlgmr.msra.gmra.mrb[0].mxu0 %vm336_vm0, %v372_v7 }
 0x19b   : > { %v2063_v9 = vpop.f32.mrb[0].mxu1 }
 0x19c   : > { %v2052_v11 = vpop.f32.mrb[0].mxu0  ;;  %v568_v12 = vpop.f32.mrb[1].mxu1 }
 0x19d   : > { %v2490_v14 = vmul.f32 0.25, %v2052_v11  ;;  %v483_v15 = vpop.f32.mrb[1].mxu0  ;;  %v2164_v16 = vpack.c.bf16 %v2063_v9, %v568_v12  ;;  %v2492_v17 = vpack.i.bf16 %v2063_v9, %v568_v12  ;;  %v2571_v12 = vld [vmem:[%s2732_s6] sm:$0xf] }
 0x19e   : > { %v2494_v18 = vmul.f32 0.25, %v483_v15  ;;  %v720_v15 = vrot.slane %v2571_v12, %v679_v2 }
 0x19f   : > { %2166 = vmatprep.subr.msk.bf16.mxu0 %vm2486_vm10, %v2164_v16  ;;  %2247 = vrot.lane.b32.xlu1 %v2492_v17, %s2348_s15  ;;  %v682_v19 = vmul.f32 %v680_v10, %v2490_v14 }
 0x1a0   : > { %2068 = vmatprep.mubr.msk.f32.mxu0 %vm589_vm9, %v2494_v18  ;;  %2169 = vmatpush3.bf16.xpose.msk.msra.mxu0 %vm2486_vm10, %v2164_v16  ;;  %v681_v21 = vmul.f32 %v680_v10, %v2494_v18 }
 0x1a1   : > { %v686_v20 = vsel %vm589_vm9, %v682_v19, 0.0 }
 0x1a2   : > { %687 = vadd.xlane.f32.xlu0 %v686_v20  ;;  %v683_v22 = vsel %vm589_vm9, %v681_v21, 0.0 }
 0x1a6   : > { %684 = vadd.xlane.f32.xlu0 %v683_v22 }
 0x1a7   : > { %2069 = vmatmul.mubr.msk.f32.vlgmr.msra.gmra.mrb[2].mxu0 %vm589_vm9, %v2490_v14 }
 0x1bc   : > { %2242 = vrot.lane.b32.xlu0 %v2492_v17, %s2349_s16 }
 0x1c0   : > { %910 = vrot.lane.b32.xlu0 %v908_v24, %s2350_s17 }
 0x211   : > { %v2248_v27 = vpop.permute.xlu1 %2247 }
 0x212   : > { %v2250_v29 = vunpack.i.h.bf16 %v2248_v27  ;;  %v2249_v30 = vunpack.i.l.bf16 %v2248_v27 }
 0x214   : > { %v2174_v35 = vpack.c.bf16 %v2250_v29, %v2249_v30 }
 0x22f   : > { %v2516_v25 = vpop.xlane.xlu0 %687 }
 0x233   : > { %v2518_v26 = vpop.xlane.xlu0 %684 }
 0x237   : > { %v2243_v28 = vpop.permute.xlu0 %2242 }
 0x238   : > { %v2245_v31 = vunpack.i.h.bf16 %v2243_v28  ;;  %v2244_v32 = vunpack.i.l.bf16 %v2243_v28 }
 0x23a   : > { %v2170_v33 = vpack.c.bf16 %v2245_v31, %v2244_v32 }
 0x23b   : > { %v911_v34 = vpop.permute.xlu0 %910 }
 0x23c   : > { %v914_v36 = vmul.f32 %v911_v34, %v2490_v14  ;;  %2171 = vmatprep.subr.bf16.mxu1 %v2170_v33  ;;  %v913_v41 = vmul.f32 %v911_v34, %v2494_v18 }
 0x23d   : > { %2173 = vmatpush3.bf16.msra.mxu1 %v2170_v33 }
 0x23e   : > { %919 = vrot.lane.b32.xlu0 %v914_v36, %s2348_s15  ;;  %2176 = vmatprep.subr.msk.bf16.mxu1 %vm2486_vm10, %v2174_v35 }
 0x27a   : > { %v2070_v37 = vpop.f32.mrb[2].mxu0 }
 0x27b   : > { %v668_v38 = vpop.f32.mrb[3].mxu0  ;;  %v692_v39 = vsel %vm589_vm9, %v2070_v37, -inf }
 0x27c   : > { %693 = vmax.xlane.f32.xlu1 %v692_v39  ;;  %v689_v40 = vsel %vm589_vm9, %v668_v38, -inf }
 0x280   : > { %690 = vmax.xlane.f32.xlu1 %v689_v40 }
 0x291   : > { %814 = vrot.lane.b32.xlu1 %v2494_v18, %s2348_s15 }
 0x295   : > { %816 = vrot.lane.b32.xlu1 %v2490_v14, %s2348_s15 }
 0x299   : > { %917 = vrot.lane.b32.xlu1 %v913_v41, %s2348_s15 }
 0x2b0   : > { %v920_v42 = vpop.permute.xlu0 %919 }
 0x2b1   : > { %v926_v43 = vsel %vm589_vm9, %v920_v42, 0.0 }
 0x2b2   : > { %927 = vadd.xlane.f32.xlu0 %v926_v43 }
 0x309   : > { %v694_v44 = vpop.xlane.xlu1 %693 }
 0x30a   : > { %v696_v45 = vmax.f32 %v694_v44, %v2516_v25 }
 0x30c   : > { %v698_v46 = vsub.f32 %v2070_v37, %v696_v45  ;;  %v704_v1 = vsub.f32 %v2516_v25, %v696_v45 }
 0x30d   : > { %v691_v47 = vpop.xlane.xlu1 %690 }
 0x30e   : > { %v695_v48 = vmax.f32 %v691_v47, %v2518_v26  ;;  %v701_v50 = vmul.f32 1.442695, %v698_v46  ;;  %v707_v10 = vmul.f32 1.442695, %v704_v1  ;;  %v579_v1 = vld [vmem:[%s2733_s7] sm:$0xff] }
 0x310   : > { %v697_v49 = vsub.f32 %v668_v38, %v695_v48  ;;  %v703_v9 = vsub.f32 %v2518_v26, %v695_v48 }
 0x311   : > { %v815_v51 = vpop.permute.xlu1 %814 }
 0x312   : > { %v699_v52 = vmul.f32 1.442695, %v697_v49  ;;  %v705_v11 = vmul.f32 1.442695, %v703_v9  ;;  %v580_v9 = vld [vmem:[%s2733_s7 + $0x8] sm:$0xff] }
 0x314   : > { %2292 = vpow2.f32 %v699_v52 }
 0x315   : > { %2294 = vpow2.f32 %v701_v50  ;;  %v817_v53 = vpop.permute.xlu1 %816 }
 0x316   : > { %2296 = vpow2.f32 %v707_v10  ;;  %v2188_v10 = vpack.c.bf16 %v580_v9, %v579_v1 }
 0x317   : > { %2298 = vpow2.f32 %v705_v11 }
 0x319   : > { %v918_v54 = vpop.permute.xlu1 %917 }
 0x31a   : > { %v923_v55 = vsel %vm589_vm9, %v918_v54, 0.0 }
 0x31b   : > { %924 = vadd.xlane.f32.xlu1 %v923_v55 }
 0x31e   : > { %v2293_v56 = vpop.eup %2292 }
 0x31f   : > { %v2536_v57 = vpop.eup %2294  ;;  %2075 = vmatprep.mubr.msk.f32.mxu1 %vm589_vm9, %v2293_v56  ;;  %v709_v33 = vsel %vm589_vm9, %v2293_v56, 0.0 }
 0x320   : > { %2076 = vmatmul.mubr.msk.f32.vlgmr.msra.gmra.mrb[2].mxu1 %vm589_vm9, %v2536_v57  ;;  %v2576_v16 = vpop.eup %2296  ;;  %v712_v56 = vsel %vm589_vm9, %v2536_v57, 0.0 }
 0x321   : > { %2179 = vmatpush3.bf16.xpose.msk.msra.mxu1 %vm2486_vm10, %v2174_v35  ;;  %2082 = vmatprep.mubr.msk.f32.mxu1 %vm589_vm9, %v815_v51  ;;  %v2578_v19 = vpop.eup %2298  ;;  %v722_v20 = vmul.f32 %v2576_v16, %v720_v15 }
 0x322   : > { %v721_v22 = vmul.f32 %v2578_v19, %v720_v15 }
 0x328   : > { %2083 = vmatmul.mubr.msk.f32.vlgmr.msra.gmra.mrb[4].mxu1 %vm589_vm9, %v817_v53 }
 0x32c   : > { %2252 = vrot.lane.b32.xlu1 %v2492_v17, %s2351_s18 }
 0x330   : > { %1216 = vrot.lane.b32.xlu1 %v2494_v18, %s2352_s19 }
 0x334   : > { %1218 = vrot.lane.b32.xlu1 %v2490_v14, %s2352_s19 }
 0x338   : > { %1312 = vrot.lane.b32.xlu1 %v1310_v59, %s2353_s20 }
 0x33f   : > { %v2598_v34 = vpop.xlane.xlu0 %927 }
 0x3a8   : > { %v2556_v60 = vpop.xlane.xlu1 %924 }
 0x3ac   : > { %v2253_v61 = vpop.permute.xlu1 %2252 }
 0x3ad   : > { %v2255_v62 = vunpack.i.h.bf16 %v2253_v61  ;;  %v2254_v63 = vunpack.i.l.bf16 %v2253_v61 }
 0x3af   : > { %v2180_v3 = vpack.c.bf16 %v2255_v62, %v2254_v63 }
 0x3b0   : > { %v2558_v4 = vpop.permute.xlu1 %1216 }
 0x3b1   : > { %2181 = vmatprep.subr.bf16.mxu1 %v2180_v3 }
 0x3b2   : > { %2183 = vmatpush3.bf16.msra.mxu1 %v2180_v3 }
 0x3b4   : > { %v2560_v0 = vpop.permute.xlu1 %1218 }
 0x3b8   : > { %v1313_v5 = vpop.permute.xlu1 %1312 }
 0x3b9   : > { %v1315_v7 = vmul.f32 %v1313_v5, %v2494_v18  ;;  %v1316_v30 = vmul.f32 %v1313_v5, %v2490_v14 }
 0x3bb   : > { %1319 = vrot.lane.b32.xlu1 %v1315_v7, %s2352_s19 }
 0x3bf   : > { %1539 = vrot.lane.b32.xlu1 %v2494_v18, %s2354_s21 }
 0x3f3   : > { %v2077_v21 = vpop.f32.mrb[2].mxu1 }
 0x3f4   : > { %v2582_v24 = vadd.f32 %v2077_v21, %v722_v20  ;;  %v801_v25 = vpop.f32.mrb[3].mxu1 }
 0x3f5   : > { %v2584_v26 = vadd.f32 %v801_v25, %v721_v22 }
 0x3fb   : > { %v2084_v27 = vpop.f32.mrb[4].mxu1 }
 0x3fc   : > { %v896_v28 = vpop.f32.mrb[5].mxu1  ;;  %v932_v29 = vsel %vm589_vm9, %v2084_v27, -inf }
 0x3fd   : > { %933 = vmax.xlane.f32.xlu0 %v932_v29  ;;  %v929_v2 = vsel %vm589_vm9, %v896_v28, -inf }
 0x401   : > { %930 = vmax.xlane.f32.xlu0 %v929_v2 }
 0x417   : > { %2257 = vrot.lane.b32.xlu0 %v2492_v17, %s2352_s19 }
 0x41b   : > { %2262 = vrot.lane.b32.xlu0 %v2492_v17, %s2354_s21 }
 0x41f   : > { %1321 = vrot.lane.b32.xlu0 %v1316_v30, %s2352_s19 }
 0x423   : > { %1541 = vrot.lane.b32.xlu0 %v2490_v14, %s2354_s21 }
 0x42d   : > { %v1320_v31 = vpop.permute.xlu1 %1319 }
 0x42e   : > { %v1325_v32 = vsel %vm589_vm9, %v1320_v31, 0.0 }
 0x42f   : > { %1326 = vadd.xlane.f32.xlu1 %v1325_v32 }
 0x431   : > { %v1540_v62 = vpop.permute.xlu1 %1539 }
 0x442   : > { %710 = vadd.xlane.f32.xlu0 %v709_v33 }
 0x48a   : > { %v934_v35 = vpop.xlane.xlu0 %933 }
 0x48b   : > { %v2601_v36 = vmax.f32 %v934_v35, %v2598_v34 }
 0x48d   : > { %v938_v37 = vsub.f32 %v2084_v27, %v2601_v36  ;;  %v944_v38 = vsub.f32 %v2598_v34, %v2601_v36 }
 0x48e   : > { %v931_v39 = vpop.xlane.xlu0 %930 }
 0x48f   : > { %v941_v40 = vmul.f32 1.442695, %v938_v37  ;;  %v935_v41 = vmax.f32 %v931_v39, %v2556_v60  ;;  %v947_v25 = vmul.f32 1.442695, %v944_v38 }
 0x491   : > { %2300 = vpow2.f32 %v941_v40  ;;  %v937_v42 = vsub.f32 %v896_v28, %v935_v41  ;;  %v943_v22 = vsub.f32 %v2556_v60, %v935_v41 }
 0x492   : > { %v2258_v43 = vpop.permute.xlu0 %2257 }
 0x493   : > { %v939_v44 = vmul.f32 1.442695, %v937_v42  ;;  %v2260_v45 = vunpack.i.h.bf16 %v2258_v43  ;;  %v2259_v46 = vunpack.i.l.bf16 %v2258_v43 }
 0x495   : > { %2302 = vpow2.f32 %v939_v44  ;;  %v2192_v47 = vpack.c.bf16 %v2260_v45, %v2259_v46 }
 0x496   : > { %v2263_v48 = vpop.permute.xlu0 %2262 }
 0x497   : > { %2194 = vmatprep.subr.msk.bf16.mxu1 %vm2486_vm10, %v2192_v47  ;;  %v2265_v53 = vunpack.i.h.bf16 %v2263_v48  ;;  %v2264_v54 = vunpack.i.l.bf16 %v2263_v48 }
 0x499   : > { %v2206_v61 = vpack.c.bf16 %v2265_v53, %v2264_v54 }
 0x49a   : > { %v1322_v49 = vpop.permute.xlu0 %1321 }
 0x49b   : > { %v2301_v50 = vpop.eup %2300  ;;  %v1328_v51 = vsel %vm589_vm9, %v1322_v49, 0.0 }
 0x49c   : > { %1329 = vadd.xlane.f32.xlu1 %v1328_v51  ;;  %v952_v52 = vsel %vm589_vm9, %v2301_v50, 0.0 }
 0x49d   : > { %953 = vadd.xlane.f32.xlu0 %v952_v52 }
 0x49e   : > { %v1542_v57 = vpop.permute.xlu0 %1541 }
 0x49f   : > { %v2303_v55 = vpop.eup %2302 }
 0x4a0   : > { %2089 = vmatprep.mubr.msk.f32.mxu1 %vm589_vm9, %v2303_v55  ;;  %v949_v59 = vsel %vm589_vm9, %v2303_v55, 0.0 }
 0x4a1   : > { %713 = vadd.xlane.f32.xlu0 %v712_v56  ;;  %2090 = vmatmul.mubr.msk.f32.vlgmr.msra.gmra.mrb[6].mxu1 %vm589_vm9, %v2301_v50  ;;  %v1632_v50 = vsub.s32 3, %v2473_v8 }
 0x4a2   : > { %950 = vadd.xlane.f32.xlu1 %v949_v59  ;;  %2197 = vmatpush3.bf16.xpose.msk.msra.mxu1 %vm2486_vm10, %v2192_v47 }
 0x4a3   : > { %2110 = vmatprep.mubr.msk.f32.mxu1 %vm589_vm9, %v2558_v4  ;;  %2208 = vmatprep.subr.msk.bf16.mxu1 %vm2486_vm10, %v2206_v61  ;;  %v1633_v51 = vrot.slane %v2479_v6, %v1632_v50 }
 0x4a9   : > { %2111 = vmatmul.mubr.msk.f32.vlgmr.msra.gmra.mrb[8].mxu1 %vm589_vm9, %v2560_v0  ;;  %v582_v0 = vld [vmem:[%s2733_s7 + $0x18] sm:$0xff] }
 0x4aa   : > { %2211 = vmatpush3.bf16.xpose.msk.msra.mxu1 %vm2486_vm10, %v2206_v61  ;;  %2131 = vmatprep.mubr.msk.f32.mxu1 %vm589_vm9, %v1540_v62  ;;  %v2184_v7 = vpack.c.bf16 %v582_v0, %v581_v13 }
 0x4ac   : > { %2185 = vmatprep.subr.bf16.mxu0 %v2184_v7 }
 0x4ad   : > { %2187 = vmatpush3.bf16.msra.mxu0 %v2184_v7 }
 0x4ae   : > { %2189 = vmatprep.subr.bf16.mxu0 %v2188_v10 }
 0x4b1   : > { %2132 = vmatmul.mubr.msk.f32.vlgmr.msra.gmra.mrb[10].mxu1 %vm589_vm9, %v1542_v57 }
 0x4b3   : > { %2267 = vrot.lane.b32.xlu1 %v2492_v17, %s2353_s20 }
 0x4bc   : > { %v2647_v27 = vpop.xlane.xlu1 %1326 }
 0x4cf   : > { %v711_v63 = vpop.xlane.xlu0 %710 }
 0x4d0   : > { %v715_v3 = vadd.f32 %v2578_v19, %v711_v63 }
 0x4d2   : > { %2304 = vrcp.f32 %v715_v3 }
 0x4dc   : > { %v2305_v4 = vpop.eup %2304 }
 0x4dd   : > { %v811_v5 = vmul.f32 %v2305_v4, %v2584_v26  ;;  %v945_v26 = vmul.f32 1.442695, %v943_v22 }
 0x529   : > { %v2649_v28 = vpop.xlane.xlu1 %1329 }
 0x52a   : > { %v954_v11 = vpop.xlane.xlu0 %953 }
 0x52e   : > { %v714_v15 = vpop.xlane.xlu0 %713 }
 0x52f   : > { %v716_v19 = vadd.f32 %v2576_v16, %v714_v15  ;;  %v951_v29 = vpop.xlane.xlu1 %950  ;;  %v960_v16 = vrot.slane %v2571_v12, %v907_v23 }
 0x531   : > { %2306 = vrcp.f32 %v716_v19 }
 0x532   : > { %2308 = vpow2.f32 %v947_v25  ;;  %v1362_v25 = vrot.slane %v2571_v12, %v1309_v58 }
 0x533   : > { %2310 = vpow2.f32 %v945_v26 }
 0x53b   : > { %v2307_v20 = vpop.eup %2306 }
 0x53c   : > { %v813_v21 = vmul.f32 %v2307_v20, %v2582_v24  ;;  %v2309_v2 = vpop.eup %2308  ;;  %v2268_v24 = vpop.permute.xlu1 %2267 }
 0x53d   : > { %v2311_v30 = vpop.eup %2310  ;;  %v956_v31 = vadd.f32 %v2309_v2, %v954_v11  ;;  %v962_v60 = vmul.f32 %v2309_v2, %v960_v16  ;;  %v2270_v40 = vunpack.i.h.bf16 %v2268_v24  ;;  %v2269_v41 = vunpack.i.l.bf16 %v2268_v24  ;;  %v584_v11 = vld [vmem:[%s2733_s7 + $0x28] sm:$0xff] }
 0x53e   : > { %v955_v32 = vadd.f32 %v2311_v30, %v951_v29  ;;  %v961_v34 = vmul.f32 %v2311_v30, %v960_v16 }
 0x53f   : > { %2312 = vrcp.f32 %v956_v31  ;;  %v2198_v44 = vpack.c.bf16 %v2270_v40, %v2269_v41 }
 0x540   : > { %2314 = vrcp.f32 %v955_v32 }
 0x549   : > { %v2313_v37 = vpop.eup %2312 }
 0x54a   : > { %v2315_v39 = vpop.eup %2314 }
 0x574   : > { %v2091_v33 = vpop.f32.mrb[6].mxu1 }
 0x575   : > { %v1047_v35 = vadd.f32 %v2091_v33, %v962_v60  ;;  %v1041_v36 = vpop.f32.mrb[7].mxu1 }
 0x576   : > { %v1042_v38 = vadd.f32 %v1041_v36, %v961_v34 }
 0x577   : > { %v1053_v42 = vmul.f32 %v2313_v37, %v1047_v35 }
 0x578   : > { %v1051_v43 = vmul.f32 %v2315_v39, %v1042_v38 }
 0x57a   : > { %2096 = vmatprep.mubr.msk.f32.mxu0 %vm589_vm9, %v1051_v43 }
 0x57b   : > { %2097 = vmatmul.mubr.msk.f32.vlgmr.msra.gmra.mrb[4].mxu0 %vm589_vm9, %v1053_v42 }
 0x57c   : > { %2191 = vmatpush3.bf16.msra.mxu0 %v2188_v10  ;;  %v2112_v23 = vpop.f32.mrb[8].mxu1  ;;  %2103 = vmatprep.mubr.msk.f32.mxu0 %vm589_vm9, %v811_v5  ;;  %v583_v10 = vld [vmem:[%s2733_s7 + $0x20] sm:$0xff] }
 0x57d   : > { %v1298_v45 = vpop.f32.mrb[9].mxu1  ;;  %2199 = vmatprep.subr.bf16.mxu0 %v2198_v44  ;;  %v1334_v47 = vsel %vm589_vm9, %v2112_v23, -inf  ;;  %v2202_v15 = vpack.c.bf16 %v584_v11, %v583_v10 }
 0x57e   : > { %v1331_v46 = vsel %vm589_vm9, %v1298_v45, -inf }
 0x57f   : > { %1332 = vmax.xlane.f32.xlu0 %v1331_v46 }
 0x583   : > { %1335 = vmax.xlane.f32.xlu0 %v1334_v47  ;;  %2104 = vmatmul.mubr.msk.f32.vlgmr.msra.gmra.mrb[4].mxu0 %vm589_vm9, %v813_v21 }
 0x584   : > { %2201 = vmatpush3.bf16.msra.mxu0 %v2198_v44  ;;  %v2660_v48 = vpop.f32.mrb[10].mxu1 }
 0x585   : > { %v2662_v49 = vpop.f32.mrb[11].mxu1  ;;  %v1657_v9 = vsel %vm589_vm9, %v2660_v48, -inf  ;;  %2203 = vmatprep.subr.bf16.mxu0 %v2202_v15 }
 0x599   : > { %1635 = vrot.lane.b32.xlu0 %v1633_v51, %s2351_s18 }
 0x60c   : > { %v1333_v52 = vpop.xlane.xlu0 %1332 }
 0x60d   : > { %v1337_v53 = vmax.f32 %v1333_v52, %v2647_v27 }
 0x60f   : > { %v1339_v54 = vsub.f32 %v1298_v45, %v1337_v53  ;;  %v1345_v20 = vsub.f32 %v2647_v27, %v1337_v53 }
 0x610   : > { %v1336_v55 = vpop.xlane.xlu0 %1335 }
 0x611   : > { %v1341_v56 = vmul.f32 1.442695, %v1339_v54  ;;  %v1338_v59 = vmax.f32 %v1336_v55, %v2649_v28  ;;  %v1347_v22 = vmul.f32 1.442695, %v1345_v20 }
 0x613   : > { %2316 = vpow2.f32 %v1341_v56  ;;  %v1340_v61 = vsub.f32 %v2112_v23, %v1338_v59  ;;  %v1346_v19 = vsub.f32 %v2649_v28, %v1338_v59  ;;  %v585_v56 = vld [vmem:[%s2733_s7 + $0x30] sm:$0xff]  ;;  %v586_v59 = vld [vmem:[%s2733_s7 + $0x38] sm:$0xff] }
 0x614   : > { %v1636_v62 = vpop.permute.xlu0 %1635 }
 0x615   : > { %v1343_v57 = vmul.f32 1.442695, %v1340_v61  ;;  %v1638_v63 = vmul.f32 %v1636_v62, %v2494_v18  ;;  %v1639_v6 = vmul.f32 %v1636_v62, %v2490_v14  ;;  %v1654_v18 = vsel %vm589_vm9, %v2662_v49, -inf }
 0x616   : > { %v1349_v21 = vmul.f32 1.442695, %v1346_v19  ;;  %v2216_v61 = vpack.c.bf16 %v586_v59, %v585_v56 }
 0x617   : > { %2318 = vpow2.f32 %v1343_v57  ;;  %1642 = vrot.lane.b32.xlu1 %v1638_v63, %s2354_s21 }
 0x618   : > { %2320 = vpow2.f32 %v1349_v21 }
 0x619   : > { %2322 = vpow2.f32 %v1347_v22 }
 0x61b   : > { %1644 = vrot.lane.b32.xlu1 %v1639_v6, %s2354_s21 }
 0x61d   : > { %v2317_v3 = vpop.eup %2316 }
 0x61e   : > { %2117 = vmatprep.mubr.msk.f32.mxu0 %vm589_vm9, %v2317_v3  ;;  %v1351_v1 = vsel %vm589_vm9, %v2317_v3, 0.0 }
 0x621   : > { %v2319_v4 = vpop.eup %2318 }
 0x622   : > { %2118 = vmatmul.mubr.msk.f32.vlgmr.msra.gmra.mrb[6].mxu0 %vm589_vm9, %v2319_v4  ;;  %v1354_v14 = vsel %vm589_vm9, %v2319_v4, 0.0 }
 0x623   : > { %2205 = vmatpush3.bf16.msra.mxu0 %v2202_v15 }
 0x689   : > { %v1643_v5 = vpop.permute.xlu1 %1642 }
 0x68a   : > { %v1648_v13 = vsel %vm589_vm9, %v1643_v5, 0.0 }
 0x68b   : > { %1649 = vadd.xlane.f32.xlu0 %v1648_v13 }
 0x68d   : > { %v1645_v0 = vpop.permute.xlu1 %1644 }
 0x68e   : > { %v1651_v7 = vsel %vm589_vm9, %v1645_v0, 0.0  ;;  %v1685_v0 = vrot.slane %v2571_v12, %v1632_v50 }
 0x68f   : > { %1655 = vmax.xlane.f32.xlu0 %v1654_v18  ;;  %1652 = vadd.xlane.f32.xlu1 %v1651_v7 }
 0x693   : > { %1355 = vadd.xlane.f32.xlu0 %v1354_v14  ;;  %1352 = vadd.xlane.f32.xlu1 %v1351_v1 }
 0x697   : > { %1658 = vmax.xlane.f32.xlu0 %v1657_v9 }
 0x6a4   : > { %2272 = vrot.lane.b32.xlu1 %v2492_v17, %s2350_s17  ;;  %v2321_v17 = vpop.eup %2320 }
 0x6a5   : > { %v2323_v26 = vpop.eup %2322  ;;  %v1364_v29 = vmul.f32 %v2321_v17, %v1362_v25 }
 0x6a6   : > { %v1363_v30 = vmul.f32 %v2323_v26, %v1362_v25 }
 0x6f5   : > { %v2119_v2 = vpop.f32.mrb[6].mxu0 }
 0x6f6   : > { %v1449_v31 = vadd.f32 %v2119_v2, %v1364_v29  ;;  %v1443_v32 = vpop.f32.mrb[7].mxu0 }
 0x6f7   : > { %v1444_v16 = vadd.f32 %v1443_v32, %v1363_v30 }
 0x718   : > { %v1650_v60 = vpop.xlane.xlu0 %1649 }
 0x71c   : > { %v1656_v28 = vpop.xlane.xlu0 %1655  ;;  %v1653_v24 = vpop.xlane.xlu1 %1652 }
 0x71d   : > { %v1660_v27 = vmax.f32 %v1656_v28, %v1650_v60 }
 0x71f   : > { %v1662_v33 = vsub.f32 %v2662_v49, %v1660_v27  ;;  %v1668_v34 = vsub.f32 %v1650_v60, %v1660_v27 }
 0x720   : > { %v1356_v35 = vpop.xlane.xlu0 %1355  ;;  %v1353_v36 = vpop.xlane.xlu1 %1352 }
 0x721   : > { %v1664_v37 = vmul.f32 1.442695, %v1662_v33  ;;  %v1358_v38 = vadd.f32 %v2321_v17, %v1356_v35  ;;  %v1357_v39 = vadd.f32 %v2323_v26, %v1353_v36  ;;  %v1670_v57 = vmul.f32 1.442695, %v1668_v34 }
 0x723   : > { %2324 = vpow2.f32 %v1664_v37 }
 0x724   : > { %v1659_v58 = vpop.xlane.xlu0 %1658  ;;  %v2273_v40 = vpop.permute.xlu1 %2272  ;;  %2326 = vrcp.f32 %v1358_v38 }
 0x725   : > { %v1661_v41 = vmax.f32 %v1659_v58, %v1653_v24  ;;  %v2275_v42 = vunpack.i.h.bf16 %v2273_v40  ;;  %v2274_v43 = vunpack.i.l.bf16 %v2273_v40  ;;  %2328 = vrcp.f32 %v1357_v39 }
 0x727   : > { %v1663_v44 = vsub.f32 %v2660_v48, %v1661_v41  ;;  %v1669_v23 = vsub.f32 %v1653_v24, %v1661_v41  ;;  %v2212_v45 = vpack.c.bf16 %v2275_v42, %v2274_v43 }
 0x729   : > { %v1666_v46 = vmul.f32 1.442695, %v1663_v44  ;;  %2213 = vmatprep.subr.bf16.mxu0 %v2212_v45  ;;  %v1672_v62 = vmul.f32 1.442695, %v1669_v23 }
 0x72b   : > { %2330 = vpow2.f32 %v1666_v46 }
 0x72c   : > { %2332 = vpow2.f32 %v1672_v62 }
 0x72d   : > { %v2325_v47 = vpop.eup %2324  ;;  %2334 = vpow2.f32 %v1670_v57 }
 0x72e   : > { %v1674_v49 = vsel %vm589_vm9, %v2325_v47, 0.0  ;;  %v2327_v51 = vpop.eup %2326 }
 0x72f   : > { %1675 = vadd.xlane.f32.xlu0 %v1674_v49  ;;  %v2329_v52 = vpop.eup %2328  ;;  %v1455_v53 = vmul.f32 %v2327_v51, %v1449_v31 }
 0x730   : > { %v1453_v54 = vmul.f32 %v2329_v52, %v1444_v16 }
 0x732   : > { %2124 = vmatprep.mubr.msk.f32.mxu0 %vm589_vm9, %v1453_v54 }
 0x733   : > { %2125 = vmatmul.mubr.msk.f32.vlgmr.msra.gmra.mrb[4].mxu0 %vm589_vm9, %v1455_v53 }
 0x734   : > { %2215 = vmatpush3.bf16.msra.mxu0 %v2212_v45  ;;  %2138 = vmatprep.mubr.msk.f32.mxu0 %vm589_vm9, %v2325_v47 }
 0x735   : > { %v2331_v55 = vpop.eup %2330  ;;  %2217 = vmatprep.subr.bf16.mxu0 %v2216_v61 }
 0x736   : > { %v1677_v48 = vsel %vm589_vm9, %v2331_v55, 0.0  ;;  %v2333_v3 = vpop.eup %2332 }
 0x737   : > { %1678 = vadd.xlane.f32.xlu0 %v1677_v48  ;;  %2139 = vmatmul.mubr.msk.f32.vlgmr.msra.gmra.mrb[8].mxu0 %vm589_vm9, %v2331_v55  ;;  %v2335_v4 = vpop.eup %2334  ;;  %v1687_v18 = vmul.f32 %v2333_v3, %v1685_v0 }
 0x738   : > { %2219 = vmatpush3.bf16.msra.mxu0 %v2216_v61  ;;  %v1686_v14 = vmul.f32 %v2335_v4, %v1685_v0 }
 0x7bc   : > { %v1676_v63 = vpop.xlane.xlu0 %1675 }
 0x7bd   : > { %v1680_v13 = vadd.f32 %v2335_v4, %v1676_v63 }
 0x7c4   : > { %v1679_v6 = vpop.xlane.xlu0 %1678 }
 0x7c5   : > { %v1681_v5 = vadd.f32 %v2333_v3, %v1679_v6 }
 0x7c7   : > { %2336 = vrcp.f32 %v1681_v5 }
 0x7c8   : > { %2338 = vrcp.f32 %v1680_v13 }
 0x7d1   : > { %v2337_v10 = vpop.eup %2336 }
 0x7d2   : > { %v2339_v15 = vpop.eup %2338 }
 0x80a   : > { %v2140_v7 = vpop.f32.mrb[8].mxu0 }
 0x80b   : > { %v1772_v1 = vadd.f32 %v2140_v7, %v1687_v18  ;;  %v1766_v9 = vpop.f32.mrb[9].mxu0 }
 0x80c   : > { %v1767_v11 = vadd.f32 %v1766_v9, %v1686_v14 }
 0x80d   : > { %v1778_v19 = vmul.f32 %v2337_v10, %v1772_v1 }
 0x80e   : > { %v1776_v20 = vmul.f32 %v2339_v15, %v1767_v11 }
 0x810   : > { %2145 = vmatprep.mubr.msk.f32.mxu0 %vm589_vm9, %v1776_v20 }
 0x811   : > { %2146 = vmatmul.mubr.msk.f32.vlgmr.msra.gmra.mrb[4].mxu0 %vm589_vm9, %v1778_v19 }
 0x8e4   : > { %v2147_v8 = vpop.f32.mrb[4].mxu0 }
 0x8e5   : > { %v1851_v12 = vpop.f32.mrb[5].mxu0  ;;  %1863 = vst.msk [vmem:[%s329_s22 + $0x8] sm:$0xff] %vm336_vm0, %v2147_v8 }
 0x8e6   : > { %1862 = vst.msk [vmem:[%s329_s22] sm:$0xff] %vm336_vm0, %v1851_v12 }
 0x8e7 PF: > { %s18_s27 = sadd.s32 1, %s2346_s27  }
 0x8e8   : > { %p15_p4 = scmp.ge.s32.totalorder %s18_s27, 4  }
 0x8ea   :  { %17 = sbr.rel (!%p15_p4) target bundleno = 1 (0x1), region = 85 }

// kernel: transformer_forward.10
= control target key start
LH: loop header
LB: loop body
LE: loop exit
PB: predicated region body
PF: predicated region fallthrough
CT: control target
= control target key end

     0   :  { %vm42_vm0 = vcmask 261120   ;;  %vm943_vm10 = vcmask 130048   ;;  %s2261_s0 = inlined_call_operand.vmem [shape: f32[128,32], index: 0, kind: input, shape index: {}]   ;;  %s2262_s3 = inlined_call_operand.vmem [shape: f32[32,16], index: 3, kind: input, shape index: {}]   ;;  %s2263_s1 = inlined_call_operand.vmem [shape: f32[1,32], index: 1, kind: input, shape index: {}]   ;;  %s2264_s2 = inlined_call_operand.vmem [shape: f32[1,32], index: 2, kind: input, shape index: {}]   ;;  %s2265_s5 = inlined_call_operand.vmem [shape: f32[16,32], index: 5, kind: input, shape index: {}]   ;;  %s2266_s4 = inlined_call_operand.vmem [shape: f32[1,16], index: 4, kind: input, shape index: {}]   ;;  %s2267_s6 = inlined_call_operand.vmem [shape: f32[1,32], index: 6, kind: input, shape index: {}]   ;;  %s2268_s7 = inlined_call_operand.vmem [shape: f32[128,32], index: 7, kind: output, shape index: {}]  }
   0x1   :  { %v26_v0 = vld [vmem:[%s2261_s0] sm:$0xff]  ;;  %v28_v1 = vld [vmem:[%s2261_s0 + $0x10] sm:$0xff]  ;;  %v27_v2 = vld [vmem:[%s2261_s0 + $0x8] sm:$0xff] }
   0x2   :  { %v43_v3 = vsel %vm42_vm0, %v26_v0, 0.0  ;;  %v49_v4 = vsel %vm42_vm0, %v28_v1, 0.0  ;;  %v29_v5 = vld [vmem:[%s2261_s0 + $0x18] sm:$0xff]  ;;  %v46_v6 = vsel %vm42_vm0, %v27_v2, 0.0  ;;  %v30_v8 = vld [vmem:[%s2261_s0 + $0x20] sm:$0xff]  ;;  %v31_v9 = vld [vmem:[%s2261_s0 + $0x28] sm:$0xff] }
   0x3   :  { %44 = vadd.xlane.f32.xlu0 %v43_v3  ;;  %50 = vadd.xlane.f32.xlu1 %v49_v4  ;;  %v52_v7 = vsel %vm42_vm0, %v29_v5, 0.0  ;;  %v55_v10 = vsel %vm42_vm0, %v30_v8, 0.0  ;;  %v58_v11 = vsel %vm42_vm0, %v31_v9, 0.0  ;;  %v1468_v12 = vld [vmem:[%s2261_s0 + $0x30] sm:$0xff]  ;;  %v1473_v13 = vld [vmem:[%s2261_s0 + $0x38] sm:$0xff]  ;;  %v1482_v16 = vld [vmem:[%s2261_s0 + $0x40] sm:$0xff] }
   0x4   :  { %v61_v14 = vsel %vm42_vm0, %v1468_v12, 0.0  ;;  %v64_v15 = vsel %vm42_vm0, %v1473_v13, 0.0  ;;  %v1487_v17 = vld [vmem:[%s2261_s0 + $0x48] sm:$0xff]  ;;  %v67_v18 = vsel %vm42_vm0, %v1482_v16, 0.0  ;;  %v1496_v20 = vld [vmem:[%s2261_s0 + $0x50] sm:$0xff]  ;;  %v1501_v21 = vld [vmem:[%s2261_s0 + $0x58] sm:$0xff] }
   0x5   :  { %v70_v19 = vsel %vm42_vm0, %v1487_v17, 0.0  ;;  %v73_v22 = vsel %vm42_vm0, %v1496_v20, 0.0  ;;  %v76_v23 = vsel %vm42_vm0, %v1501_v21, 0.0  ;;  %v1510_v24 = vld [vmem:[%s2261_s0 + $0x60] sm:$0xff]  ;;  %v1515_v25 = vld [vmem:[%s2261_s0 + $0x68] sm:$0xff]  ;;  %v1524_v28 = vld [vmem:[%s2261_s0 + $0x70] sm:$0xff] }
   0x6   :  { %v79_v26 = vsel %vm42_vm0, %v1510_v24, 0.0  ;;  %v82_v27 = vsel %vm42_vm0, %v1515_v25, 0.0  ;;  %v1529_v29 = vld [vmem:[%s2261_s0 + $0x78] sm:$0xff]  ;;  %v85_v30 = vsel %vm42_vm0, %v1524_v28, 0.0 }
   0x7   :  { %47 = vadd.xlane.f32.xlu0 %v46_v6  ;;  %53 = vadd.xlane.f32.xlu1 %v52_v7  ;;  %v88_v31 = vsel %vm42_vm0, %v1529_v29, 0.0 }
   0xb   :  { %56 = vadd.xlane.f32.xlu0 %v55_v10  ;;  %59 = vadd.xlane.f32.xlu1 %v58_v11 }
   0xf   :  { %62 = vadd.xlane.f32.xlu0 %v61_v14  ;;  %65 = vadd.xlane.f32.xlu1 %v64_v15 }
  0x13   :  { %68 = vadd.xlane.f32.xlu0 %v67_v18  ;;  %71 = vadd.xlane.f32.xlu1 %v70_v19 }
  0x17   :  { %74 = vadd.xlane.f32.xlu0 %v73_v22  ;;  %77 = vadd.xlane.f32.xlu1 %v76_v23 }
  0x1b   :  { %80 = vadd.xlane.f32.xlu0 %v79_v26  ;;  %83 = vadd.xlane.f32.xlu1 %v82_v27 }
  0x1f   :  { %86 = vadd.xlane.f32.xlu0 %v85_v30  ;;  %89 = vadd.xlane.f32.xlu1 %v88_v31 }
  0x90   :  { %v45_v32 = vpop.xlane.xlu0 %44  ;;  %v51_v33 = vpop.xlane.xlu1 %50 }
  0x91   :  { %v92_v34 = vmul.f32 0.03125, %v45_v32  ;;  %v94_v35 = vmul.f32 0.03125, %v51_v33 }
  0x93   :  { %v1535_v36 = vsub.f32 %v26_v0, %v92_v34  ;;  %v1537_v37 = vsub.f32 %v28_v1, %v94_v35 }
  0x94   :  { %v48_v38 = vpop.xlane.xlu0 %47  ;;  %v54_v39 = vpop.xlane.xlu1 %53 }
  0x95   :  { %v93_v40 = vmul.f32 0.03125, %v48_v38  ;;  %v95_v41 = vmul.f32 0.03125, %v54_v39  ;;  %v124_v42 = vmul.f32 %v1535_v36, %v1535_v36  ;;  %v126_v43 = vmul.f32 %v1537_v37, %v1537_v37 }
  0x97   :  { %v1543_v44 = vsub.f32 %v27_v2, %v93_v40  ;;  %v1545_v45 = vsub.f32 %v29_v5, %v95_v41  ;;  %v140_v46 = vsel %vm42_vm0, %v124_v42, 0.0  ;;  %v146_v49 = vsel %vm42_vm0, %v126_v43, 0.0 }
  0x98   :  { %141 = vadd.xlane.f32.xlu0 %v140_v46  ;;  %v57_v47 = vpop.xlane.xlu0 %56  ;;  %v60_v48 = vpop.xlane.xlu1 %59 }
  0x99   :  { %v96_v50 = vmul.f32 0.03125, %v57_v47  ;;  %v97_v51 = vmul.f32 0.03125, %v60_v48  ;;  %v125_v52 = vmul.f32 %v1543_v44, %v1543_v44  ;;  %v127_v53 = vmul.f32 %v1545_v45, %v1545_v45 }
  0x9b   :  { %v1553_v54 = vsub.f32 %v30_v8, %v96_v50  ;;  %v1555_v55 = vsub.f32 %v31_v9, %v97_v51  ;;  %v143_v56 = vsel %vm42_vm0, %v125_v52, 0.0  ;;  %v149_v59 = vsel %vm42_vm0, %v127_v53, 0.0  ;;  %v299_v53 = vld [vmem:[%s2262_s3 + $0x8] sm:$0xff] }
  0x9c   :  { %147 = vadd.xlane.f32.xlu0 %v146_v49  ;;  %144 = vadd.xlane.f32.xlu1 %v143_v56  ;;  %v63_v57 = vpop.xlane.xlu0 %62  ;;  %v66_v58 = vpop.xlane.xlu1 %65 }
  0x9d   :  { %v98_v60 = vmul.f32 0.03125, %v63_v57  ;;  %v99_v61 = vmul.f32 0.03125, %v66_v58  ;;  %v128_v62 = vmul.f32 %v1553_v54, %v1553_v54  ;;  %v129_v63 = vmul.f32 %v1555_v55, %v1555_v55  ;;  %v300_v57 = vld [vmem:[%s2262_s3 + $0x10] sm:$0xff]  ;;  %v301_v58 = vld [vmem:[%s2262_s3 + $0x18] sm:$0xff] }
  0x9f   :  { %v1564_v0 = vsub.f32 %v1468_v12, %v98_v60  ;;  %v1567_v1 = vsub.f32 %v1473_v13, %v99_v61  ;;  %v152_v2 = vsel %vm42_vm0, %v128_v62, 0.0  ;;  %v155_v5 = vsel %vm42_vm0, %v129_v63, 0.0 }
  0xa0   :  { %150 = vadd.xlane.f32.xlu1 %v149_v59  ;;  %153 = vadd.xlane.f32.xlu0 %v152_v2  ;;  %v69_v3 = vpop.xlane.xlu0 %68  ;;  %v72_v4 = vpop.xlane.xlu1 %71  ;;  %v1295_v59 = vpack.c.bf16 %v301_v58, %v300_v57 }
  0xa1   :  { %v100_v6 = vmul.f32 0.03125, %v69_v3  ;;  %v101_v7 = vmul.f32 0.03125, %v72_v4  ;;  %v130_v8 = vmul.f32 %v1564_v0, %v1564_v0  ;;  %v131_v9 = vmul.f32 %v1567_v1, %v1567_v1 }
  0xa3   :  { %v1576_v10 = vsub.f32 %v1482_v16, %v100_v6  ;;  %v1579_v11 = vsub.f32 %v1487_v17, %v101_v7  ;;  %v158_v12 = vsel %vm42_vm0, %v130_v8, 0.0  ;;  %v161_v15 = vsel %vm42_vm0, %v131_v9, 0.0 }
  0xa4   :  { %156 = vadd.xlane.f32.xlu1 %v155_v5  ;;  %159 = vadd.xlane.f32.xlu0 %v158_v12  ;;  %v75_v13 = vpop.xlane.xlu0 %74  ;;  %v78_v14 = vpop.xlane.xlu1 %77 }
  0xa5   :  { %v102_v18 = vmul.f32 0.03125, %v75_v13  ;;  %v103_v19 = vmul.f32 0.03125, %v78_v14  ;;  %v132_v22 = vmul.f32 %v1576_v10, %v1576_v10  ;;  %v133_v16 = vmul.f32 %v1579_v11, %v1579_v11 }
  0xa7   :  { %v1588_v23 = vsub.f32 %v1496_v20, %v102_v18  ;;  %v1591_v17 = vsub.f32 %v1501_v21, %v103_v19  ;;  %v164_v26 = vsel %vm42_vm0, %v132_v22, 0.0  ;;  %v167_v31 = vsel %vm42_vm0, %v133_v16, 0.0 }
  0xa8   :  { %162 = vadd.xlane.f32.xlu1 %v161_v15  ;;  %165 = vadd.xlane.f32.xlu0 %v164_v26  ;;  %v81_v27 = vpop.xlane.xlu0 %80  ;;  %v84_v30 = vpop.xlane.xlu1 %83 }
  0xa9   :  { %v104_v32 = vmul.f32 0.03125, %v81_v27  ;;  %v105_v33 = vmul.f32 0.03125, %v84_v30  ;;  %v134_v34 = vmul.f32 %v1588_v23, %v1588_v23  ;;  %v135_v20 = vmul.f32 %v1591_v17, %v1591_v17  ;;  %v1640_v30 = vld [vmem:[%s2263_s1] ss:$0 sm:$0xff] }
  0xab   :  { %v1600_v35 = vsub.f32 %v1510_v24, %v104_v32  ;;  %v1603_v21 = vsub.f32 %v1515_v25, %v105_v33  ;;  %v170_v38 = vsel %vm42_vm0, %v134_v34, 0.0  ;;  %v173_v41 = vsel %vm42_vm0, %v135_v20, 0.0 }
  0xac   :  { %168 = vadd.xlane.f32.xlu1 %v167_v31  ;;  %171 = vadd.xlane.f32.xlu0 %v170_v38  ;;  %v87_v39 = vpop.xlane.xlu0 %86  ;;  %v90_v40 = vpop.xlane.xlu1 %89  ;;  %v1646_v38 = vld [vmem:[%s2264_s2] ss:$0 sm:$0xff] }
  0xad   :  { %v106_v42 = vmul.f32 0.03125, %v87_v39  ;;  %v107_v43 = vmul.f32 0.03125, %v90_v40  ;;  %v136_v46 = vmul.f32 %v1600_v35, %v1600_v35  ;;  %v137_v24 = vmul.f32 %v1603_v21, %v1603_v21 }
  0xaf   :  { %v1612_v47 = vsub.f32 %v1524_v28, %v106_v42  ;;  %v1615_v25 = vsub.f32 %v1529_v29, %v107_v43  ;;  %v176_v48 = vsel %vm42_vm0, %v136_v46, 0.0  ;;  %v179_v49 = vsel %vm42_vm0, %v137_v24, 0.0  ;;  %v298_v29 = vld [vmem:[%s2262_s3] sm:$0xff] }
  0xb0   :  { %174 = vadd.xlane.f32.xlu1 %v173_v41  ;;  %177 = vadd.xlane.f32.xlu0 %v176_v48  ;;  %v1291_v56 = vpack.c.bf16 %v299_v53, %v298_v29 }
  0xb1   :  { %v138_v50 = vmul.f32 %v1612_v47, %v1612_v47  ;;  %v139_v51 = vmul.f32 %v1615_v25, %v1615_v25 }
  0xb2   :  { %1292 = vmatprep.subr.bf16.mxu0 %v1291_v56 }
  0xb3   :  { %v182_v52 = vsel %vm42_vm0, %v138_v50, 0.0  ;;  %v185_v28 = vsel %vm42_vm0, %v139_v51, 0.0  ;;  %1294 = vmatpush3.bf16.msra.mxu0 %v1291_v56 }
  0xb4   :  { %180 = vadd.xlane.f32.xlu1 %v179_v49  ;;  %183 = vadd.xlane.f32.xlu0 %v182_v52 }
  0xb5   :  { %1296 = vmatprep.subr.bf16.mxu0 %v1295_v59 }
  0xb7   :  { %1298 = vmatpush3.bf16.msra.mxu0 %v1295_v59 }
  0xb8   :  { %186 = vadd.xlane.f32.xlu1 %v185_v28 }
 0x125   :  { %v142_v60 = vpop.xlane.xlu0 %141 }
 0x126   :  { %v188_v61 = vmul.f32 0.03125, %v142_v60 }
 0x128   :  { %v204_v62 = vadd.f32 1e-05, %v188_v61 }
 0x129   :  { %v145_v63 = vpop.xlane.xlu1 %144  ;;  %v148_v2 = vpop.xlane.xlu0 %147 }
 0x12a   :  { %1304 = vrsqrt.f32 %v204_v62  ;;  %v189_v3 = vmul.f32 0.03125, %v145_v63  ;;  %v190_v4 = vmul.f32 0.03125, %v148_v2 }
 0x12c   :  { %v205_v5 = vadd.f32 1e-05, %v189_v3  ;;  %v206_v6 = vadd.f32 1e-05, %v190_v4 }
 0x12d   :  { %v151_v7 = vpop.xlane.xlu1 %150  ;;  %v154_v8 = vpop.xlane.xlu0 %153 }
 0x12e   :  { %1306 = vrsqrt.f32 %v205_v5  ;;  %v191_v9 = vmul.f32 0.03125, %v151_v7  ;;  %v192_v12 = vmul.f32 0.03125, %v154_v8 }
 0x12f   :  { %1308 = vrsqrt.f32 %v206_v6 }
 0x130   :  { %v207_v13 = vadd.f32 1e-05, %v191_v9  ;;  %v208_v14 = vadd.f32 1e-05, %v192_v12 }
 0x131   :  { %v157_v15 = vpop.xlane.xlu1 %156  ;;  %v160_v18 = vpop.xlane.xlu0 %159 }
 0x132   :  { %1310 = vrsqrt.f32 %v207_v13  ;;  %v193_v19 = vmul.f32 0.03125, %v157_v15  ;;  %v194_v22 = vmul.f32 0.03125, %v160_v18 }
 0x133   :  { %1312 = vrsqrt.f32 %v208_v14 }
 0x134   :  { %v1305_v16 = vpop.eup %1304  ;;  %v209_v26 = vadd.f32 1e-05, %v193_v19  ;;  %v210_v27 = vadd.f32 1e-05, %v194_v22 }
 0x135   :  { %v163_v31 = vpop.xlane.xlu1 %162  ;;  %v166_v32 = vpop.xlane.xlu0 %165  ;;  %v236_v33 = vmul.f32 %v1305_v16, %v1535_v36 }
 0x136   :  { %1314 = vrsqrt.f32 %v209_v26  ;;  %v195_v34 = vmul.f32 0.03125, %v163_v31  ;;  %v196_v20 = vmul.f32 0.03125, %v166_v32 }
 0x137   :  { %1316 = vrsqrt.f32 %v210_v27  ;;  %v259_v39 = vmul.f32 %v1640_v30, %v236_v33 }
 0x138   :  { %v1307_v40 = vpop.eup %1306  ;;  %v211_v41 = vadd.f32 1e-05, %v195_v34  ;;  %v212_v42 = vadd.f32 1e-05, %v196_v20 }
 0x139   :  { %v1309_v43 = vpop.eup %1308  ;;  %v169_v46 = vpop.xlane.xlu1 %168  ;;  %v282_v48 = vadd.f32 %v1646_v38, %v259_v39  ;;  %v237_v36 = vmul.f32 %v1307_v40, %v1543_v44 }
 0x13a   :  { %v172_v24 = vpop.xlane.xlu0 %171  ;;  %1318 = vrsqrt.f32 %v211_v41  ;;  %v197_v49 = vmul.f32 0.03125, %v169_v46  ;;  %v238_v51 = vmul.f32 %v1309_v43, %v1537_v37 }
 0x13b   :  { %v198_v50 = vmul.f32 0.03125, %v172_v24  ;;  %1320 = vrsqrt.f32 %v212_v42  ;;  %1239 = vmatprep.mubr.msk.f32.mxu0 %vm42_vm0, %v282_v48  ;;  %v260_v52 = vmul.f32 %v1640_v30, %v237_v36 }
 0x13c   :  { %v1311_v28 = vpop.eup %1310  ;;  %v213_v29 = vadd.f32 1e-05, %v197_v49  ;;  %v261_v56 = vmul.f32 %v1640_v30, %v238_v51 }
 0x13d   :  { %v214_v53 = vadd.f32 1e-05, %v198_v50  ;;  %v1313_v57 = vpop.eup %1312  ;;  %v175_v58 = vpop.xlane.xlu1 %174  ;;  %v283_v44 = vadd.f32 %v1646_v38, %v260_v52  ;;  %v239_v60 = vmul.f32 %v1311_v28, %v1545_v45 }
 0x13e   :  { %v178_v59 = vpop.xlane.xlu0 %177  ;;  %1322 = vrsqrt.f32 %v213_v29  ;;  %v199_v61 = vmul.f32 0.03125, %v175_v58  ;;  %v284_v62 = vadd.f32 %v1646_v38, %v261_v56  ;;  %v240_v2 = vmul.f32 %v1313_v57, %v1553_v54 }
 0x13f   :  { %v200_v37 = vmul.f32 0.03125, %v178_v59  ;;  %1324 = vrsqrt.f32 %v214_v53  ;;  %1240 = vmatmul.mubr.msk.f32.vlgmr.msra.gmra.mrb[0].mxu0 %vm42_vm0, %v283_v44  ;;  %v262_v63 = vmul.f32 %v1640_v30, %v239_v60 }
 0x140   :  { %v1315_v3 = vpop.eup %1314  ;;  %v215_v4 = vadd.f32 1e-05, %v199_v61  ;;  %1242 = vmatprep.mubr.msk.f32.mxu0 %vm42_vm0, %v284_v62  ;;  %v263_v9 = vmul.f32 %v1640_v30, %v240_v2  ;;  %v934_v62 = vld [vmem:[%s2265_s5] sm:$0xff] }
 0x141   :  { %v216_v5 = vadd.f32 1e-05, %v200_v37  ;;  %v1317_v6 = vpop.eup %1316  ;;  %v181_v7 = vpop.xlane.xlu1 %180  ;;  %v285_v8 = vadd.f32 %v1646_v38, %v262_v63  ;;  %v241_v12 = vmul.f32 %v1315_v3, %v1555_v55 }
 0x142   :  { %v184_v45 = vpop.xlane.xlu0 %183  ;;  %1326 = vrsqrt.f32 %v215_v4  ;;  %v201_v13 = vmul.f32 0.03125, %v181_v7  ;;  %v242_v15 = vmul.f32 %v1317_v6, %v1564_v0  ;;  %v286_v54 = vadd.f32 %v1646_v38, %v263_v9 }
 0x143   :  { %v202_v14 = vmul.f32 0.03125, %v184_v45  ;;  %1328 = vrsqrt.f32 %v216_v5  ;;  %1243 = vmatmul.mubr.msk.f32.gmra.mrb[2].mxu0 %vm42_vm0, %v285_v8  ;;  %v264_v18 = vmul.f32 %v1640_v30, %v241_v12 }
 0x144   :  { %v1319_v19 = vpop.eup %1318  ;;  %v217_v22 = vadd.f32 1e-05, %v201_v13  ;;  %v265_v26 = vmul.f32 %v1640_v30, %v242_v15  ;;  %1245 = vmatprep.mubr.msk.f32.mxu0 %vm42_vm0, %v286_v54 }
 0x145   :  { %v218_v16 = vadd.f32 1e-05, %v202_v14  ;;  %v1321_v27 = vpop.eup %1320  ;;  %v187_v55 = vpop.xlane.xlu1 %186  ;;  %v287_v31 = vadd.f32 %v1646_v38, %v264_v18  ;;  %v243_v0 = vmul.f32 %v1319_v19, %v1567_v1 }
 0x146   :  { %1330 = vrsqrt.f32 %v217_v22  ;;  %v203_v32 = vmul.f32 0.03125, %v187_v55  ;;  %v288_v33 = vadd.f32 %v1646_v38, %v265_v26  ;;  %v244_v34 = vmul.f32 %v1321_v27, %v1576_v10 }
 0x147   :  { %1332 = vrsqrt.f32 %v218_v16  ;;  %1246 = vmatmul.mubr.msk.f32.gmra.mrb[4].mxu0 %vm42_vm0, %v287_v31  ;;  %v266_v20 = vmul.f32 %v1640_v30, %v243_v0 }
 0x148   :  { %v1323_v39 = vpop.eup %1322  ;;  %v219_v40 = vadd.f32 1e-05, %v203_v32  ;;  %1248 = vmatprep.mubr.msk.f32.mxu0 %vm42_vm0, %v288_v33  ;;  %v267_v41 = vmul.f32 %v1640_v30, %v244_v34 }
 0x149   :  { %v1325_v42 = vpop.eup %1324  ;;  %v289_v1 = vadd.f32 %v1646_v38, %v266_v20  ;;  %v245_v43 = vmul.f32 %v1323_v39, %v1579_v11 }
 0x14a   :  { %1334 = vrsqrt.f32 %v219_v40  ;;  %v290_v46 = vadd.f32 %v1646_v38, %v267_v41  ;;  %v246_v10 = vmul.f32 %v1325_v42, %v1588_v23 }
 0x14b   :  { %1249 = vmatmul.mubr.msk.f32.gmra.mrb[6].mxu0 %vm42_vm0, %v289_v1  ;;  %v268_v24 = vmul.f32 %v1640_v30, %v245_v43 }
 0x14c   :  { %v1327_v48 = vpop.eup %1326  ;;  %1251 = vmatprep.mubr.msk.f32.mxu0 %vm42_vm0, %v290_v46  ;;  %v269_v36 = vmul.f32 %v1640_v30, %v246_v10 }
 0x14d   :  { %v1329_v49 = vpop.eup %1328  ;;  %v291_v50 = vadd.f32 %v1646_v38, %v268_v24  ;;  %v247_v51 = vmul.f32 %v1327_v48, %v1591_v17 }
 0x14e   :  { %v292_v11 = vadd.f32 %v1646_v38, %v269_v36  ;;  %v248_v52 = vmul.f32 %v1329_v49, %v1600_v35 }
 0x14f   :  { %1252 = vmatmul.mubr.msk.f32.gmra.mrb[8].mxu0 %vm42_vm0, %v291_v50  ;;  %v270_v23 = vmul.f32 %v1640_v30, %v247_v51 }
 0x150   :  { %v1331_v28 = vpop.eup %1330  ;;  %1254 = vmatprep.mubr.msk.f32.mxu0 %vm42_vm0, %v292_v11  ;;  %v271_v29 = vmul.f32 %v1640_v30, %v248_v52 }
 0x151   :  { %v1333_v53 = vpop.eup %1332  ;;  %v293_v56 = vadd.f32 %v1646_v38, %v270_v23  ;;  %v249_v57 = vmul.f32 %v1331_v28, %v1603_v21 }
 0x152   :  { %v294_v17 = vadd.f32 %v1646_v38, %v271_v29  ;;  %v250_v58 = vmul.f32 %v1333_v53, %v1612_v47 }
 0x153   :  { %1255 = vmatmul.mubr.msk.f32.gmra.mrb[10].mxu0 %vm42_vm0, %v293_v56  ;;  %v272_v35 = vmul.f32 %v1640_v30, %v249_v57 }
 0x154   :  { %v1335_v59 = vpop.eup %1334  ;;  %1257 = vmatprep.mubr.msk.f32.mxu0 %vm42_vm0, %v294_v17  ;;  %v273_v44 = vmul.f32 %v1640_v30, %v250_v58 }
 0x155   :  { %v295_v60 = vadd.f32 %v1646_v38, %v272_v35  ;;  %v251_v61 = vmul.f32 %v1335_v59, %v1615_v25  ;;  %v935_v25 = vld [vmem:[%s2265_s5 + $0x8] sm:$0xff] }
 0x156   :  { %v296_v37 = vadd.f32 %v1646_v38, %v273_v44  ;;  %v1299_v63 = vpack.c.bf16 %v935_v25, %v934_v62 }
 0x157   :  { %1258 = vmatmul.mubr.msk.f32.gmra.mrb[12].mxu0 %vm42_vm0, %v295_v60  ;;  %v274_v21 = vmul.f32 %v1640_v30, %v251_v61  ;;  %v1720_v30 = vld [vmem:[%s2266_s4] ss:$0 sm:$0xff] }
 0x158   :  { %1260 = vmatprep.mubr.msk.f32.mxu0 %vm42_vm0, %v296_v37  ;;  %1300 = vmatprep.subr.bf16.mxu1 %v1299_v63 }
 0x159   :  { %v297_v47 = vadd.f32 %v1646_v38, %v274_v21  ;;  %1302 = vmatpush3.bf16.msra.mxu1 %v1299_v63 }
 0x15b   :  { %1261 = vmatmul.mubr.msk.f32.gmra.mrb[14].mxu0 %vm42_vm0, %v297_v47 }
 0x212   :  { %v1241_v2 = vpop.f32.mrb[0].mxu0 }
 0x213   :  { %v1723_v38 = vadd.f32 %v1241_v2, %v1720_v30  ;;  %v423_v3 = vpop.f32.mrb[1].mxu0 }
 0x214   :  { %v424_v48 = vadd.f32 %v1720_v30, %v423_v3 }
 0x215   :  { %v1726_v4 = vmul.f32 0.70710677, %v1723_v38 }
 0x216   :  { %v1244_v5 = vpop.f32.mrb[2].mxu0  ;;  %v1803_v56 = vmul.f32 0.70710677, %v424_v48 }
 0x217   :  { %v1729_v6 = vand.u32 2147483647, %v1726_v4  ;;  %v1732_v7 = vadd.f32 %v1244_v5, %v1720_v30  ;;  %v433_v45 = vpop.f32.mrb[3].mxu0  ;;  %vm535_vm1 = vcmp.lt.f32.partialorder %v1726_v4, 0.0 }
 0x218   :  { %v1735_v8 = vadd.f32 %v1720_v30, %v433_v45  ;;  %v566_v61 = vand.u32 2147483647, %v1803_v56  ;;  %vm534_vm9 = vcmp.lt.f32.partialorder %v1803_v56, 0.0 }
 0x219   :  { %v1738_v9 = vmul.f32 0.70710677, %v1732_v7  ;;  %v583_v12 = vmul.f32 0.3275911, %v1729_v6  ;;  %v791_v21 = vsub.f32 0.0, %v1729_v6 }
 0x21a   :  { %v1742_v13 = vmul.f32 0.70710677, %v1735_v8  ;;  %v1247_v14 = vpop.f32.mrb[4].mxu0  ;;  %v790_v2 = vsub.f32 0.0, %v566_v61  ;;  %v582_v45 = vmul.f32 0.3275911, %v566_v61 }
 0x21b   :  { %v1745_v15 = vand.u32 2147483647, %v1738_v9  ;;  %v443_v54 = vpop.f32.mrb[5].mxu0  ;;  %v599_v18 = vadd.f32 1.0, %v583_v12  ;;  %v1751_v16 = vadd.f32 %v1247_v14, %v1720_v30  ;;  %vm537_vm2 = vcmp.lt.f32.partialorder %v1738_v9, 0.0 }
 0x21c   :  { %v1748_v19 = vand.u32 2147483647, %v1742_v13  ;;  %v1759_v0 = vadd.f32 %v1720_v30, %v443_v54  ;;  %v1828_v54 = vmul.f32 0.5, %v1723_v38  ;;  %vm536_vm3 = vcmp.lt.f32.partialorder %v1742_v13, 0.0 }
 0x21d   :  { %v585_v27 = vmul.f32 0.3275911, %v1745_v15  ;;  %v1756_v31 = vmul.f32 0.70710677, %v1751_v16  ;;  %1336 = vrcp.f32 %v599_v18  ;;  %v793_v12 = vsub.f32 0.0, %v1745_v15 }
 0x21e   :  { %v1250_v22 = vpop.f32.mrb[6].mxu0  ;;  %v584_v55 = vmul.f32 0.3275911, %v1748_v19  ;;  %v1765_v40 = vmul.f32 0.70710677, %v1759_v0  ;;  %v807_v18 = vmul.f32 %v791_v21, %v1729_v6 }
 0x21f   :  { %v453_v26 = vpop.f32.mrb[7].mxu0  ;;  %v601_v20 = vadd.f32 1.0, %v585_v27  ;;  %v1762_v39 = vand.u32 2147483647, %v1756_v31  ;;  %v1768_v41 = vadd.f32 %v1250_v22, %v1720_v30  ;;  %v1831_v22 = vmul.f32 0.5, %v424_v48 }
 0x220   :  { %v600_v32 = vadd.f32 1.0, %v584_v55  ;;  %v1773_v1 = vadd.f32 %v1720_v30, %v453_v26  ;;  %v1779_v10 = vand.u32 2147483647, %v1765_v40  ;;  %v2270_v55 = vmov 1.0  }
 0x221   :  { %v587_v46 = vmul.f32 0.3275911, %v1762_v39  ;;  %v1782_v24 = vmul.f32 0.70710677, %v1768_v41  ;;  %v809_v48 = vmul.f32 %v793_v12, %v1745_v15  ;;  %v1870_v21 = vsel %vm536_vm3, -1.0, %v2270_v55 }
 0x222   :  { %v1253_v33 = vpop.f32.mrb[8].mxu0  ;;  %1338 = vrcp.f32 %v600_v32  ;;  %v1786_v36 = vmul.f32 0.70710677, %v1773_v1  ;;  %v586_v52 = vmul.f32 0.3275911, %v1779_v10  ;;  %v1838_v32 = vsel %vm535_vm1, -1.0, %v2270_v55 }
 0x223   :  { %v463_v34 = vpop.f32.mrb[9].mxu0  ;;  %1340 = vrcp.f32 %v601_v20  ;;  %v603_v51 = vadd.f32 1.0, %v587_v46  ;;  %v1796_v23 = vand.u32 2147483647, %v1782_v24  ;;  %v1821_v5 = vadd.f32 %v1253_v33, %v1720_v30 }
 0x224   :  { %v1806_v57 = vand.u32 2147483647, %v1786_v36  ;;  %v602_v58 = vadd.f32 1.0, %v586_v52  ;;  %v1825_v14 = vadd.f32 %v1720_v30, %v463_v34  ;;  %v792_v34 = vsub.f32 0.0, %v1748_v19 }
 0x225   :  { %1342 = vrcp.f32 %v603_v51  ;;  %v589_v44 = vmul.f32 0.3275911, %v1796_v23  ;;  %2280 = vst [vmem:[#allocation2_spill] sm:$0xff] %v1821_v5  ;;  %v806_v20 = vmul.f32 %v790_v2, %v566_v61  ;;  %v1843_v6 = vmul.f32 0.70710677, %v1821_v5 }
 0x226   :  { %v1770_v42 = vpop.f32.mrb[10].mxu0  ;;  %v588_v37 = vmul.f32 0.3275911, %v1806_v57  ;;  %1344 = vrcp.f32 %v602_v58  ;;  %v598_v46 = vadd.f32 1.0, %v582_v45  ;;  %v1848_v4 = vmul.f32 0.70710677, %v1825_v14 }
 0x227   :  { %v1775_v43 = vpop.f32.mrb[11].mxu0  ;;  %v1790_v50 = vpop.eup %1336  ;;  %v605_v25 = vadd.f32 1.0, %v589_v44  ;;  %v824_v51 = vmul.f32 1.442695, %v807_v18  ;;  %v1854_v58 = vmul.f32 0.5, %v1732_v7  ;;  %v808_v9 = vmul.f32 %v792_v34, %v1748_v19 }
 0x228   :  { %v647_v53 = vmul.f32 1.0614054, %v1790_v50  ;;  %v604_v3 = vadd.f32 1.0, %v588_v37  ;;  %v822_v61 = vmul.f32 1.442695, %v806_v20  ;;  %v1864_v37 = vsel %vm537_vm2, -1.0, %v2270_v55 }
 0x229   :  { %1346 = vrcp.f32 %v605_v25  ;;  %v1867_v13 = vand.u32 2147483647, %v1843_v6  ;;  %v828_v7 = vmul.f32 1.442695, %v809_v48  ;;  %vm539_vm4 = vcmp.lt.f32.partialorder %v1756_v31, 0.0 }
 0x22a   :  { %v1788_v49 = vpop.f32.mrb[12].mxu0  ;;  %v663_v60 = vadd.f32 -1.4531521, %v647_v53  ;;  %1348 = vrcp.f32 %v604_v3  ;;  %v826_v25 = vmul.f32 1.442695, %v808_v9  ;;  %vm538_vm5 = vcmp.lt.f32.partialorder %v1765_v40, 0.0 }
 0x22b   :  { %v1792_v11 = vpop.f32.mrb[13].mxu0  ;;  %1350 = vrcp.f32 %v598_v46  ;;  %v795_v3 = vsub.f32 0.0, %v1762_v39  ;;  %v591_v45 = vmul.f32 0.3275911, %v1867_v13  ;;  %v1884_v18 = vmul.f32 0.5, %v1751_v16 }
 0x22c   :  { %v1800_v29 = vpop.eup %1338  ;;  %v679_v63 = vmul.f32 %v1790_v50, %v663_v60  ;;  %1352 = vpow2.f32 %v824_v51  ;;  %v1900_v46 = vsel %vm538_vm5, -1.0, %v2270_v55  ;;  %v794_v48 = vsub.f32 0.0, %v1779_v10 }
 0x22d   :  { %v1810_v35 = vpop.eup %1340  ;;  %v648_v59 = vmul.f32 1.0614054, %v1800_v29  ;;  %1354 = vpow2.f32 %v822_v61  ;;  %v797_v31 = vsub.f32 0.0, %v1796_v23  ;;  %v1910_v61 = vadd.f32 %v1770_v42, %v1720_v30 }
 0x22e   :  { %v1798_v28 = vpop.f32.mrb[14].mxu0  ;;  %v649_v47 = vmul.f32 1.0614054, %v1810_v35  ;;  %v695_v38 = vadd.f32 1.4214138, %v679_v63  ;;  %1356 = vpow2.f32 %v828_v7  ;;  %vm541_vm6 = vcmp.lt.f32.partialorder %v1782_v24, 0.0 }
 0x22f   :  { %v1808_v17 = vpop.f32.mrb[15].mxu0  ;;  %v664_v62 = vadd.f32 -1.4531521, %v648_v59  ;;  %v1833_v27 = vpop.eup %1342  ;;  %v1857_v59 = vmul.f32 0.5, %v1735_v8  ;;  %v1873_v8 = vand.u32 2147483647, %v1848_v4  ;;  %1358 = vpow2.f32 %v826_v25 }
 0x230   :  { %v665_v26 = vadd.f32 -1.4531521, %v649_v47  ;;  %v651_v53 = vmul.f32 1.0614054, %v1833_v27  ;;  %v1860_v15 = vpop.eup %1344  ;;  %v711_v60 = vmul.f32 %v1790_v50, %v695_v38  ;;  %v1896_v38 = vsel %vm539_vm4, -1.0, %v2270_v55  ;;  %2281 = vst [vmem:[#allocation3_spill] sm:$0xff] %v1910_v61 }
 0x231   :  { %v680_v33 = vmul.f32 %v1800_v29, %v664_v62  ;;  %v650_v63 = vmul.f32 1.0614054, %v1860_v15  ;;  %vm540_vm7 = vcmp.lt.f32.partialorder %v1786_v36, 0.0  ;;  %vm542_vm8 = vcmp.lt.f32.partialorder %v1848_v4, 0.0 }
 0x232   :  { %v681_v52 = vmul.f32 %v1810_v35, %v665_v26  ;;  %v667_v47 = vadd.f32 -1.4531521, %v651_v53  ;;  %v727_v2 = vadd.f32 -0.28449672, %v711_v60  ;;  %v1887_v26 = vmul.f32 0.5, %v1759_v0 }
 0x233   :  { %v696_v44 = vadd.f32 1.4214138, %v680_v33  ;;  %v1881_v12 = vpop.eup %1346  ;;  %v590_v33 = vmul.f32 0.3275911, %v1873_v8  ;;  %v666_v0 = vadd.f32 -1.4531521, %v650_v63  ;;  %v810_v63 = vmul.f32 %v794_v48, %v1779_v10 }
 0x234   :  { %v697_v19 = vadd.f32 1.4214138, %v681_v52  ;;  %v1890_v40 = vpop.eup %1348  ;;  %v683_v20 = vmul.f32 %v1833_v27, %v667_v47  ;;  %v743_v51 = vmul.f32 %v1790_v50, %v727_v2  ;;  %v811_v52 = vmul.f32 %v795_v3, %v1762_v39 }
 0x235   :  { %v712_v62 = vmul.f32 %v1800_v29, %v696_v44  ;;  %v653_v53 = vmul.f32 1.0614054, %v1881_v12  ;;  %v607_v44 = vadd.f32 1.0, %v591_v45  ;;  %v652_v9 = vmul.f32 1.0614054, %v1890_v40  ;;  %v1916_v39 = vpop.eup %1350 }
 0x236   :  { %v713_v34 = vmul.f32 %v1810_v35, %v697_v19  ;;  %v606_v60 = vadd.f32 1.0, %v590_v33  ;;  %v699_v19 = vadd.f32 1.4214138, %v683_v20  ;;  %v1914_v47 = vmul.f32 0.5, %v1773_v1  ;;  %v1353_v3 = vpop.eup %1352 }
 0x237   :  { %v728_v16 = vadd.f32 -0.28449672, %v712_v62  ;;  %v682_v25 = vmul.f32 %v1860_v15, %v666_v0  ;;  %v796_v2 = vsub.f32 0.0, %v1806_v57  ;;  %v759_v42 = vadd.f32 0.2548296, %v743_v51 }
 0x238   :  { %v729_v7 = vadd.f32 -0.28449672, %v713_v34  ;;  %v669_v45 = vadd.f32 -1.4531521, %v653_v53  ;;  %1360 = vrcp.f32 %v607_v44  ;;  %v1923_v33 = vmul.f32 0.70710677, %v1910_v61 }
 0x239   :  { %v744_v62 = vmul.f32 %v1800_v29, %v728_v16  ;;  %v813_v1 = vmul.f32 %v797_v31, %v1796_v23  ;;  %v668_v34 = vadd.f32 -1.4531521, %v652_v9  ;;  %1362 = vrcp.f32 %v606_v60  ;;  %v1930_v16 = vpop.eup %1354 }
 0x23a   :  { %v1928_v20 = vadd.f32 %v1720_v30, %v1775_v43  ;;  %v745_v10 = vmul.f32 %v1810_v35, %v729_v7  ;;  %v715_v0 = vmul.f32 %v1833_v27, %v699_v19  ;;  %v832_v48 = vmul.f32 1.442695, %v811_v52  ;;  %v1357_v53 = vpop.eup %1356 }
 0x23b   :  { %v1937_v51 = vsel %vm541_vm6, -1.0, %v2270_v55  ;;  %v760_v23 = vadd.f32 0.2548296, %v744_v62  ;;  %v698_v44 = vadd.f32 1.4214138, %v682_v25  ;;  %v812_v9 = vmul.f32 %v796_v2, %v1806_v57  ;;  %v1359_v52 = vpop.eup %1358 }
 0x23c   :  { %2282 = vst [vmem:[#allocation4_spill] sm:$0xff] %v1928_v20  ;;  %v830_v31 = vmul.f32 1.442695, %v810_v63  ;;  %v775_v43 = vmul.f32 %v1790_v50, %v759_v42  ;;  %v685_v60 = vmul.f32 %v1881_v12, %v669_v45  ;;  %v799_v7 = vsub.f32 0.0, %v1867_v13 }
 0x23d   :  { %v1944_v19 = vand.u32 2147483647, %v1923_v33  ;;  %v836_v61 = vmul.f32 1.442695, %v813_v1  ;;  %v684_v24 = vmul.f32 %v1890_v40, %v668_v34  ;;  %v1949_v62 = vmul.f32 0.70710677, %v1928_v20 }
 0x23e   :  { %v761_v25 = vadd.f32 0.2548296, %v745_v10  ;;  %v731_v57 = vadd.f32 -0.28449672, %v715_v0  ;;  %1364 = vpow2.f32 %v832_v48  ;;  %v776_v63 = vmul.f32 %v1800_v29, %v760_v23 }
 0x23f   :  { %v593_v50 = vmul.f32 0.3275911, %v1944_v19  ;;  %v714_v2 = vmul.f32 %v1860_v15, %v698_v44  ;;  %1366 = vpow2.f32 %v830_v31  ;;  %v834_v42 = vmul.f32 1.442695, %v812_v9 }
 0x240   :  { %v855_v45 = vmul.f32 %v1353_v3, %v775_v43  ;;  %v701_v1 = vadd.f32 1.4214138, %v685_v60  ;;  %v815_v55 = vmul.f32 %v799_v7, %v1867_v13  ;;  %1368 = vpow2.f32 %v836_v61 }
 0x241   :  { %v609_v5 = vadd.f32 1.0, %v593_v50  ;;  %v2283_v34 = vmov 1.0   ;;  %v700_v0 = vadd.f32 1.4214138, %v684_v24  ;;  %v1961_v48 = vand.u32 2147483647, %v1949_v62 }
 0x242   :  { %v1958_v10 = vsel %vm540_vm7, -1.0, %v2283_v34  ;;  %v1963_v29 = vpop.eup %1360  ;;  %v777_v23 = vmul.f32 %v1810_v35, %v761_v25  ;;  %v747_v3 = vmul.f32 %v1833_v27, %v731_v57  ;;  %v1969_v13 = vadd.f32 %v1788_v49, %v1720_v30 }
 0x243   :  { %1370 = vrcp.f32 %v609_v5  ;;  %v1971_v61 = vpop.eup %1362  ;;  %v856_v36 = vmul.f32 %v1359_v52, %v776_v63  ;;  %v730_v44 = vadd.f32 -0.28449672, %v714_v2  ;;  %v592_v31 = vmul.f32 0.3275911, %v1961_v48 }
 0x244   :  { %2284 = vst [vmem:[#allocation5_spill] sm:$0xff] %v1969_v13  ;;  %1372 = vpow2.f32 %v834_v42  ;;  %v871_v9 = vsub.f32 1.0, %v855_v45  ;;  %v717_v43 = vmul.f32 %v1881_v12, %v701_v1  ;;  %v840_v60 = vmul.f32 1.442695, %v815_v55 }
 0x245   :  { %v1976_v35 = vmul.f32 0.70710677, %v1969_v13  ;;  %v716_v5 = vmul.f32 %v1890_v40, %v700_v0  ;;  %v655_v7 = vmul.f32 1.0614054, %v1963_v29  ;;  %v608_v49 = vadd.f32 1.0, %v592_v31 }
 0x246   :  { %v1982_v24 = vadd.f32 %v1720_v30, %v1792_v11  ;;  %v857_v52 = vmul.f32 %v1357_v53, %v777_v23  ;;  %v763_v25 = vadd.f32 0.2548296, %v747_v3  ;;  %v654_v57 = vmul.f32 1.0614054, %v1971_v61 }
 0x247   :  { %v1986_v50 = vand.u32 2147483647, %v1976_v35  ;;  %v872_v55 = vsub.f32 1.0, %v856_v36  ;;  %v746_v63 = vmul.f32 %v1860_v15, %v730_v44  ;;  %1374 = vrcp.f32 %v608_v49 }
 0x248   :  { %2285 = vst [vmem:[#allocation6_spill] sm:$0xff] %v1982_v24  ;;  %v1365_v2 = vpop.eup %1364  ;;  %v887_v42 = vmul.f32 %v871_v9, %v1838_v32  ;;  %v733_v45 = vadd.f32 -0.28449672, %v717_v43  ;;  %v1994_v53 = vadd.f32 %v1798_v28, %v1720_v30  ;;  %v732_v0 = vadd.f32 -0.28449672, %v716_v5 }
 0x249   :  { %v595_v11 = vmul.f32 0.3275911, %v1986_v50  ;;  %v1367_v1 = vpop.eup %1366  ;;  %v671_v23 = vadd.f32 -1.4531521, %v655_v7  ;;  %1376 = vpow2.f32 %v840_v60  ;;  %v1997_v3 = vmul.f32 0.70710677, %v1982_v24 }
 0x24a   :  { %2286 = vst [vmem:[#allocation7_spill] sm:$0xff] %v1994_v53  ;;  %v873_v36 = vsub.f32 1.0, %v857_v52  ;;  %v779_v44 = vmul.f32 %v1833_v27, %v763_v25  ;;  %v670_v31 = vadd.f32 -1.4531521, %v654_v57  ;;  %v2000_v32 = vpop.eup %1368  ;;  %v888_v9 = vmul.f32 %v872_v55, %v1870_v21 }
 0x24b   :  { %v611_v49 = vadd.f32 1.0, %v595_v11  ;;  %v762_v43 = vadd.f32 0.2548296, %v746_v63  ;;  %v2006_v28 = vsel %vm542_vm8, -1.0, %v2283_v34  ;;  %v2009_v60 = vand.u32 2147483647, %v1997_v3 }
 0x24c   :  { %v903_v7 = vadd.f32 1.0, %v887_v42  ;;  %v2014_v27 = vmul.f32 0.70710677, %v1994_v53  ;;  %v2018_v52 = vadd.f32 %v1720_v30, %v1808_v17  ;;  %v749_v25 = vmul.f32 %v1881_v12, %v733_v45 }
 0x24d   :  { %v2011_v5 = vpop.eup %1370  ;;  %1378 = vrcp.f32 %v611_v49  ;;  %v748_v4 = vmul.f32 %v1890_v40, %v732_v0  ;;  %v687_v57 = vmul.f32 %v1963_v29, %v671_v23  ;;  %v594_v55 = vmul.f32 0.3275911, %v2009_v60 }
 0x24e   :  { %2287 = vst [vmem:[#allocation8_spill] sm:$0xff] %v2014_v27  ;;  %2288 = vst [vmem:[#allocation9_spill] sm:$0xff] %v2018_v52  ;;  %v1373_v21 = vpop.eup %1372  ;;  %v889_v63 = vmul.f32 %v873_v36, %v1864_v37  ;;  %v859_v42 = vmul.f32 %v1365_v2, %v779_v44  ;;  %v686_v11 = vmul.f32 %v1971_v61, %v670_v31  ;;  %v2027_v49 = vand.u32 2147483647, %v2014_v27 }
 0x24f   :  { %v904_v53 = vadd.f32 1.0, %v888_v9  ;;  %v778_v30 = vmul.f32 %v1860_v15, %v762_v43  ;;  %v657_v17 = vmul.f32 1.0614054, %v2011_v5  ;;  %v610_v45 = vadd.f32 1.0, %v594_v55 }
 0x250   :  { %v2032_v0 = vmul.f32 %v903_v7, %v1828_v54  ;;  %v798_v23 = vsub.f32 0.0, %v1873_v8  ;;  %v597_v13 = vmul.f32 0.3275911, %v2027_v49  ;;  %v2037_v37 = vmul.f32 0.70710677, %v2018_v52 }
 0x251   :  { %v2039_v2 = vpop.eup %1374  ;;  %v765_v36 = vadd.f32 0.2548296, %v749_v25  ;;  %v764_v44 = vadd.f32 0.2548296, %v748_v4  ;;  %v703_v31 = vadd.f32 1.4214138, %v687_v57  ;;  %1380 = vrcp.f32 %v610_v45 }
 0x252   :  { %2289 = vst [vmem:[#allocation10_spill] sm:$0xff] %v2037_v37  ;;  %v875_v15 = vsub.f32 1.0, %v859_v42  ;;  %v702_v9 = vadd.f32 1.4214138, %v686_v11  ;;  %v656_v43 = vmul.f32 1.0614054, %v2039_v2  ;;  %v2047_v24 = vmul.f32 %v904_v53, %v1857_v59 }
 0x253   :  { %v613_v55 = vadd.f32 1.0, %v597_v13  ;;  %v2042_v54 = vpop.eup %1376  ;;  %v2044_v7 = vadd.f32 1.0, %v889_v63  ;;  %v858_v52 = vmul.f32 %v1367_v1, %v778_v30  ;;  %v673_v27 = vadd.f32 -1.4531521, %v657_v17 }
 0x254   :  { %v814_v20 = vmul.f32 %v798_v23, %v1873_v8  ;;  %v672_v25 = vadd.f32 -1.4531521, %v656_v43  ;;  %v2051_v4 = vand.u32 2147483647, %v2037_v37  ;;  %v781_v57 = vmul.f32 %v1881_v12, %v765_v36 }
 0x255   :  { %1382 = vrcp.f32 %v613_v55  ;;  %v780_v13 = vmul.f32 %v1890_v40, %v764_v44  ;;  %v719_v42 = vmul.f32 %v1963_v29, %v703_v31  ;;  %v646_v63 = vmul.f32 1.0614054, %v1916_v39 }
 0x256   :  { %v2060_v59 = vmul.f32 %v875_v15, %v1896_v38  ;;  %v718_v8 = vmul.f32 %v1971_v61, %v702_v9  ;;  %v688_v53 = vmul.f32 %v2039_v2, %v672_v25  ;;  %v596_v1 = vmul.f32 0.3275911, %v2051_v4 }
 0x257   :  { %v2057_v11 = vpop.eup %1378  ;;  %v874_v30 = vsub.f32 1.0, %v858_v52  ;;  %v689_v12 = vmul.f32 %v2011_v5, %v673_v27  ;;  %v662_v17 = vadd.f32 -1.4531521, %v646_v63  ;;  %v838_v45 = vmul.f32 1.442695, %v814_v20 }
 0x258   :  { %v659_v40 = vmul.f32 1.0614054, %v2057_v11  ;;  %v704_v23 = vadd.f32 1.4214138, %v688_v53  ;;  %v800_v36 = vsub.f32 0.0, %v1961_v48  ;;  %v612_v44 = vadd.f32 1.0, %v596_v1 }
 0x259   :  { %v2068_v31 = vmul.f32 %v1373_v21, %v780_v13  ;;  %v735_v38 = vadd.f32 -0.28449672, %v719_v42  ;;  %v678_v9 = vmul.f32 %v1916_v39, %v662_v17  ;;  %v2072_v43 = vmul.f32 %v2000_v32, %v781_v57 }
 0x25a   :  { %v675_v15 = vadd.f32 -1.4531521, %v659_v40  ;;  %v734_v52 = vadd.f32 -0.28449672, %v718_v8  ;;  %v802_v27 = vsub.f32 0.0, %v2009_v60  ;;  %1384 = vrcp.f32 %v612_v44 }
 0x25b   :  { %v2075_v55 = vpop.eup %1380  ;;  %v2078_v20 = vmul.f32 %v874_v30, %v1900_v46  ;;  %v705_v25 = vadd.f32 1.4214138, %v689_v12  ;;  %v720_v21 = vmul.f32 %v2039_v2, %v704_v23  ;;  %v694_v13 = vadd.f32 1.4214138, %v678_v9 }
 0x25c   :  { %v801_v42 = vsub.f32 0.0, %v1944_v19  ;;  %v816_v63 = vmul.f32 %v800_v36, %v1961_v48  ;;  %v691_v32 = vmul.f32 %v2057_v11, %v675_v15  ;;  %v658_v57 = vmul.f32 1.0614054, %v2075_v55 }
 0x25d   :  { %v751_v53 = vmul.f32 %v1963_v29, %v735_v38  ;;  %1386 = vpow2.f32 %v838_v45  ;;  %v710_v46 = vmul.f32 %v1916_v39, %v694_v13  ;;  %v750_v30 = vmul.f32 %v1971_v61, %v734_v52 }
 0x25e   :  { %v803_v12 = vsub.f32 0.0, %v1986_v50  ;;  %v674_v40 = vadd.f32 -1.4531521, %v658_v57  ;;  %v818_v48 = vmul.f32 %v802_v27, %v2009_v60  ;;  %v721_v17 = vmul.f32 %v2011_v5, %v705_v25 }
 0x25f   :  { %v2088_v1 = vpop.eup %1382  ;;  %v736_v23 = vadd.f32 -0.28449672, %v720_v21  ;;  %v726_v44 = vadd.f32 -0.28449672, %v710_v46  ;;  %v817_v45 = vmul.f32 %v801_v42, %v1944_v19  ;;  %v842_v38 = vmul.f32 1.442695, %v816_v63 }
 0x260   :  { %v661_v36 = vmul.f32 1.0614054, %v2088_v1  ;;  %v707_v15 = vadd.f32 1.4214138, %v691_v32  ;;  %v690_v9 = vmul.f32 %v2075_v55, %v674_v40  ;;  %v767_v52 = vadd.f32 0.2548296, %v751_v53 }
 0x261   :  { %v804_v57 = vsub.f32 0.0, %v2051_v4  ;;  %v742_v60 = vmul.f32 %v1916_v39, %v726_v44  ;;  %v766_v27 = vadd.f32 0.2548296, %v750_v30  ;;  %v819_v8 = vmul.f32 %v803_v12, %v1986_v50 }
 0x262   :  { %v677_v13 = vadd.f32 -1.4531521, %v661_v36  ;;  %v706_v25 = vadd.f32 1.4214138, %v690_v9  ;;  %v846_v21 = vmul.f32 1.442695, %v818_v48  ;;  %v752_v46 = vmul.f32 %v2039_v2, %v736_v23 }
 0x263   :  { %v737_v37 = vadd.f32 -0.28449672, %v721_v17  ;;  %v758_v42 = vadd.f32 0.2548296, %v742_v60  ;;  %v844_v32 = vmul.f32 1.442695, %v817_v45  ;;  %1388 = vpow2.f32 %v842_v38 }
 0x264   :  { %v693_v19 = vmul.f32 %v2088_v1, %v677_v13  ;;  %v2103_v63 = vpop.eup %1384  ;;  %v723_v53 = vmul.f32 %v2057_v11, %v707_v15  ;;  %v722_v40 = vmul.f32 %v2075_v55, %v706_v25  ;;  %v805_v30 = vsub.f32 0.0, %v2027_v49 }
 0x265   :  { %v820_v50 = vmul.f32 %v804_v57, %v2051_v4  ;;  %v774_v12 = vmul.f32 %v1916_v39, %v758_v42  ;;  %v782_v48 = vmul.f32 %v1971_v61, %v766_v27  ;;  %v848_v17 = vmul.f32 1.442695, %v819_v8 }
 0x266   :  { %v709_v36 = vadd.f32 1.4214138, %v693_v19  ;;  %v738_v23 = vadd.f32 -0.28449672, %v722_v40  ;;  %v660_v44 = vmul.f32 1.0614054, %v2103_v63  ;;  %v753_v38 = vmul.f32 %v2011_v5, %v737_v37 }
 0x267   :  { %v1387_v45 = vpop.eup %1386  ;;  %v768_v15 = vadd.f32 0.2548296, %v752_v46  ;;  %1390 = vpow2.f32 %v846_v21  ;;  %v854_v9 = vmul.f32 %v1930_v16, %v774_v12  ;;  %v739_v13 = vadd.f32 -0.28449672, %v723_v53 }
 0x268   :  { %v754_v60 = vmul.f32 %v2075_v55, %v738_v23  ;;  %v725_v4 = vmul.f32 %v2088_v1, %v709_v36  ;;  %v676_v39 = vadd.f32 -1.4531521, %v660_v44  ;;  %1392 = vpow2.f32 %v844_v32 }
 0x269   :  { %v821_v61 = vmul.f32 %v805_v30, %v2027_v49  ;;  %v850_v8 = vmul.f32 1.442695, %v820_v50  ;;  %v870_v57 = vsub.f32 1.0, %v854_v9  ;;  %vm543_vm11 = vcmp.lt.f32.partialorder %v1843_v6, 0.0 }
 0x26a   :  { %v783_v27 = vmul.f32 %v1963_v29, %v767_v52  ;;  %1394 = vpow2.f32 %v848_v17  ;;  %v692_v37 = vmul.f32 %v2103_v63, %v676_v39  ;;  %v550_v16 = vsel %vm534_vm9, -1.0, %v2283_v34 }
 0x26b   :  { %v862_v25 = vmul.f32 %v1387_v45, %v782_v48  ;;  %v784_v21 = vmul.f32 %v2039_v2, %v768_v15  ;;  %v770_v46 = vadd.f32 0.2548296, %v754_v60  ;;  %v886_v19 = vmul.f32 %v870_v57, %v550_v16 }
 0x26c   :  { %v769_v42 = vadd.f32 0.2548296, %v753_v38  ;;  %v755_v49 = vmul.f32 %v2057_v11, %v739_v13  ;;  %v741_v32 = vadd.f32 -0.28449672, %v725_v4  ;;  %v708_v53 = vadd.f32 1.4214138, %v692_v37 }
 0x26d   :  { %v877_v40 = vsub.f32 1.0, %v2072_v43  ;;  %v852_v29 = vmul.f32 1.442695, %v821_v61  ;;  %1396 = vpow2.f32 %v850_v8  ;;  %v902_v52 = vadd.f32 1.0, %v886_v19  ;;  %v1389_v36 = vpop.eup %1388 }
 0x26e   :  { %v906_v30 = vadd.f32 1.0, %v2078_v20  ;;  %v2290_v56 = vsub.f32 1.0, %v2068_v31  ;;  %v863_v2 = vmul.f32 %v2042_v54, %v783_v27  ;;  %v724_v12 = vmul.f32 %v2103_v63, %v708_v53 }
 0x26f   :  { %v878_v48 = vsub.f32 1.0, %v862_v25  ;;  %v864_v17 = vmul.f32 %v1389_v36, %v784_v21  ;;  %v786_v23 = vmul.f32 %v2075_v55, %v770_v46  ;;  %v918_v43 = vmul.f32 %v902_v52, %v1831_v22  ;;  %v2292_v52 = vld [vmem:[#allocation2_spill] sm:$0xff] }
 0x270   :  { %v892_v50 = vmul.f32 %v2290_v56, %v1958_v10  ;;  %v785_v44 = vmul.f32 %v2011_v5, %v769_v42  ;;  %v771_v45 = vadd.f32 0.2548296, %v755_v49  ;;  %v757_v38 = vmul.f32 %v2088_v1, %v741_v32  ;;  %v2291_v42 = vld [vmem:[#allocation10_spill] sm:$0xff] }
 0x271   :  { %v740_v20 = vadd.f32 -0.28449672, %v724_v12  ;;  %v1391_v15 = vpop.eup %1390  ;;  %v921_v10 = vmul.f32 %v2044_v7, %v1854_v58  ;;  %v907_v54 = vadd.f32 1.0, %v2060_v59  ;;  %v893_v31 = vmul.f32 %v877_v40, %v1937_v51  ;;  %1267 = vmatprep.mubr.msk.f32.mxu1 %vm943_vm10, %v918_v43 }
 0x272   :  { %1398 = vpow2.f32 %v852_v29  ;;  %v922_v55 = vmul.f32 %v906_v30, %v1887_v26  ;;  %v908_v22 = vadd.f32 1.0, %v892_v50  ;;  %v879_v9 = vsub.f32 1.0, %v863_v2  ;;  %1268 = vmatmul.mubr.msk.f32.vlgmr.msra.gmra.mrb[0].mxu1 %vm943_vm10, %v2032_v0  ;;  %v1393_v13 = vpop.eup %1392  ;;  %v2293_v30 = vld [vmem:[#allocation4_spill] sm:$0xff] }
 0x273   :  { %v756_v5 = vmul.f32 %v2103_v63, %v740_v20  ;;  %v894_v60 = vmul.f32 %v878_v48, %v2006_v28  ;;  %vm544_vm12 = vcmp.lt.f32.partialorder %v1949_v62, 0.0  ;;  %v880_v58 = vsub.f32 1.0, %v864_v17  ;;  %1270 = vmatprep.mubr.msk.f32.mxu1 %vm943_vm10, %v2047_v24  ;;  %v2295_v20 = vld [vmem:[#allocation6_spill] sm:$0xff] }
 0x274   :  { %v866_v7 = vmul.f32 %v1391_v15, %v786_v23  ;;  %v1395_v51 = vpop.eup %1394  ;;  %v865_v59 = vmul.f32 %v1393_v13, %v785_v44  ;;  %v787_v26 = vmul.f32 %v2057_v11, %v771_v45  ;;  %v773_v4 = vadd.f32 0.2548296, %v757_v38  ;;  %v2294_v45 = vld [vmem:[#allocation8_spill] sm:$0xff]  ;;  %v2297_v13 = vld [vmem:[#allocation9_spill] sm:$0xff] }
 0x275   :  { %v772_v39 = vadd.f32 0.2548296, %v756_v5  ;;  %v923_v61 = vmul.f32 %v907_v54, %v1884_v18  ;;  %v909_v8 = vadd.f32 1.0, %v893_v31  ;;  %v559_v28 = vsel %vm543_vm11, -1.0, %v2283_v34 }
 0x276   :  { %vm545_vm13 = vcmp.lt.f32.partialorder %v1923_v33, 0.0  ;;  %v924_v62 = vmul.f32 %v908_v22, %v1914_v47  ;;  %v895_v0 = vmul.f32 %v879_v9, %v559_v28  ;;  %v560_v24 = vsel %vm544_vm12, -1.0, %v2283_v34  ;;  %1271 = vmatmul.mubr.msk.f32.gmra.mrb[2].mxu1 %vm943_vm10, %v921_v10  ;;  %v2296_v10 = vld [vmem:[#allocation3_spill] sm:$0xff] }
 0x277   :  { %v788_v57 = vmul.f32 %v2103_v63, %v772_v39  ;;  %v1397_v11 = vpop.eup %1396  ;;  %v910_v27 = vadd.f32 1.0, %v894_v60  ;;  %v896_v37 = vmul.f32 %v880_v58, %v560_v24  ;;  %vm546_vm14 = vcmp.lt.f32.partialorder %v1997_v3, 0.0  ;;  %1273 = vmatprep.mubr.msk.f32.mxu1 %vm943_vm10, %v922_v55  ;;  %v2298_v58 = vld [vmem:[#allocation5_spill] sm:$0xff] }
 0x278   :  { %v882_v18 = vsub.f32 1.0, %v866_v7  ;;  %v881_v6 = vsub.f32 1.0, %v865_v59  ;;  %v867_v16 = vmul.f32 %v1395_v51, %v787_v26  ;;  %v789_v25 = vmul.f32 %v2088_v1, %v773_v4  ;;  %v2299_v4 = vld [vmem:[#allocation7_spill] sm:$0xff] }
 0x279   :  { %v868_v47 = vmul.f32 %v1397_v11, %v788_v57  ;;  %v509_v21 = vmul.f32 0.5, %v1768_v41  ;;  %v510_v46 = vmul.f32 0.5, %v1825_v14  ;;  %v561_v63 = vsel %vm545_vm13, -1.0, %v2283_v34 }
 0x27a   :  { %v911_v19 = vadd.f32 1.0, %v895_v0  ;;  %vm547_vm15 = vcmp.lt.f32.partialorder %v1976_v35, 0.0  ;;  %v562_v3 = vsel %vm546_vm14, -1.0, %v2283_v34  ;;  %vm548_vm1 = vcmp.lt.f32.partialorder %v2291_v42, 0.0  ;;  %1274 = vmatmul.mubr.msk.f32.gmra.mrb[4].mxu1 %vm943_vm10, %v923_v61  ;;  %v1176_v61 = vld [vmem:[%s2267_s6] ss:$0 sm:$0xff] }
 0x27b   :  { %v926_v1 = vmul.f32 %v910_v27, %v510_v46  ;;  %v912_v32 = vadd.f32 1.0, %v896_v37  ;;  %v898_v53 = vmul.f32 %v882_v18, %v562_v3  ;;  %v884_v41 = vsub.f32 1.0, %v868_v47  ;;  %1276 = vmatprep.mubr.msk.f32.mxu1 %vm943_vm10, %v924_v62 }
 0x27c   :  { %v1399_v49 = vpop.eup %1398  ;;  %v925_v14 = vmul.f32 %v909_v8, %v509_v21  ;;  %v897_v40 = vmul.f32 %v881_v6, %v561_v63  ;;  %v883_v33 = vsub.f32 1.0, %v867_v16  ;;  %v511_v36 = vmul.f32 0.5, %v2292_v52 }
 0x27d   :  { %v869_v29 = vmul.f32 %v1399_v49, %v789_v25  ;;  %v512_v56 = vmul.f32 0.5, %v2293_v30  ;;  %v563_v50 = vsel %vm547_vm15, -1.0, %v2283_v34  ;;  %v564_v2 = vsel %vm548_vm1, -1.0, %v2283_v34 }
 0x27e   :  { %1277 = vmatmul.mubr.msk.f32.gmra.mrb[6].mxu1 %vm943_vm10, %v925_v14  ;;  %v927_v12 = vmul.f32 %v911_v19, %v511_v36  ;;  %v914_v17 = vadd.f32 1.0, %v898_v53  ;;  %v900_v23 = vmul.f32 %v884_v41, %v564_v2  ;;  %v913_v43 = vadd.f32 1.0, %v897_v40 }
 0x27f   :  { %v928_v48 = vmul.f32 %v912_v32, %v512_v56  ;;  %1279 = vmatprep.mubr.msk.f32.mxu1 %vm943_vm10, %v926_v1  ;;  %v899_v44 = vmul.f32 %v883_v33, %v563_v50  ;;  %vm549_vm2 = vcmp.lt.f32.partialorder %v2294_v45, 0.0  ;;  %v885_v38 = vsub.f32 1.0, %v869_v29 }
 0x280   :  { %v514_v15 = vmul.f32 0.5, %v2295_v20  ;;  %v513_v35 = vmul.f32 0.5, %v2296_v10  ;;  %v565_v31 = vsel %vm549_vm2, -1.0, %v2283_v34  ;;  %v916_v55 = vadd.f32 1.0, %v900_v23 }
 0x281   :  { %v915_v9 = vadd.f32 1.0, %v899_v44  ;;  %v901_v5 = vmul.f32 %v885_v38, %v565_v31  ;;  %v516_v60 = vmul.f32 0.5, %v2297_v13  ;;  %v515_v7 = vmul.f32 0.5, %v2298_v58 }
 0x282   :  { %1280 = vmatmul.mubr.msk.f32.gmra.mrb[8].mxu1 %vm943_vm10, %v927_v12  ;;  %v930_v54 = vmul.f32 %v914_v17, %v514_v15  ;;  %v929_v22 = vmul.f32 %v913_v43, %v513_v35  ;;  %v517_v39 = vmul.f32 0.5, %v2299_v4 }
 0x283   :  { %1282 = vmatprep.mubr.msk.f32.mxu1 %vm943_vm10, %v928_v48  ;;  %v932_v51 = vmul.f32 %v916_v55, %v516_v60  ;;  %v931_v59 = vmul.f32 %v915_v9, %v515_v7  ;;  %v917_v26 = vadd.f32 1.0, %v901_v5 }
 0x285   :  { %v933_v34 = vmul.f32 %v917_v26, %v517_v39 }
 0x286   :  { %1283 = vmatmul.mubr.msk.f32.gmra.mrb[10].mxu1 %vm943_vm10, %v929_v22 }
 0x287   :  { %1285 = vmatprep.mubr.msk.f32.mxu1 %vm943_vm10, %v930_v54 }
 0x28a   :  { %1286 = vmatmul.mubr.msk.f32.gmra.mrb[12].mxu1 %vm943_vm10, %v931_v59 }
 0x28b   :  { %1288 = vmatprep.mubr.msk.f32.mxu1 %vm943_vm10, %v932_v51 }
 0x28e   :  { %1289 = vmatmul.mubr.msk.f32.gmra.mrb[14].mxu1 %vm943_vm10, %v933_v34 }
 0x345   :  { %v1269_v8 = vpop.f32.mrb[0].mxu1 }
 0x346   :  { %v1064_v28 = vadd.f32 %v1269_v8, %v1176_v61  ;;  %v1058_v62 = vpop.f32.mrb[1].mxu1 }
 0x347   :  { %v1059_v0 = vadd.f32 %v1176_v61, %v1058_v62 }
 0x348   :  { %1138 = vst.msk [vmem:[%s2268_s7 + $0x8] sm:$0xff] %vm42_vm0, %v1064_v28 }
 0x349   :  { %1137 = vst.msk [vmem:[%s2268_s7] sm:$0xff] %vm42_vm0, %v1059_v0  ;;  %v1272_v24 = vpop.f32.mrb[2].mxu1 }
 0x34a   :  { %v1074_v57 = vadd.f32 %v1272_v24, %v1176_v61  ;;  %v1068_v11 = vpop.f32.mrb[3].mxu1 }
 0x34b   :  { %v1069_v27 = vadd.f32 %v1176_v61, %v1068_v11 }
 0x34c   :  { %1140 = vst.msk [vmem:[%s2268_s7 + $0x18] sm:$0xff] %vm42_vm0, %v1074_v57 }
 0x34d   :  { %1139 = vst.msk [vmem:[%s2268_s7 + $0x10] sm:$0xff] %vm42_vm0, %v1069_v27  ;;  %v1275_v37 = vpop.f32.mrb[4].mxu1 }
 0x34e   :  { %v1084_v18 = vadd.f32 %v1275_v37, %v1176_v61  ;;  %v1078_v6 = vpop.f32.mrb[5].mxu1 }
 0x34f   :  { %v1079_v16 = vadd.f32 %v1176_v61, %v1078_v6 }
 0x350   :  { %1142 = vst.msk [vmem:[%s2268_s7 + $0x28] sm:$0xff] %vm42_vm0, %v1084_v18 }
 0x351   :  { %1141 = vst.msk [vmem:[%s2268_s7 + $0x20] sm:$0xff] %vm42_vm0, %v1079_v16  ;;  %v1278_v25 = vpop.f32.mrb[6].mxu1 }
 0x352   :  { %v1094_v47 = vadd.f32 %v1278_v25, %v1176_v61  ;;  %v1088_v21 = vpop.f32.mrb[7].mxu1 }
 0x353   :  { %v1089_v46 = vadd.f32 %v1176_v61, %v1088_v21 }
 0x354   :  { %1144 = vst.msk [vmem:[%s2268_s7 + $0x38] sm:$0xff] %vm42_vm0, %v1094_v47 }
 0x355   :  { %1143 = vst.msk [vmem:[%s2268_s7 + $0x30] sm:$0xff] %vm42_vm0, %v1089_v46  ;;  %v1281_v63 = vpop.f32.mrb[8].mxu1 }
 0x356   :  { %v1104_v19 = vadd.f32 %v1281_v63, %v1176_v61  ;;  %v1098_v3 = vpop.f32.mrb[9].mxu1 }
 0x357   :  { %v1099_v42 = vadd.f32 %v1176_v61, %v1098_v3 }
 0x358   :  { %1146 = vst.msk [vmem:[%s2268_s7 + $0x48] sm:$0xff] %vm42_vm0, %v1104_v19 }
 0x359   :  { %1145 = vst.msk [vmem:[%s2268_s7 + $0x40] sm:$0xff] %vm42_vm0, %v1099_v42  ;;  %v1284_v49 = vpop.f32.mrb[10].mxu1 }
 0x35a   :  { %v1114_v1 = vadd.f32 %v1284_v49, %v1176_v61  ;;  %v1108_v32 = vpop.f32.mrb[11].mxu1 }
 0x35b   :  { %v1109_v53 = vadd.f32 %v1176_v61, %v1108_v32 }
 0x35c   :  { %1148 = vst.msk [vmem:[%s2268_s7 + $0x58] sm:$0xff] %vm42_vm0, %v1114_v1 }
 0x35d   :  { %1147 = vst.msk [vmem:[%s2268_s7 + $0x50] sm:$0xff] %vm42_vm0, %v1109_v53  ;;  %v1287_v41 = vpop.f32.mrb[12].mxu1 }
 0x35e   :  { %v1124_v14 = vadd.f32 %v1287_v41, %v1176_v61  ;;  %v1118_v40 = vpop.f32.mrb[13].mxu1 }
 0x35f   :  { %v1119_v33 = vadd.f32 %v1176_v61, %v1118_v40 }
 0x360   :  { %1150 = vst.msk [vmem:[%s2268_s7 + $0x68] sm:$0xff] %vm42_vm0, %v1124_v14 }
 0x361   :  { %1149 = vst.msk [vmem:[%s2268_s7 + $0x60] sm:$0xff] %vm42_vm0, %v1119_v33  ;;  %v1290_v29 = vpop.f32.mrb[14].mxu1 }
 0x362   :  { %v1134_v52 = vadd.f32 %v1290_v29, %v1176_v61  ;;  %v1128_v36 = vpop.f32.mrb[15].mxu1 }
 0x363   :  { %v1129_v30 = vadd.f32 %v1176_v61, %v1128_v36 }
 0x364   :  { %1152 = vst.msk [vmem:[%s2268_s7 + $0x78] sm:$0xff] %vm42_vm0, %v1134_v52 }
 0x365   :  { %1151 = vst.msk [vmem:[%s2268_s7 + $0x70] sm:$0xff] %vm42_vm0, %v1129_v30 }

// kernel: transformer_forward.11
= control target key start
LH: loop header
LB: loop body
LE: loop exit
PB: predicated region body
PF: predicated region fallthrough
CT: control target
= control target key end

     0   :  { %vm30_vm0 = vcmask 261120   ;;  %s776_s0 = inlined_call_operand.vmem [shape: f32[32,32], index: 0, kind: input, shape index: {}]   ;;  %s777_s3 = inlined_call_operand.vmem [shape: f32[32,128], index: 3, kind: input, shape index: {}]   ;;  %s778_s1 = inlined_call_operand.vmem [shape: f32[1,32], index: 1, kind: input, shape index: {}]   ;;  %s779_s2 = inlined_call_operand.vmem [shape: f32[1,32], index: 2, kind: input, shape index: {}]   ;;  %s780_s5 = inlined_call_operand.vmem [shape: f32[128,32], index: 5, kind: input, shape index: {}]   ;;  %s781_s4 = inlined_call_operand.vmem [shape: f32[1,128], index: 4, kind: input, shape index: {}]   ;;  %s782_s6 = inlined_call_operand.vmem [shape: f32[1,32], index: 6, kind: input, shape index: {}]   ;;  %s783_s7 = inlined_call_operand.vmem [shape: f32[32,32], index: 7, kind: output, shape index: {}]  }
   0x1   :  { %v26_v0 = vld [vmem:[%s776_s0] sm:$0xff]  ;;  %v28_v1 = vld [vmem:[%s776_s0 + $0x10] sm:$0xff]  ;;  %v27_v2 = vld [vmem:[%s776_s0 + $0x8] sm:$0xff] }
   0x2   :  { %v31_v3 = vsel %vm30_vm0, %v26_v0, 0.0  ;;  %v37_v4 = vsel %vm30_vm0, %v28_v1, 0.0  ;;  %v29_v5 = vld [vmem:[%s776_s0 + $0x18] sm:$0xff]  ;;  %v34_v6 = vsel %vm30_vm0, %v27_v2, 0.0  ;;  %v106_v28 = vld [vmem:[%s777_s3] sm:$0xff]  ;;  %v107_v29 = vld [vmem:[%s777_s3 + $0x8] sm:$0xff] }
   0x3   :  { %32 = vadd.xlane.f32.xlu0 %v31_v3  ;;  %38 = vadd.xlane.f32.xlu1 %v37_v4  ;;  %v40_v7 = vsel %vm30_vm0, %v29_v5, 0.0  ;;  %v108_v30 = vld [vmem:[%s777_s3 + $0x10] sm:$0xff]  ;;  %v526_v31 = vpack.c.bf16 %v107_v29, %v106_v28  ;;  %v109_v32 = vld [vmem:[%s777_s3 + $0x18] sm:$0xff]  ;;  %v438_v47 = vld [vmem:[%s778_s1] ss:$0 sm:$0xff] }
   0x4   :  { %v530_v33 = vpack.c.bf16 %v109_v32, %v108_v30  ;;  %v439_v49 = vld [vmem:[%s779_s2] ss:$0 sm:$0xff]  ;;  %v324_v3 = vld [vmem:[%s780_s5 + $0x10] sm:$0xff]  ;;  %v325_v4 = vld [vmem:[%s780_s5 + $0x18] sm:$0xff] }
   0x5   :  { %527 = vmatprep.subr.bf16.mxu0 %v526_v31 }
   0x6   :  { %529 = vmatpush3.bf16.msra.mxu0 %v526_v31 }
   0x7   :  { %35 = vadd.xlane.f32.xlu0 %v34_v6  ;;  %41 = vadd.xlane.f32.xlu1 %v40_v7  ;;  %v326_v6 = vld [vmem:[%s780_s5 + $0x20] sm:$0xff]  ;;  %v327_v7 = vld [vmem:[%s780_s5 + $0x28] sm:$0xff] }
   0x8   :  { %531 = vmatprep.subr.bf16.mxu0 %v530_v33 }
   0xa   :  { %533 = vmatpush3.bf16.msra.mxu0 %v530_v33 }
  0x90   :  { %v33_v8 = vpop.xlane.xlu0 %32  ;;  %v39_v9 = vpop.xlane.xlu1 %38 }
  0x91   :  { %v44_v10 = vmul.f32 0.03125, %v33_v8  ;;  %v46_v11 = vmul.f32 0.03125, %v39_v9  ;;  %v542_v8 = vpack.c.bf16 %v327_v7, %v326_v6  ;;  %v328_v9 = vld [vmem:[%s780_s5 + $0x30] sm:$0xff] }
  0x93   :  { %v48_v12 = vsub.f32 %v26_v0, %v44_v10  ;;  %v50_v13 = vsub.f32 %v28_v1, %v46_v11  ;;  %v322_v0 = vld [vmem:[%s780_s5] sm:$0xff]  ;;  %v323_v1 = vld [vmem:[%s780_s5 + $0x8] sm:$0xff]  ;;  %v329_v10 = vld [vmem:[%s780_s5 + $0x38] sm:$0xff] }
  0x94   :  { %v36_v14 = vpop.xlane.xlu0 %35  ;;  %v42_v15 = vpop.xlane.xlu1 %41  ;;  %v546_v11 = vpack.c.bf16 %v329_v10, %v328_v9 }
  0x95   :  { %v45_v16 = vmul.f32 0.03125, %v36_v14  ;;  %v47_v17 = vmul.f32 0.03125, %v42_v15  ;;  %v52_v18 = vmul.f32 %v48_v12, %v48_v12  ;;  %v54_v19 = vmul.f32 %v50_v13, %v50_v13  ;;  %v332_v15 = vld [vmem:[%s780_s5 + $0x50] sm:$0xff] }
  0x97   :  { %v49_v20 = vsub.f32 %v27_v2, %v45_v16  ;;  %v51_v21 = vsub.f32 %v29_v5, %v47_v17  ;;  %v56_v22 = vsel %vm30_vm0, %v52_v18, 0.0  ;;  %v62_v23 = vsel %vm30_vm0, %v54_v19, 0.0  ;;  %v333_v16 = vld [vmem:[%s780_s5 + $0x58] sm:$0xff]  ;;  %v334_v18 = vld [vmem:[%s780_s5 + $0x60] sm:$0xff]  ;;  %v335_v19 = vld [vmem:[%s780_s5 + $0x68] sm:$0xff] }
  0x98   :  { %57 = vadd.xlane.f32.xlu0 %v56_v22  ;;  %v534_v2 = vpack.c.bf16 %v323_v1, %v322_v0  ;;  %v538_v5 = vpack.c.bf16 %v325_v4, %v324_v3  ;;  %v554_v17 = vpack.c.bf16 %v333_v16, %v332_v15  ;;  %v337_v22 = vld [vmem:[%s780_s5 + $0x78] sm:$0xff] }
  0x99   :  { %v53_v24 = vmul.f32 %v49_v20, %v49_v20  ;;  %v55_v25 = vmul.f32 %v51_v21, %v51_v21 }
  0x9a   :  { %535 = vmatprep.subr.bf16.mxu1 %v534_v2 }
  0x9b   :  { %v59_v26 = vsel %vm30_vm0, %v53_v24, 0.0  ;;  %v65_v27 = vsel %vm30_vm0, %v55_v25, 0.0  ;;  %537 = vmatpush3.bf16.msra.mxu1 %v534_v2  ;;  %v440_v24 = vld [vmem:[%s781_s4] ss:$0 sm:$0xff] }
  0x9c   :  { %63 = vadd.xlane.f32.xlu0 %v62_v23  ;;  %60 = vadd.xlane.f32.xlu1 %v59_v26 }
  0x9d   :  { %539 = vmatprep.subr.bf16.mxu1 %v538_v5 }
  0x9f   :  { %541 = vmatpush3.bf16.msra.mxu1 %v538_v5 }
  0xa0   :  { %66 = vadd.xlane.f32.xlu1 %v65_v27  ;;  %543 = vmatprep.subr.bf16.mxu1 %v542_v8 }
  0xa3   :  { %545 = vmatpush3.bf16.msra.mxu1 %v542_v8 }
  0xa4   :  { %547 = vmatprep.subr.bf16.mxu1 %v546_v11 }
  0xa7   :  { %549 = vmatpush3.bf16.msra.mxu1 %v546_v11 }
 0x125   :  { %v58_v34 = vpop.xlane.xlu0 %57 }
 0x126   :  { %v68_v35 = vmul.f32 0.03125, %v58_v34 }
 0x128   :  { %v72_v36 = vadd.f32 1e-05, %v68_v35 }
 0x129   :  { %v61_v37 = vpop.xlane.xlu1 %60  ;;  %v64_v38 = vpop.xlane.xlu0 %63 }
 0x12a   :  { %567 = vrsqrt.f32 %v72_v36  ;;  %v69_v39 = vmul.f32 0.03125, %v61_v37  ;;  %v70_v40 = vmul.f32 0.03125, %v64_v38 }
 0x12c   :  { %v73_v41 = vadd.f32 1e-05, %v69_v39  ;;  %v74_v42 = vadd.f32 1e-05, %v70_v40 }
 0x12d   :  { %v67_v43 = vpop.xlane.xlu1 %66 }
 0x12e   :  { %569 = vrsqrt.f32 %v73_v41  ;;  %v71_v44 = vmul.f32 0.03125, %v67_v43 }
 0x12f   :  { %571 = vrsqrt.f32 %v74_v42 }
 0x130   :  { %v75_v45 = vadd.f32 1e-05, %v71_v44 }
 0x132   :  { %573 = vrsqrt.f32 %v75_v45 }
 0x134   :  { %v568_v46 = vpop.eup %567 }
 0x135   :  { %v80_v48 = vmul.f32 %v568_v46, %v48_v12  ;;  %v330_v12 = vld [vmem:[%s780_s5 + $0x40] sm:$0xff] }
 0x137   :  { %v91_v50 = vmul.f32 %v438_v47, %v80_v48 }
 0x138   :  { %v570_v51 = vpop.eup %569 }
 0x139   :  { %v572_v52 = vpop.eup %571  ;;  %v102_v53 = vadd.f32 %v439_v49, %v91_v50  ;;  %v81_v54 = vmul.f32 %v570_v51, %v49_v20  ;;  %v558_v20 = vpack.c.bf16 %v335_v19, %v334_v18 }
 0x13a   :  { %v82_v55 = vmul.f32 %v572_v52, %v50_v13  ;;  %v331_v13 = vld [vmem:[%s780_s5 + $0x48] sm:$0xff] }
 0x13b   :  { %482 = vmatprep.mubr.msk.f32.mxu0 %vm30_vm0, %v102_v53  ;;  %v92_v56 = vmul.f32 %v438_v47, %v81_v54  ;;  %v550_v14 = vpack.c.bf16 %v331_v13, %v330_v12 }
 0x13c   :  { %v574_v57 = vpop.eup %573  ;;  %v93_v58 = vmul.f32 %v438_v47, %v82_v55 }
 0x13d   :  { %v103_v59 = vadd.f32 %v439_v49, %v92_v56  ;;  %v83_v60 = vmul.f32 %v574_v57, %v51_v21  ;;  %551 = vmatprep.subr.bf16.mxu1 %v550_v14  ;;  %v336_v21 = vld [vmem:[%s780_s5 + $0x70] sm:$0xff] }
 0x13e   :  { %v104_v61 = vadd.f32 %v439_v49, %v93_v58  ;;  %553 = vmatpush3.bf16.msra.mxu1 %v550_v14  ;;  %v562_v23 = vpack.c.bf16 %v337_v22, %v336_v21 }
 0x13f   :  { %483 = vmatmul.mubr.msk.f32.vlgmr.msra.gmra.mrb[0].mxu0 %vm30_vm0, %v103_v59  ;;  %v94_v62 = vmul.f32 %v438_v47, %v83_v60  ;;  %555 = vmatprep.subr.bf16.mxu1 %v554_v17 }
 0x140   :  { %485 = vmatprep.mubr.msk.f32.mxu0 %vm30_vm0, %v104_v61 }
 0x141   :  { %v105_v63 = vadd.f32 %v439_v49, %v94_v62 }
 0x142   :  { %557 = vmatpush3.bf16.msra.mxu1 %v554_v17 }
 0x143   :  { %486 = vmatmul.mubr.msk.f32.gmra.mrb[2].mxu0 %vm30_vm0, %v105_v63  ;;  %559 = vmatprep.subr.bf16.mxu1 %v558_v20 }
 0x146   :  { %561 = vmatpush3.bf16.msra.mxu1 %v558_v20 }
 0x147   :  { %563 = vmatprep.subr.bf16.mxu1 %v562_v23 }
 0x14a   :  { %565 = vmatpush3.bf16.msra.mxu1 %v562_v23 }
 0x212   :  { %v484_v25 = vpop.f32.mrb[0].mxu0 }
 0x213   :  { %v725_v26 = vadd.f32 %v484_v25, %v440_v24  ;;  %v195_v27 = vpop.f32.mrb[1].mxu0 }
 0x214   :  { %v727_v28 = vadd.f32 %v440_v24, %v195_v27 }
 0x215   :  { %v730_v29 = vmul.f32 0.70710677, %v725_v26 }
 0x216   :  { %v733_v30 = vmul.f32 0.70710677, %v727_v28  ;;  %v487_v31 = vpop.f32.mrb[2].mxu0 }
 0x217   :  { %v231_v32 = vand.u32 2147483647, %v730_v29  ;;  %v736_v33 = vadd.f32 %v487_v31, %v440_v24  ;;  %v205_v34 = vpop.f32.mrb[3].mxu0  ;;  %vm223_vm1 = vcmp.lt.f32.partialorder %v730_v29, 0.0 }
 0x218   :  { %v230_v35 = vand.u32 2147483647, %v733_v30  ;;  %v739_v36 = vadd.f32 %v440_v24, %v205_v34  ;;  %vm222_vm2 = vcmp.lt.f32.partialorder %v733_v30, 0.0 }
 0x219   :  { %v235_v37 = vmul.f32 0.3275911, %v231_v32  ;;  %v742_v38 = vmul.f32 0.70710677, %v736_v33  ;;  %v287_v49 = vsub.f32 0.0, %v231_v32 }
 0x21a   :  { %v234_v39 = vmul.f32 0.3275911, %v230_v35  ;;  %v745_v40 = vmul.f32 0.70710677, %v739_v36  ;;  %v286_v50 = vsub.f32 0.0, %v230_v35 }
 0x21b   :  { %v239_v41 = vadd.f32 1.0, %v235_v37  ;;  %v233_v42 = vand.u32 2147483647, %v742_v38  ;;  %v291_v52 = vmul.f32 %v287_v49, %v231_v32  ;;  %v591_v49 = vmov 1.0  }
 0x21c   :  { %v238_v43 = vadd.f32 1.0, %v234_v39  ;;  %v232_v45 = vand.u32 2147483647, %v745_v40  ;;  %v290_v55 = vmul.f32 %v286_v50, %v230_v35  ;;  %v227_v50 = vsel %vm223_vm1, -1.0, %v591_v49 }
 0x21d   :  { %575 = vrcp.f32 %v239_v41  ;;  %v237_v44 = vmul.f32 0.3275911, %v233_v42  ;;  %v289_v53 = vsub.f32 0.0, %v233_v42  ;;  %v296_v61 = vmul.f32 1.442695, %v291_v52 }
 0x21e   :  { %577 = vrcp.f32 %v238_v43  ;;  %v236_v47 = vmul.f32 0.3275911, %v232_v45  ;;  %v288_v58 = vsub.f32 0.0, %v232_v45  ;;  %v294_v0 = vmul.f32 1.442695, %v290_v55 }
 0x21f   :  { %v241_v46 = vadd.f32 1.0, %v237_v44  ;;  %v293_v62 = vmul.f32 %v289_v53, %v233_v42  ;;  %vm225_vm3 = vcmp.lt.f32.partialorder %v742_v38, 0.0  ;;  %v226_v53 = vsel %vm222_vm2, -1.0, %v591_v49 }
 0x220   :  { %v240_v48 = vadd.f32 1.0, %v236_v47  ;;  %v292_v5 = vmul.f32 %v288_v58, %v232_v45  ;;  %v214_v58 = vmul.f32 0.5, %v727_v28  ;;  %vm224_vm4 = vcmp.lt.f32.partialorder %v745_v40, 0.0 }
 0x221   :  { %579 = vrcp.f32 %v241_v46  ;;  %v300_v8 = vmul.f32 1.442695, %v293_v62  ;;  %v216_v28 = vmul.f32 0.5, %v739_v36 }
 0x222   :  { %581 = vrcp.f32 %v240_v48  ;;  %v298_v15 = vmul.f32 1.442695, %v292_v5 }
 0x223   :  { %583 = vpow2.f32 %v296_v61  ;;  %v229_v61 = vsel %vm225_vm3, -1.0, %v591_v49 }
 0x224   :  { %585 = vpow2.f32 %v294_v0 }
 0x225   :  { %587 = vpow2.f32 %v300_v8 }
 0x226   :  { %589 = vpow2.f32 %v298_v15 }
 0x227   :  { %v576_v51 = vpop.eup %575 }
 0x228   :  { %v578_v54 = vpop.eup %577  ;;  %v251_v56 = vmul.f32 1.0614054, %v576_v51 }
 0x229   :  { %v250_v57 = vmul.f32 1.0614054, %v578_v54 }
 0x22a   :  { %v255_v59 = vadd.f32 -1.4531521, %v251_v56 }
 0x22b   :  { %v580_v60 = vpop.eup %579  ;;  %v254_v63 = vadd.f32 -1.4531521, %v250_v57 }
 0x22c   :  { %v259_v1 = vmul.f32 %v576_v51, %v255_v59  ;;  %v253_v2 = vmul.f32 1.0614054, %v580_v60  ;;  %v582_v4 = vpop.eup %581 }
 0x22d   :  { %v258_v3 = vmul.f32 %v578_v54, %v254_v63  ;;  %v252_v10 = vmul.f32 1.0614054, %v582_v4  ;;  %v584_v35 = vpop.eup %583  ;;  %v215_v63 = vmul.f32 0.5, %v725_v26  ;;  %v445_v26 = vld [vmem:[%s782_s6] ss:$0 sm:$0xff] }
 0x22e   :  { %v263_v6 = vadd.f32 1.4214138, %v259_v1  ;;  %v257_v7 = vadd.f32 -1.4531521, %v253_v2  ;;  %v586_v41 = vpop.eup %585  ;;  %v228_v2 = vsel %vm224_vm4, -1.0, %v591_v49 }
 0x22f   :  { %v262_v9 = vadd.f32 1.4214138, %v258_v3  ;;  %v256_v14 = vadd.f32 -1.4531521, %v252_v10  ;;  %v588_v48 = vpop.eup %587 }
 0x230   :  { %v267_v11 = vmul.f32 %v576_v51, %v263_v6  ;;  %v261_v12 = vmul.f32 %v580_v60, %v257_v7  ;;  %v590_v57 = vpop.eup %589  ;;  %v217_v7 = vmul.f32 0.5, %v736_v33 }
 0x231   :  { %v266_v13 = vmul.f32 %v578_v54, %v262_v9  ;;  %v260_v19 = vmul.f32 %v582_v4, %v256_v14 }
 0x232   :  { %v271_v16 = vadd.f32 -0.28449672, %v267_v11  ;;  %v265_v17 = vadd.f32 1.4214138, %v261_v12 }
 0x233   :  { %v270_v18 = vadd.f32 -0.28449672, %v266_v13  ;;  %v264_v23 = vadd.f32 1.4214138, %v260_v19 }
 0x234   :  { %v275_v20 = vmul.f32 %v576_v51, %v271_v16  ;;  %v269_v21 = vmul.f32 %v580_v60, %v265_v17 }
 0x235   :  { %v274_v22 = vmul.f32 %v578_v54, %v270_v18  ;;  %v268_v31 = vmul.f32 %v582_v4, %v264_v23 }
 0x236   :  { %v279_v24 = vadd.f32 0.2548296, %v275_v20  ;;  %v273_v25 = vadd.f32 -0.28449672, %v269_v21 }
 0x237   :  { %v278_v27 = vadd.f32 0.2548296, %v274_v22  ;;  %v272_v39 = vadd.f32 -0.28449672, %v268_v31 }
 0x238   :  { %v283_v32 = vmul.f32 %v576_v51, %v279_v24  ;;  %v277_v34 = vmul.f32 %v580_v60, %v273_v25 }
 0x239   :  { %v282_v37 = vmul.f32 %v578_v54, %v278_v27  ;;  %v276_v45 = vmul.f32 %v582_v4, %v272_v39 }
 0x23a   :  { %v303_v42 = vmul.f32 %v584_v35, %v283_v32  ;;  %v281_v43 = vadd.f32 0.2548296, %v277_v34 }
 0x23b   :  { %v302_v44 = vmul.f32 %v586_v41, %v282_v37  ;;  %v280_v51 = vadd.f32 0.2548296, %v276_v45 }
 0x23c   :  { %v307_v46 = vsub.f32 1.0, %v303_v42  ;;  %v285_v47 = vmul.f32 %v580_v60, %v281_v43 }
 0x23d   :  { %v306_v52 = vsub.f32 1.0, %v302_v44  ;;  %v284_v29 = vmul.f32 %v582_v4, %v280_v51 }
 0x23e   :  { %v311_v54 = vmul.f32 %v307_v46, %v227_v50  ;;  %v305_v55 = vmul.f32 %v588_v48, %v285_v47 }
 0x23f   :  { %v310_v56 = vmul.f32 %v306_v52, %v226_v53  ;;  %v304_v62 = vmul.f32 %v590_v57, %v284_v29 }
 0x240   :  { %v315_v30 = vadd.f32 1.0, %v311_v54  ;;  %v309_v59 = vsub.f32 1.0, %v305_v55 }
 0x241   :  { %v314_v60 = vadd.f32 1.0, %v310_v56  ;;  %v308_v38 = vsub.f32 1.0, %v304_v62 }
 0x242   :  { %v313_v0 = vmul.f32 %v309_v59, %v229_v61  ;;  %v319_v3 = vmul.f32 %v315_v30, %v215_v63 }
 0x243   :  { %v318_v1 = vmul.f32 %v314_v60, %v214_v58  ;;  %v312_v5 = vmul.f32 %v308_v38, %v228_v2 }
 0x244   :  { %v317_v4 = vadd.f32 1.0, %v313_v0 }
 0x245   :  { %520 = vmatprep.mubr.f32.mxu1 %v318_v1  ;;  %v316_v6 = vadd.f32 1.0, %v312_v5 }
 0x246   :  { %521 = vmatmul.mubr.f32.vlgmr.msra.gmra.mrb[0].mxu1 %v319_v3  ;;  %v321_v40 = vmul.f32 %v317_v4, %v217_v7 }
 0x247   :  { %v320_v8 = vmul.f32 %v316_v6, %v216_v28 }
 0x249   :  { %523 = vmatprep.mubr.f32.mxu1 %v320_v8 }
 0x24a   :  { %524 = vmatmul.mubr.f32.gmra.mrb[2].mxu1 %v321_v40 }
 0x319   :  { %v522_v9 = vpop.f32.mrb[0].mxu1 }
 0x31a   :  { %v417_v10 = vadd.f32 %v522_v9, %v445_v26  ;;  %v411_v11 = vpop.f32.mrb[1].mxu1 }
 0x31b   :  { %v412_v12 = vadd.f32 %v445_v26, %v411_v11 }
 0x31c   :  { %431 = vst.msk [vmem:[%s783_s7 + $0x8] sm:$0xff] %vm30_vm0, %v417_v10 }
 0x31d   :  { %430 = vst.msk [vmem:[%s783_s7] sm:$0xff] %vm30_vm0, %v412_v12  ;;  %v525_v33 = vpop.f32.mrb[2].mxu1 }
 0x31e   :  { %v427_v36 = vadd.f32 %v525_v33, %v445_v26  ;;  %v421_v13 = vpop.f32.mrb[3].mxu1 }
 0x31f   :  { %v422_v14 = vadd.f32 %v445_v26, %v421_v13 }
 0x320   :  { %433 = vst.msk [vmem:[%s783_s7 + $0x18] sm:$0xff] %vm30_vm0, %v427_v36 }
 0x321   :  { %432 = vst.msk [vmem:[%s783_s7 + $0x10] sm:$0xff] %vm30_vm0, %v422_v14 }

</bundles_post_ra>
